<compile_context>
chip_gen: v6e
topology: v6e:2x2x1
jax: 0.10.0
libtpu: 0.0.40
codegen_flags: <defaults>
</compile_context>

<pallas_src>
import jax
import jax.numpy as jnp
from jax import lax
from jax.experimental import pallas as pl
from jax.experimental.pallas import tpu as pltpu
import numpy as np

_LANE = 128
_SUBLANE = 8


def _round_up(n, m):
    return ((n + m - 1) // m) * m


# ------------------------------ Pallas kernel -------------------------------

def bilstm_kernel(x_ref,          # (T, Bt, Fp)   time-major inputs
                  wih_ref,        # (Fp, 8*Hp)    [W_ih_fwd | W_ih_bwd], MXU-ready
                  bih_ref,        # (1, 8*Hp)     [b_fwd | b_bwd]
                  whh_f_ref,      # (Hp, 4*Hp)
                  whh_b_ref,      # (Hp, 4*Hp)
                  wout_f_ref,     # (Hp, Cp)      forward half of classifier
                  wout_b_ref,     # (Hp, Cp)      backward half of classifier
                  bout_ref,       # (1, Cp)
                  out_ref,        # (T, Bt, Cp)   lane-dense emissions
                  xp_ref,         # scratch (T, Bt, 8*Hp) f32
                  hf_ref,         # scratch (T, Bt, Hp)   f32
                  hb_ref):        # scratch (T, Bt, Hp)   f32
    T, Bt, _ = x_ref.shape
    Hp = whh_f_ref.shape[0]
    G = 4 * Hp

    # Fused input projection for BOTH directions, staged once (single big MXU op).
    xp_ref[...] = (
        jnp.einsum("tbf,fg->tbg", x_ref[...], wih_ref[...],
                   preferred_element_type=jnp.float32)
        + bih_ref[...])

    whh_f = whh_f_ref[...]
    whh_b = whh_b_ref[...]

    def cell(gates, c):
        i_g = jax.nn.sigmoid(gates[:, 0 * Hp:1 * Hp])
        f_g = jax.nn.sigmoid(gates[:, 1 * Hp:2 * Hp])
        g_g = jnp.tanh(gates[:, 2 * Hp:3 * Hp])
        o_g = jax.nn.sigmoid(gates[:, 3 * Hp:4 * Hp])
        c = f_g * c + i_g * g_g
        return o_g * jnp.tanh(c), c

    def step(i, carry):
        hf, cf, hb, cb = carry
        tf = i
        tb = T - 1 - i
        # Forward consumes step tf, backward consumes step tb; their matmuls and
        # EUP pushes interleave instead of running as two back-to-back loops.
        gates_f = xp_ref[tf][:, :G] + jnp.dot(
            hf.astype(whh_f.dtype), whh_f, preferred_element_type=jnp.float32)
        gates_b = xp_ref[tb][:, G:] + jnp.dot(
            hb.astype(whh_b.dtype), whh_b, preferred_element_type=jnp.float32)
        hf, cf = cell(gates_f, cf)
        hb, cb = cell(gates_b, cb)
        hf_ref[tf] = hf
        hb_ref[tb] = hb
        return hf, cf, hb, cb

    zeros = jnp.zeros((Bt, Hp), jnp.float32)
    lax.fori_loop(0, T, step, (zeros, zeros, zeros, zeros), unroll=True)

    # Classifier: split W_out into forward/backward halves — no in-kernel concat.
    wdt = wout_f_ref.dtype
    logits = (
        jnp.einsum("tbh,hc->tbc", hf_ref[...].astype(wdt), wout_f_ref[...],
                   preferred_element_type=jnp.float32)
        + jnp.einsum("tbh,hc->tbc", hb_ref[...].astype(wdt), wout_b_ref[...],
                     preferred_element_type=jnp.float32)
        + bout_ref[...])
    out_ref[...] = logits.astype(out_ref.dtype)


# ----------------------- wrapper: packing + pallas_call ----------------------

def _pack_gate_weight(w, Hp, Kp):
    """torch-layout (4H, K) gate weight -> zero-padded, MXU-ready (Kp, 4*Hp)."""
    four_h, K = w.shape
    H = four_h // 4
    w = w.reshape(4, H, K)
    w = jnp.pad(w, ((0, 0), (0, Hp - H), (0, Kp - K)))
    return jnp.transpose(w, (2, 0, 1)).reshape(Kp, 4 * Hp)


def _pack_gate_bias(b, Hp):
    """Combined bias (1, 4H) -> zero-padded (1, 4*Hp)."""
    b = b.reshape(4, -1)
    H = b.shape[1]
    b = jnp.pad(b, ((0, 0), (0, Hp - H)))
    return b.reshape(1, 4 * Hp)


def bilstm_with_crf_forward(x, params, *, compute_dtype=jnp.float32):
    """Emissions (B, T, n_classes) for the default (no-CRF, no-mask) module."""
    B, T, F = x.shape
    H = params["whh_f"].shape[1]
    C = params["wout"].shape[0]

    Fp = _round_up(F, _LANE)
    Hp = _round_up(H, _LANE)
    Cp = _round_up(C, _LANE)
    Bp = _round_up(B, _SUBLANE)
    Bt = _SUBLANE                         # batch tile per grid program

    # Layout plumbing stays in XLA: transposes, per-gate zero padding, fusion.
    # Zero-padded hidden channels stay exactly zero through the recurrence
    # (sigmoid(0)*tanh(0) paths), so results match the unpadded model exactly.
    wih = jnp.concatenate(
        [_pack_gate_weight(params["wih_f"], Hp, Fp),
         _pack_gate_weight(params["wih_b"], Hp, Fp)], axis=1).astype(compute_dtype)
    bih = jnp.concatenate(
        [_pack_gate_bias(params["b_f"], Hp),
         _pack_gate_bias(params["b_b"], Hp)], axis=1).astype(jnp.float32)
    whh_f = _pack_gate_weight(params["whh_f"], Hp, Hp).astype(compute_dtype)
    whh_b = _pack_gate_weight(params["whh_b"], Hp, Hp).astype(compute_dtype)
    wout_f = jnp.pad(params["wout"][:, :H].T,
                     ((0, Hp - H), (0, Cp - C))).astype(compute_dtype)
    wout_b = jnp.pad(params["wout"][:, H:].T,
                     ((0, Hp - H), (0, Cp - C))).astype(compute_dtype)
    bout = jnp.pad(params["bout"], ((0, 0), (0, Cp - C))).astype(jnp.float32)

    xs = jnp.transpose(x, (1, 0, 2))                      # time-major (T, B, F)
    xs = jnp.pad(xs, ((0, 0), (0, Bp - B), (0, Fp - F))).astype(compute_dtype)

    esize = jnp.dtype(compute_dtype).itemsize
    cost = pl.CostEstimate(
        flops=int(2 * T * Bp * Fp * 8 * Hp              # fused input projection
                  + 2 * 2 * T * Bp * Hp * 4 * Hp        # recurrences (2 dirs)
                  + 2 * 2 * T * Bp * Hp * Cp),          # classifier (2 halves)
        transcendentals=int(2 * 5 * T * Bp * Hp),       # 3 sigmoid + 2 tanh / dir
        bytes_accessed=int(esize * (xs.size + wih.size + whh_f.size + whh_b.size
                                    + wout_f.size + wout_b.size)
                           + 4 * (bih.size + bout.size + T * Bp * Cp)),
    )

    kernel = pl.pallas_call(
        bilstm_kernel,
        out_shape=jax.ShapeDtypeStruct((T, Bp, Cp), jnp.float32),
        grid=(Bp // Bt,),
        in_specs=[
            pl.BlockSpec((T, Bt, Fp), lambda b: (0, b, 0)),
            pl.BlockSpec((Fp, 8 * Hp), lambda b: (0, 0)),
            pl.BlockSpec((1, 8 * Hp), lambda b: (0, 0)),
            pl.BlockSpec((Hp, 4 * Hp), lambda b: (0, 0)),
            pl.BlockSpec((Hp, 4 * Hp), lambda b: (0, 0)),
            pl.BlockSpec((Hp, Cp), lambda b: (0, 0)),
            pl.BlockSpec((Hp, Cp), lambda b: (0, 0)),
            pl.BlockSpec((1, Cp), lambda b: (0, 0)),
        ],
        out_specs=pl.BlockSpec((T, Bt, Cp), lambda b: (0, b, 0)),
        scratch_shapes=[
            pltpu.VMEM((T, Bt, 8 * Hp), jnp.float32),   # staged input projections
            pltpu.VMEM((T, Bt, Hp), jnp.float32),       # forward hidden states
            pltpu.VMEM((T, Bt, Hp), jnp.float32),       # backward hidden states
        ],
        compiler_params=pltpu.CompilerParams(
            dimension_semantics=("parallel",),          # batch tiles -> megacore
            vmem_limit_bytes=32 * 1024 * 1024),
        cost_estimate=cost,
    )
    out = kernel(xs, wih, bih, whh_f, whh_b, wout_f, wout_b, bout)
    # Kernel emits lane-dense (T, Bp, Cp); un-pad / layout back to (B, T, C) in XLA.
    return jnp.transpose(out, (1, 0, 2))[:B, :, :C]


# ---------------- pure-JAX reference (for correctness check) ----------------

def _lstm_ref(x, wih, whh, b, reverse):
    B, T, _ = x.shape
    H = whh.shape[1]
    xs = jnp.transpose(x, (1, 0, 2)).astype(jnp.float32)   # (T, B, F)
    if reverse:
        xs = xs[::-1]

    def step(carry, xt):
        h, c = carry
        gates = xt @ wih.T + b + h @ whh.T
        i_g = jax.nn.sigmoid(gates[:, :H])
        f_g = jax.nn.sigmoid(gates[:, H:2 * H])
        g_g = jnp.tanh(gates[:, 2 * H:3 * H])
        o_g = jax.nn.sigmoid(gates[:, 3 * H:])
        c = f_g * c + i_g * g_g
        h = o_g * jnp.tanh(c)
        return (h, c), h

    init = (jnp.zeros((B, H), jnp.float32), jnp.zeros((B, H), jnp.float32))
    _, hs = lax.scan(step, init, xs)
    if reverse:
        hs = hs[::-1]
    return jnp.transpose(hs, (1, 0, 2))                    # (B, T, H)


def bilstm_with_crf_reference(x, params):
    hf = _lstm_ref(x, params["wih_f"], params["whh_f"], params["b_f"], reverse=False)
    hb = _lstm_ref(x, params["wih_b"], params["whh_b"], params["b_b"], reverse=True)
    h = jnp.concatenate([hf, hb], axis=-1)                 # (B, T, 2H)
    return h @ params["wout"].T + params["bout"]           # (B, T, C)


# --------------------------- deterministic setup ----------------------------

def init_params(key, n_features, hidden_size, n_classes):
    H, F, C = hidden_size, n_features, n_classes
    ks = jax.random.split(key, 8)
    s = 0.1
    return {
        "wih_f": jax.random.normal(ks[0], (4 * H, F), jnp.float32) * s,
        "whh_f": jax.random.normal(ks[1], (4 * H, H), jnp.float32) * s,
        "b_f":   jax.random.normal(ks[2], (1, 4 * H), jnp.float32) * s,
        "wih_b": jax.random.normal(ks[3], (4 * H, F), jnp.float32) * s,
        "whh_b": jax.random.normal(ks[4], (4 * H, H), jnp.float32) * s,
        "b_b":   jax.random.normal(ks[5], (1, 4 * H), jnp.float32) * s,
        "wout":  jax.random.normal(ks[6], (C, 2 * H), jnp.float32) * s,
        "bout":  jax.random.normal(ks[7], (1, C), jnp.float32) * s,
    }


if __name__ == "__main__":
    B, T = 2, 8            # batch, seq
    n_features = 16
    hidden_size = 32
    n_classes = 8

    key = jax.random.PRNGKey(0)
    kx, kp = jax.random.split(key)
    x = jax.random.normal(kx, (B, T, n_features), jnp.float32)
    params = init_params(kp, n_features, hidden_size, n_classes)

    emissions = bilstm_with_crf_forward(x, params)
    emissions = jax.block_until_ready(emissions)

    ref = jax.block_until_ready(bilstm_with_crf_reference(x, params))
    assert emissions.shape == (B, T, n_classes), emissions.shape
    np.testing.assert_allclose(np.asarray(emissions), np.asarray(ref),
                               rtol=1e-4, atol=1e-4)

    print("KERNEL_OK")
</pallas_src>

<mosaic_0001>
module attributes {stable_mosaic.version = 11 : i64} {
  func.func @bilstm_kernel(%arg0: i32, %arg1: memref<8x8x128xf32, #tpu.memory_space<vmem>>, %arg2: memref<128x1024xf32, #tpu.memory_space<vmem>>, %arg3: memref<1x1024xf32, #tpu.memory_space<vmem>>, %arg4: memref<128x512xf32, #tpu.memory_space<vmem>>, %arg5: memref<128x512xf32, #tpu.memory_space<vmem>>, %arg6: memref<128x128xf32, #tpu.memory_space<vmem>>, %arg7: memref<128x128xf32, #tpu.memory_space<vmem>>, %arg8: memref<1x128xf32, #tpu.memory_space<vmem>>, %arg9: memref<8x8x128xf32, #tpu.memory_space<vmem>>, %arg10: memref<8x8x1024xf32, #tpu.memory_space<vmem>>, %arg11: memref<8x8x128xf32, #tpu.memory_space<vmem>>, %arg12: memref<8x8x128xf32, #tpu.memory_space<vmem>>) attributes {dimension_semantics = [#tpu.dimension_semantics<parallel>], iteration_bounds = array<i64: 1>, scalar_prefetch = 0 : i64, scratch_operands = 3 : i64, tpu.core_type = #tpu.core_type<tc>, window_params = [{transform_indices = @transform_0, window_bounds = array<i64: 8, 8, 128>}, {pipeline_mode = #tpu.pipeline_mode<synchronous>, transform_indices = @transform_1, window_bounds = array<i64: 128, 1024>}, {pipeline_mode = #tpu.pipeline_mode<synchronous>, transform_indices = @transform_2, window_bounds = array<i64: 1, 1024>}, {pipeline_mode = #tpu.pipeline_mode<synchronous>, transform_indices = @transform_3, window_bounds = array<i64: 128, 512>}, {pipeline_mode = #tpu.pipeline_mode<synchronous>, transform_indices = @transform_4, window_bounds = array<i64: 128, 512>}, {pipeline_mode = #tpu.pipeline_mode<synchronous>, transform_indices = @transform_5, window_bounds = array<i64: 128, 128>}, {pipeline_mode = #tpu.pipeline_mode<synchronous>, transform_indices = @transform_6, window_bounds = array<i64: 128, 128>}, {pipeline_mode = #tpu.pipeline_mode<synchronous>, transform_indices = @transform_7, window_bounds = array<i64: 1, 128>}, {transform_indices = @transform_8, window_bounds = array<i64: 8, 8, 128>}]} {
    %c0 = arith.constant 0 : index
    %c0_0 = arith.constant 0 : index
    %c0_1 = arith.constant 0 : index
    %0 = vector.load %arg1[%c0, %c0_0, %c0_1] : memref<8x8x128xf32, #tpu.memory_space<vmem>>, vector<8x8x128xf32>
    %c0_2 = arith.constant 0 : index
    %c0_3 = arith.constant 0 : index
    %1 = vector.load %arg2[%c0_2, %c0_3] : memref<128x1024xf32, #tpu.memory_space<vmem>>, vector<128x1024xf32>
    "tpu.trace_start"() <{level = 10 : i32, message = "tbf,fg->tbg"}> : () -> ()
    %cst = arith.constant dense<0.000000e+00> : vector<8x8x1024xf32>
    %2 = tpu.matmul %0, %1, %cst {dimension_numbers = #tpu.dot_dimension_numbers<[2], [0], [0, 1], [1], [0, 0, 0, 1, 1, 1], [], []>} : vector<8x8x128xf32>, vector<128x1024xf32>, vector<8x8x1024xf32> -> vector<8x8x1024xf32>
    "tpu.trace_stop"() : () -> ()
    %c0_4 = arith.constant 0 : index
    %c0_5 = arith.constant 0 : index
    %3 = vector.load %arg3[%c0_4, %c0_5] : memref<1x1024xf32, #tpu.memory_space<vmem>>, vector<1x1024xf32>
    %4 = vector.shape_cast %3 : vector<1x1024xf32> to vector<1x1x1024xf32>
    %5 = vector.broadcast %4 : vector<1x1x1024xf32> to vector<8x8x1024xf32>
    %6 = arith.addf %2, %5 : vector<8x8x1024xf32>
    %c0_6 = arith.constant 0 : index
    %c0_7 = arith.constant 0 : index
    %c0_8 = arith.constant 0 : index
    %7 = vector.load %arg10[%c0_6, %c0_7, %c0_8] : memref<8x8x1024xf32, #tpu.memory_space<vmem>>, vector<8x8x1024xf32>
    tpu.vector_store %arg10[%c0_6, %c0_7, %c0_8], %6 {strides = array<i32>} : memref<8x8x1024xf32, #tpu.memory_space<vmem>>, vector<8x8x1024xf32>,
    %c0_9 = arith.constant 0 : index
    %c0_10 = arith.constant 0 : index
    %8 = vector.load %arg4[%c0_9, %c0_10] : memref<128x512xf32, #tpu.memory_space<vmem>>, vector<128x512xf32>
    %c0_11 = arith.constant 0 : index
    %c0_12 = arith.constant 0 : index
    %9 = vector.load %arg5[%c0_11, %c0_12] : memref<128x512xf32, #tpu.memory_space<vmem>>, vector<128x512xf32>
    %cst_13 = arith.constant 0.000000e+00 : f32
    %10 = vector.broadcast %cst_13 : f32 to vector<8x128xf32>
    %c0_i32 = arith.constant 0 : i32
    %c7_i32 = arith.constant 7 : i32
    %11 = arith.subi %c7_i32, %c0_i32 : i32
    %12 = arith.index_cast %c0_i32 : i32 to index
    %c0_14 = arith.constant 0 : index
    %c0_15 = arith.constant 0 : index
    %13 = vector.load %arg10[%12, %c0_14, %c0_15] : memref<8x8x1024xf32, #tpu.memory_space<vmem>>, vector<1x8x1024xf32>
    %14 = vector.shape_cast %13 : vector<1x8x1024xf32> to vector<8x1024xf32>
    %15 = vector.extract_strided_slice %14 {offsets = [0, 0], sizes = [8, 512], strides = [1, 1]} : vector<8x1024xf32> to vector<8x512xf32>
    %cst_16 = arith.constant dense<0.000000e+00> : vector<8x512xf32>
    %16 = tpu.matmul %10, %8, %cst_16 {dimension_numbers = #tpu.dot_dimension_numbers<[1], [0], [0], [1], [0, 0, 1, 1], [], []>} : vector<8x128xf32>, vector<128x512xf32>, vector<8x512xf32> -> vector<8x512xf32>
    %17 = arith.addf %15, %16 : vector<8x512xf32>
    %18 = arith.index_cast %11 : i32 to index
    %c0_17 = arith.constant 0 : index
    %c0_18 = arith.constant 0 : index
    %19 = vector.load %arg10[%18, %c0_17, %c0_18] : memref<8x8x1024xf32, #tpu.memory_space<vmem>>, vector<1x8x1024xf32>
    %20 = vector.shape_cast %19 : vector<1x8x1024xf32> to vector<8x1024xf32>
    %21 = vector.extract_strided_slice %20 {offsets = [0, 512], sizes = [8, 512], strides = [1, 1]} : vector<8x1024xf32> to vector<8x512xf32>
    %cst_19 = arith.constant dense<0.000000e+00> : vector<8x512xf32>
    %22 = tpu.matmul %10, %9, %cst_19 {dimension_numbers = #tpu.dot_dimension_numbers<[1], [0], [0], [1], [0, 0, 1, 1], [], []>} : vector<8x128xf32>, vector<128x512xf32>, vector<8x512xf32> -> vector<8x512xf32>
    %23 = arith.addf %21, %22 : vector<8x512xf32>
    %24 = vector.extract_strided_slice %17 {offsets = [0, 0], sizes = [8, 128], strides = [1, 1]} : vector<8x512xf32> to vector<8x128xf32>
    %25 = arith.negf %24 : vector<8x128xf32>
    %26 = math.exp %25 : vector<8x128xf32>
    %cst_20 = arith.constant 1.000000e+00 : f32
    %27 = vector.broadcast %cst_20 : f32 to vector<8x128xf32>
    %28 = arith.addf %27, %26 : vector<8x128xf32>
    %29 = arith.divf %27, %28 : vector<8x128xf32>
    %30 = vector.extract_strided_slice %17 {offsets = [0, 128], sizes = [8, 128], strides = [1, 1]} : vector<8x512xf32> to vector<8x128xf32>
    %31 = arith.negf %30 : vector<8x128xf32>
    %32 = math.exp %31 : vector<8x128xf32>
    %cst_21 = arith.constant 1.000000e+00 : f32
    %33 = vector.broadcast %cst_21 : f32 to vector<8x128xf32>
    %34 = arith.addf %33, %32 : vector<8x128xf32>
    %35 = arith.divf %33, %34 : vector<8x128xf32>
    %36 = vector.extract_strided_slice %17 {offsets = [0, 256], sizes = [8, 128], strides = [1, 1]} : vector<8x512xf32> to vector<8x128xf32>
    %37 = math.tanh %36 : vector<8x128xf32>
    %38 = vector.extract_strided_slice %17 {offsets = [0, 384], sizes = [8, 128], strides = [1, 1]} : vector<8x512xf32> to vector<8x128xf32>
    %39 = arith.negf %38 : vector<8x128xf32>
    %40 = math.exp %39 : vector<8x128xf32>
    %cst_22 = arith.constant 1.000000e+00 : f32
    %41 = vector.broadcast %cst_22 : f32 to vector<8x128xf32>
    %42 = arith.addf %41, %40 : vector<8x128xf32>
    %43 = arith.divf %41, %42 : vector<8x128xf32>
    %44 = arith.mulf %35, %10 : vector<8x128xf32>
    %45 = arith.mulf %29, %37 : vector<8x128xf32>
    %46 = arith.addf %44, %45 : vector<8x128xf32>
    %47 = math.tanh %46 : vector<8x128xf32>
    %48 = arith.mulf %43, %47 : vector<8x128xf32>
    %49 = vector.extract_strided_slice %23 {offsets = [0, 0], sizes = [8, 128], strides = [1, 1]} : vector<8x512xf32> to vector<8x128xf32>
    %50 = arith.negf %49 : vector<8x128xf32>
    %51 = math.exp %50 : vector<8x128xf32>
    %cst_23 = arith.constant 1.000000e+00 : f32
    %52 = vector.broadcast %cst_23 : f32 to vector<8x128xf32>
    %53 = arith.addf %52, %51 : vector<8x128xf32>
    %54 = arith.divf %52, %53 : vector<8x128xf32>
    %55 = vector.extract_strided_slice %23 {offsets = [0, 128], sizes = [8, 128], strides = [1, 1]} : vector<8x512xf32> to vector<8x128xf32>
    %56 = arith.negf %55 : vector<8x128xf32>
    %57 = math.exp %56 : vector<8x128xf32>
    %cst_24 = arith.constant 1.000000e+00 : f32
    %58 = vector.broadcast %cst_24 : f32 to vector<8x128xf32>
    %59 = arith.addf %58, %57 : vector<8x128xf32>
    %60 = arith.divf %58, %59 : vector<8x128xf32>
    %61 = vector.extract_strided_slice %23 {offsets = [0, 256], sizes = [8, 128], strides = [1, 1]} : vector<8x512xf32> to vector<8x128xf32>
    %62 = math.tanh %61 : vector<8x128xf32>
    %63 = vector.extract_strided_slice %23 {offsets = [0, 384], sizes = [8, 128], strides = [1, 1]} : vector<8x512xf32> to vector<8x128xf32>
    %64 = arith.negf %63 : vector<8x128xf32>
    %65 = math.exp %64 : vector<8x128xf32>
    %cst_25 = arith.constant 1.000000e+00 : f32
    %66 = vector.broadcast %cst_25 : f32 to vector<8x128xf32>
    %67 = arith.addf %66, %65 : vector<8x128xf32>
    %68 = arith.divf %66, %67 : vector<8x128xf32>
    %69 = arith.mulf %60, %10 : vector<8x128xf32>
    %70 = arith.mulf %54, %62 : vector<8x128xf32>
    %71 = arith.addf %69, %70 : vector<8x128xf32>
    %72 = math.tanh %71 : vector<8x128xf32>
    %73 = arith.mulf %68, %72 : vector<8x128xf32>
    %74 = arith.index_cast %c0_i32 : i32 to index
    %c0_26 = arith.constant 0 : index
    %c0_27 = arith.constant 0 : index
    %75 = vector.load %arg11[%74, %c0_26, %c0_27] : memref<8x8x128xf32, #tpu.memory_space<vmem>>, vector<1x8x128xf32>
    %76 = vector.shape_cast %75 : vector<1x8x128xf32> to vector<8x128xf32>
    %77 = vector.shape_cast %48 : vector<8x128xf32> to vector<1x8x128xf32>
    tpu.vector_store %arg11[%74, %c0_26, %c0_27], %77 {strides = array<i32>} : memref<8x8x128xf32, #tpu.memory_space<vmem>>, vector<1x8x128xf32>,
    %78 = arith.index_cast %11 : i32 to index
    %c0_28 = arith.constant 0 : index
    %c0_29 = arith.constant 0 : index
    %79 = vector.load %arg12[%78, %c0_28, %c0_29] : memref<8x8x128xf32, #tpu.memory_space<vmem>>, vector<1x8x128xf32>
    %80 = vector.shape_cast %79 : vector<1x8x128xf32> to vector<8x128xf32>
    %81 = vector.shape_cast %73 : vector<8x128xf32> to vector<1x8x128xf32>
    tpu.vector_store %arg12[%78, %c0_28, %c0_29], %81 {strides = array<i32>} : memref<8x8x128xf32, #tpu.memory_space<vmem>>, vector<1x8x128xf32>,
    %c1_i32 = arith.constant 1 : i32
    %c7_i32_30 = arith.constant 7 : i32
    %82 = arith.subi %c7_i32_30, %c1_i32 : i32
    %83 = arith.index_cast %c1_i32 : i32 to index
    %c0_31 = arith.constant 0 : index
    %c0_32 = arith.constant 0 : index
    %84 = vector.load %arg10[%83, %c0_31, %c0_32] : memref<8x8x1024xf32, #tpu.memory_space<vmem>>, vector<1x8x1024xf32>
    %85 = vector.shape_cast %84 : vector<1x8x1024xf32> to vector<8x1024xf32>
    %86 = vector.extract_strided_slice %85 {offsets = [0, 0], sizes = [8, 512], strides = [1, 1]} : vector<8x1024xf32> to vector<8x512xf32>
    %cst_33 = arith.constant dense<0.000000e+00> : vector<8x512xf32>
    %87 = tpu.matmul %48, %8, %cst_33 {dimension_numbers = #tpu.dot_dimension_numbers<[1], [0], [0], [1], [0, 0, 1, 1], [], []>} : vector<8x128xf32>, vector<128x512xf32>, vector<8x512xf32> -> vector<8x512xf32>
    %88 = arith.addf %86, %87 : vector<8x512xf32>
    %89 = arith.index_cast %82 : i32 to index
    %c0_34 = arith.constant 0 : index
    %c0_35 = arith.constant 0 : index
    %90 = vector.load %arg10[%89, %c0_34, %c0_35] : memref<8x8x1024xf32, #tpu.memory_space<vmem>>, vector<1x8x1024xf32>
    %91 = vector.shape_cast %90 : vector<1x8x1024xf32> to vector<8x1024xf32>
    %92 = vector.extract_strided_slice %91 {offsets = [0, 512], sizes = [8, 512], strides = [1, 1]} : vector<8x1024xf32> to vector<8x512xf32>
    %cst_36 = arith.constant dense<0.000000e+00> : vector<8x512xf32>
    %93 = tpu.matmul %73, %9, %cst_36 {dimension_numbers = #tpu.dot_dimension_numbers<[1], [0], [0], [1], [0, 0, 1, 1], [], []>} : vector<8x128xf32>, vector<128x512xf32>, vector<8x512xf32> -> vector<8x512xf32>
    %94 = arith.addf %92, %93 : vector<8x512xf32>
    %95 = vector.extract_strided_slice %88 {offsets = [0, 0], sizes = [8, 128], strides = [1, 1]} : vector<8x512xf32> to vector<8x128xf32>
    %96 = arith.negf %95 : vector<8x128xf32>
    %97 = math.exp %96 : vector<8x128xf32>
    %cst_37 = arith.constant 1.000000e+00 : f32
    %98 = vector.broadcast %cst_37 : f32 to vector<8x128xf32>
    %99 = arith.addf %98, %97 : vector<8x128xf32>
    %100 = arith.divf %98, %99 : vector<8x128xf32>
    %101 = vector.extract_strided_slice %88 {offsets = [0, 128], sizes = [8, 128], strides = [1, 1]} : vector<8x512xf32> to vector<8x128xf32>
    %102 = arith.negf %101 : vector<8x128xf32>
    %103 = math.exp %102 : vector<8x128xf32>
    %cst_38 = arith.constant 1.000000e+00 : f32
    %104 = vector.broadcast %cst_38 : f32 to vector<8x128xf32>
    %105 = arith.addf %104, %103 : vector<8x128xf32>
    %106 = arith.divf %104, %105 : vector<8x128xf32>
    %107 = vector.extract_strided_slice %88 {offsets = [0, 256], sizes = [8, 128], strides = [1, 1]} : vector<8x512xf32> to vector<8x128xf32>
    %108 = math.tanh %107 : vector<8x128xf32>
    %109 = vector.extract_strided_slice %88 {offsets = [0, 384], sizes = [8, 128], strides = [1, 1]} : vector<8x512xf32> to vector<8x128xf32>
    %110 = arith.negf %109 : vector<8x128xf32>
    %111 = math.exp %110 : vector<8x128xf32>
    %cst_39 = arith.constant 1.000000e+00 : f32
    %112 = vector.broadcast %cst_39 : f32 to vector<8x128xf32>
    %113 = arith.addf %112, %111 : vector<8x128xf32>
    %114 = arith.divf %112, %113 : vector<8x128xf32>
    %115 = arith.mulf %106, %46 : vector<8x128xf32>
    %116 = arith.mulf %100, %108 : vector<8x128xf32>
    %117 = arith.addf %115, %116 : vector<8x128xf32>
    %118 = math.tanh %117 : vector<8x128xf32>
    %119 = arith.mulf %114, %118 : vector<8x128xf32>
    %120 = vector.extract_strided_slice %94 {offsets = [0, 0], sizes = [8, 128], strides = [1, 1]} : vector<8x512xf32> to vector<8x128xf32>
    %121 = arith.negf %120 : vector<8x128xf32>
    %122 = math.exp %121 : vector<8x128xf32>
    %cst_40 = arith.constant 1.000000e+00 : f32
    %123 = vector.broadcast %cst_40 : f32 to vector<8x128xf32>
    %124 = arith.addf %123, %122 : vector<8x128xf32>
    %125 = arith.divf %123, %124 : vector<8x128xf32>
    %126 = vector.extract_strided_slice %94 {offsets = [0, 128], sizes = [8, 128], strides = [1, 1]} : vector<8x512xf32> to vector<8x128xf32>
    %127 = arith.negf %126 : vector<8x128xf32>
    %128 = math.exp %127 : vector<8x128xf32>
    %cst_41 = arith.constant 1.000000e+00 : f32
    %129 = vector.broadcast %cst_41 : f32 to vector<8x128xf32>
    %130 = arith.addf %129, %128 : vector<8x128xf32>
    %131 = arith.divf %129, %130 : vector<8x128xf32>
    %132 = vector.extract_strided_slice %94 {offsets = [0, 256], sizes = [8, 128], strides = [1, 1]} : vector<8x512xf32> to vector<8x128xf32>
    %133 = math.tanh %132 : vector<8x128xf32>
    %134 = vector.extract_strided_slice %94 {offsets = [0, 384], sizes = [8, 128], strides = [1, 1]} : vector<8x512xf32> to vector<8x128xf32>
    %135 = arith.negf %134 : vector<8x128xf32>
    %136 = math.exp %135 : vector<8x128xf32>
    %cst_42 = arith.constant 1.000000e+00 : f32
    %137 = vector.broadcast %cst_42 : f32 to vector<8x128xf32>
    %138 = arith.addf %137, %136 : vector<8x128xf32>
    %139 = arith.divf %137, %138 : vector<8x128xf32>
    %140 = arith.mulf %131, %71 : vector<8x128xf32>
    %141 = arith.mulf %125, %133 : vector<8x128xf32>
    %142 = arith.addf %140, %141 : vector<8x128xf32>
    %143 = math.tanh %142 : vector<8x128xf32>
    %144 = arith.mulf %139, %143 : vector<8x128xf32>
    %145 = arith.index_cast %c1_i32 : i32 to index
    %c0_43 = arith.constant 0 : index
    %c0_44 = arith.constant 0 : index
    %146 = vector.load %arg11[%145, %c0_43, %c0_44] : memref<8x8x128xf32, #tpu.memory_space<vmem>>, vector<1x8x128xf32>
    %147 = vector.shape_cast %146 : vector<1x8x128xf32> to vector<8x128xf32>
    %148 = vector.shape_cast %119 : vector<8x128xf32> to vector<1x8x128xf32>
    tpu.vector_store %arg11[%145, %c0_43, %c0_44], %148 {strides = array<i32>} : memref<8x8x128xf32, #tpu.memory_space<vmem>>, vector<1x8x128xf32>,
    %149 = arith.index_cast %82 : i32 to index
    %c0_45 = arith.constant 0 : index
    %c0_46 = arith.constant 0 : index
    %150 = vector.load %arg12[%149, %c0_45, %c0_46] : memref<8x8x128xf32, #tpu.memory_space<vmem>>, vector<1x8x128xf32>
    %151 = vector.shape_cast %150 : vector<1x8x128xf32> to vector<8x128xf32>
    %152 = vector.shape_cast %144 : vector<8x128xf32> to vector<1x8x128xf32>
    tpu.vector_store %arg12[%149, %c0_45, %c0_46], %152 {strides = array<i32>} : memref<8x8x128xf32, #tpu.memory_space<vmem>>, vector<1x8x128xf32>,
    %c2_i32 = arith.constant 2 : i32
    %c7_i32_47 = arith.constant 7 : i32
    %153 = arith.subi %c7_i32_47, %c2_i32 : i32
    %154 = arith.index_cast %c2_i32 : i32 to index
    %c0_48 = arith.constant 0 : index
    %c0_49 = arith.constant 0 : index
    %155 = vector.load %arg10[%154, %c0_48, %c0_49] : memref<8x8x1024xf32, #tpu.memory_space<vmem>>, vector<1x8x1024xf32>
    %156 = vector.shape_cast %155 : vector<1x8x1024xf32> to vector<8x1024xf32>
    %157 = vector.extract_strided_slice %156 {offsets = [0, 0], sizes = [8, 512], strides = [1, 1]} : vector<8x1024xf32> to vector<8x512xf32>
    %cst_50 = arith.constant dense<0.000000e+00> : vector<8x512xf32>
    %158 = tpu.matmul %119, %8, %cst_50 {dimension_numbers = #tpu.dot_dimension_numbers<[1], [0], [0], [1], [0, 0, 1, 1], [], []>} : vector<8x128xf32>, vector<128x512xf32>, vector<8x512xf32> -> vector<8x512xf32>
    %159 = arith.addf %157, %158 : vector<8x512xf32>
    %160 = arith.index_cast %153 : i32 to index
    %c0_51 = arith.constant 0 : index
    %c0_52 = arith.constant 0 : index
    %161 = vector.load %arg10[%160, %c0_51, %c0_52] : memref<8x8x1024xf32, #tpu.memory_space<vmem>>, vector<1x8x1024xf32>
    %162 = vector.shape_cast %161 : vector<1x8x1024xf32> to vector<8x1024xf32>
    %163 = vector.extract_strided_slice %162 {offsets = [0, 512], sizes = [8, 512], strides = [1, 1]} : vector<8x1024xf32> to vector<8x512xf32>
    %cst_53 = arith.constant dense<0.000000e+00> : vector<8x512xf32>
    %164 = tpu.matmul %144, %9, %cst_53 {dimension_numbers = #tpu.dot_dimension_numbers<[1], [0], [0], [1], [0, 0, 1, 1], [], []>} : vector<8x128xf32>, vector<128x512xf32>, vector<8x512xf32> -> vector<8x512xf32>
    %165 = arith.addf %163, %164 : vector<8x512xf32>
    %166 = vector.extract_strided_slice %159 {offsets = [0, 0], sizes = [8, 128], strides = [1, 1]} : vector<8x512xf32> to vector<8x128xf32>
    %167 = arith.negf %166 : vector<8x128xf32>
    %168 = math.exp %167 : vector<8x128xf32>
    %cst_54 = arith.constant 1.000000e+00 : f32
    %169 = vector.broadcast %cst_54 : f32 to vector<8x128xf32>
    %170 = arith.addf %169, %168 : vector<8x128xf32>
    %171 = arith.divf %169, %170 : vector<8x128xf32>
    %172 = vector.extract_strided_slice %159 {offsets = [0, 128], sizes = [8, 128], strides = [1, 1]} : vector<8x512xf32> to vector<8x128xf32>
    %173 = arith.negf %172 : vector<8x128xf32>
    %174 = math.exp %173 : vector<8x128xf32>
    %cst_55 = arith.constant 1.000000e+00 : f32
    %175 = vector.broadcast %cst_55 : f32 to vector<8x128xf32>
    %176 = arith.addf %175, %174 : vector<8x128xf32>
    %177 = arith.divf %175, %176 : vector<8x128xf32>
    %178 = vector.extract_strided_slice %159 {offsets = [0, 256], sizes = [8, 128], strides = [1, 1]} : vector<8x512xf32> to vector<8x128xf32>
    %179 = math.tanh %178 : vector<8x128xf32>
    %180 = vector.extract_strided_slice %159 {offsets = [0, 384], sizes = [8, 128], strides = [1, 1]} : vector<8x512xf32> to vector<8x128xf32>
    %181 = arith.negf %180 : vector<8x128xf32>
    %182 = math.exp %181 : vector<8x128xf32>
    %cst_56 = arith.constant 1.000000e+00 : f32
    %183 = vector.broadcast %cst_56 : f32 to vector<8x128xf32>
    %184 = arith.addf %183, %182 : vector<8x128xf32>
    %185 = arith.divf %183, %184 : vector<8x128xf32>
    %186 = arith.mulf %177, %117 : vector<8x128xf32>
    %187 = arith.mulf %171, %179 : vector<8x128xf32>
    %188 = arith.addf %186, %187 : vector<8x128xf32>
    %189 = math.tanh %188 : vector<8x128xf32>
    %190 = arith.mulf %185, %189 : vector<8x128xf32>
    %191 = vector.extract_strided_slice %165 {offsets = [0, 0], sizes = [8, 128], strides = [1, 1]} : vector<8x512xf32> to vector<8x128xf32>
    %192 = arith.negf %191 : vector<8x128xf32>
    %193 = math.exp %192 : vector<8x128xf32>
    %cst_57 = arith.constant 1.000000e+00 : f32
    %194 = vector.broadcast %cst_57 : f32 to vector<8x128xf32>
    %195 = arith.addf %194, %193 : vector<8x128xf32>
    %196 = arith.divf %194, %195 : vector<8x128xf32>
    %197 = vector.extract_strided_slice %165 {offsets = [0, 128], sizes = [8, 128], strides = [1, 1]} : vector<8x512xf32> to vector<8x128xf32>
    %198 = arith.negf %197 : vector<8x128xf32>
    %199 = math.exp %198 : vector<8x128xf32>
    %cst_58 = arith.constant 1.000000e+00 : f32
    %200 = vector.broadcast %cst_58 : f32 to vector<8x128xf32>
    %201 = arith.addf %200, %199 : vector<8x128xf32>
    %202 = arith.divf %200, %201 : vector<8x128xf32>
    %203 = vector.extract_strided_slice %165 {offsets = [0, 256], sizes = [8, 128], strides = [1, 1]} : vector<8x512xf32> to vector<8x128xf32>
    %204 = math.tanh %203 : vector<8x128xf32>
    %205 = vector.extract_strided_slice %165 {offsets = [0, 384], sizes = [8, 128], strides = [1, 1]} : vector<8x512xf32> to vector<8x128xf32>
    %206 = arith.negf %205 : vector<8x128xf32>
    %207 = math.exp %206 : vector<8x128xf32>
    %cst_59 = arith.constant 1.000000e+00 : f32
    %208 = vector.broadcast %cst_59 : f32 to vector<8x128xf32>
    %209 = arith.addf %208, %207 : vector<8x128xf32>
    %210 = arith.divf %208, %209 : vector<8x128xf32>
    %211 = arith.mulf %202, %142 : vector<8x128xf32>
    %212 = arith.mulf %196, %204 : vector<8x128xf32>
    %213 = arith.addf %211, %212 : vector<8x128xf32>
    %214 = math.tanh %213 : vector<8x128xf32>
    %215 = arith.mulf %210, %214 : vector<8x128xf32>
    %216 = arith.index_cast %c2_i32 : i32 to index
    %c0_60 = arith.constant 0 : index
    %c0_61 = arith.constant 0 : index
    %217 = vector.load %arg11[%216, %c0_60, %c0_61] : memref<8x8x128xf32, #tpu.memory_space<vmem>>, vector<1x8x128xf32>
    %218 = vector.shape_cast %217 : vector<1x8x128xf32> to vector<8x128xf32>
    %219 = vector.shape_cast %190 : vector<8x128xf32> to vector<1x8x128xf32>
    tpu.vector_store %arg11[%216, %c0_60, %c0_61], %219 {strides = array<i32>} : memref<8x8x128xf32, #tpu.memory_space<vmem>>, vector<1x8x128xf32>,
    %220 = arith.index_cast %153 : i32 to index
    %c0_62 = arith.constant 0 : index
    %c0_63 = arith.constant 0 : index
    %221 = vector.load %arg12[%220, %c0_62, %c0_63] : memref<8x8x128xf32, #tpu.memory_space<vmem>>, vector<1x8x128xf32>
    %222 = vector.shape_cast %221 : vector<1x8x128xf32> to vector<8x128xf32>
    %223 = vector.shape_cast %215 : vector<8x128xf32> to vector<1x8x128xf32>
    tpu.vector_store %arg12[%220, %c0_62, %c0_63], %223 {strides = array<i32>} : memref<8x8x128xf32, #tpu.memory_space<vmem>>, vector<1x8x128xf32>,
    %c3_i32 = arith.constant 3 : i32
    %c7_i32_64 = arith.constant 7 : i32
    %224 = arith.subi %c7_i32_64, %c3_i32 : i32
    %225 = arith.index_cast %c3_i32 : i32 to index
    %c0_65 = arith.constant 0 : index
    %c0_66 = arith.constant 0 : index
    %226 = vector.load %arg10[%225, %c0_65, %c0_66] : memref<8x8x1024xf32, #tpu.memory_space<vmem>>, vector<1x8x1024xf32>
    %227 = vector.shape_cast %226 : vector<1x8x1024xf32> to vector<8x1024xf32>
    %228 = vector.extract_strided_slice %227 {offsets = [0, 0], sizes = [8, 512], strides = [1, 1]} : vector<8x1024xf32> to vector<8x512xf32>
    %cst_67 = arith.constant dense<0.000000e+00> : vector<8x512xf32>
    %229 = tpu.matmul %190, %8, %cst_67 {dimension_numbers = #tpu.dot_dimension_numbers<[1], [0], [0], [1], [0, 0, 1, 1], [], []>} : vector<8x128xf32>, vector<128x512xf32>, vector<8x512xf32> -> vector<8x512xf32>
    %230 = arith.addf %228, %229 : vector<8x512xf32>
    %231 = arith.index_cast %224 : i32 to index
    %c0_68 = arith.constant 0 : index
    %c0_69 = arith.constant 0 : index
    %232 = vector.load %arg10[%231, %c0_68, %c0_69] : memref<8x8x1024xf32, #tpu.memory_space<vmem>>, vector<1x8x1024xf32>
    %233 = vector.shape_cast %232 : vector<1x8x1024xf32> to vector<8x1024xf32>
    %234 = vector.extract_strided_slice %233 {offsets = [0, 512], sizes = [8, 512], strides = [1, 1]} : vector<8x1024xf32> to vector<8x512xf32>
    %cst_70 = arith.constant dense<0.000000e+00> : vector<8x512xf32>
    %235 = tpu.matmul %215, %9, %cst_70 {dimension_numbers = #tpu.dot_dimension_numbers<[1], [0], [0], [1], [0, 0, 1, 1], [], []>} : vector<8x128xf32>, vector<128x512xf32>, vector<8x512xf32> -> vector<8x512xf32>
    %236 = arith.addf %234, %235 : vector<8x512xf32>
    %237 = vector.extract_strided_slice %230 {offsets = [0, 0], sizes = [8, 128], strides = [1, 1]} : vector<8x512xf32> to vector<8x128xf32>
    %238 = arith.negf %237 : vector<8x128xf32>
    %239 = math.exp %238 : vector<8x128xf32>
    %cst_71 = arith.constant 1.000000e+00 : f32
    %240 = vector.broadcast %cst_71 : f32 to vector<8x128xf32>
    %241 = arith.addf %240, %239 : vector<8x128xf32>
    %242 = arith.divf %240, %241 : vector<8x128xf32>
    %243 = vector.extract_strided_slice %230 {offsets = [0, 128], sizes = [8, 128], strides = [1, 1]} : vector<8x512xf32> to vector<8x128xf32>
    %244 = arith.negf %243 : vector<8x128xf32>
    %245 = math.exp %244 : vector<8x128xf32>
    %cst_72 = arith.constant 1.000000e+00 : f32
    %246 = vector.broadcast %cst_72 : f32 to vector<8x128xf32>
    %247 = arith.addf %246, %245 : vector<8x128xf32>
    %248 = arith.divf %246, %247 : vector<8x128xf32>
    %249 = vector.extract_strided_slice %230 {offsets = [0, 256], sizes = [8, 128], strides = [1, 1]} : vector<8x512xf32> to vector<8x128xf32>
    %250 = math.tanh %249 : vector<8x128xf32>
    %251 = vector.extract_strided_slice %230 {offsets = [0, 384], sizes = [8, 128], strides = [1, 1]} : vector<8x512xf32> to vector<8x128xf32>
    %252 = arith.negf %251 : vector<8x128xf32>
    %253 = math.exp %252 : vector<8x128xf32>
    %cst_73 = arith.constant 1.000000e+00 : f32
    %254 = vector.broadcast %cst_73 : f32 to vector<8x128xf32>
    %255 = arith.addf %254, %253 : vector<8x128xf32>
    %256 = arith.divf %254, %255 : vector<8x128xf32>
    %257 = arith.mulf %248, %188 : vector<8x128xf32>
    %258 = arith.mulf %242, %250 : vector<8x128xf32>
    %259 = arith.addf %257, %258 : vector<8x128xf32>
    %260 = math.tanh %259 : vector<8x128xf32>
    %261 = arith.mulf %256, %260 : vector<8x128xf32>
    %262 = vector.extract_strided_slice %236 {offsets = [0, 0], sizes = [8, 128], strides = [1, 1]} : vector<8x512xf32> to vector<8x128xf32>
    %263 = arith.negf %262 : vector<8x128xf32>
    %264 = math.exp %263 : vector<8x128xf32>
    %cst_74 = arith.constant 1.000000e+00 : f32
    %265 = vector.broadcast %cst_74 : f32 to vector<8x128xf32>
    %266 = arith.addf %265, %264 : vector<8x128xf32>
    %267 = arith.divf %265, %266 : vector<8x128xf32>
    %268 = vector.extract_strided_slice %236 {offsets = [0, 128], sizes = [8, 128], strides = [1, 1]} : vector<8x512xf32> to vector<8x128xf32>
    %269 = arith.negf %268 : vector<8x128xf32>
    %270 = math.exp %269 : vector<8x128xf32>
    %cst_75 = arith.constant 1.000000e+00 : f32
    %271 = vector.broadcast %cst_75 : f32 to vector<8x128xf32>
    %272 = arith.addf %271, %270 : vector<8x128xf32>
    %273 = arith.divf %271, %272 : vector<8x128xf32>
    %274 = vector.extract_strided_slice %236 {offsets = [0, 256], sizes = [8, 128], strides = [1, 1]} : vector<8x512xf32> to vector<8x128xf32>
    %275 = math.tanh %274 : vector<8x128xf32>
    %276 = vector.extract_strided_slice %236 {offsets = [0, 384], sizes = [8, 128], strides = [1, 1]} : vector<8x512xf32> to vector<8x128xf32>
    %277 = arith.negf %276 : vector<8x128xf32>
    %278 = math.exp %277 : vector<8x128xf32>
    %cst_76 = arith.constant 1.000000e+00 : f32
    %279 = vector.broadcast %cst_76 : f32 to vector<8x128xf32>
    %280 = arith.addf %279, %278 : vector<8x128xf32>
    %281 = arith.divf %279, %280 : vector<8x128xf32>
    %282 = arith.mulf %273, %213 : vector<8x128xf32>
    %283 = arith.mulf %267, %275 : vector<8x128xf32>
    %284 = arith.addf %282, %283 : vector<8x128xf32>
    %285 = math.tanh %284 : vector<8x128xf32>
    %286 = arith.mulf %281, %285 : vector<8x128xf32>
    %287 = arith.index_cast %c3_i32 : i32 to index
    %c0_77 = arith.constant 0 : index
    %c0_78 = arith.constant 0 : index
    %288 = vector.load %arg11[%287, %c0_77, %c0_78] : memref<8x8x128xf32, #tpu.memory_space<vmem>>, vector<1x8x128xf32>
    %289 = vector.shape_cast %288 : vector<1x8x128xf32> to vector<8x128xf32>
    %290 = vector.shape_cast %261 : vector<8x128xf32> to vector<1x8x128xf32>
    tpu.vector_store %arg11[%287, %c0_77, %c0_78], %290 {strides = array<i32>} : memref<8x8x128xf32, #tpu.memory_space<vmem>>, vector<1x8x128xf32>,
    %291 = arith.index_cast %224 : i32 to index
    %c0_79 = arith.constant 0 : index
    %c0_80 = arith.constant 0 : index
    %292 = vector.load %arg12[%291, %c0_79, %c0_80] : memref<8x8x128xf32, #tpu.memory_space<vmem>>, vector<1x8x128xf32>
    %293 = vector.shape_cast %292 : vector<1x8x128xf32> to vector<8x128xf32>
    %294 = vector.shape_cast %286 : vector<8x128xf32> to vector<1x8x128xf32>
    tpu.vector_store %arg12[%291, %c0_79, %c0_80], %294 {strides = array<i32>} : memref<8x8x128xf32, #tpu.memory_space<vmem>>, vector<1x8x128xf32>,
    %c4_i32 = arith.constant 4 : i32
    %c7_i32_81 = arith.constant 7 : i32
    %295 = arith.subi %c7_i32_81, %c4_i32 : i32
    %296 = arith.index_cast %c4_i32 : i32 to index
    %c0_82 = arith.constant 0 : index
    %c0_83 = arith.constant 0 : index
    %297 = vector.load %arg10[%296, %c0_82, %c0_83] : memref<8x8x1024xf32, #tpu.memory_space<vmem>>, vector<1x8x1024xf32>
    %298 = vector.shape_cast %297 : vector<1x8x1024xf32> to vector<8x1024xf32>
    %299 = vector.extract_strided_slice %298 {offsets = [0, 0], sizes = [8, 512], strides = [1, 1]} : vector<8x1024xf32> to vector<8x512xf32>
    %cst_84 = arith.constant dense<0.000000e+00> : vector<8x512xf32>
    %300 = tpu.matmul %261, %8, %cst_84 {dimension_numbers = #tpu.dot_dimension_numbers<[1], [0], [0], [1], [0, 0, 1, 1], [], []>} : vector<8x128xf32>, vector<128x512xf32>, vector<8x512xf32> -> vector<8x512xf32>
    %301 = arith.addf %299, %300 : vector<8x512xf32>
    %302 = arith.index_cast %295 : i32 to index
    %c0_85 = arith.constant 0 : index
    %c0_86 = arith.constant 0 : index
    %303 = vector.load %arg10[%302, %c0_85, %c0_86] : memref<8x8x1024xf32, #tpu.memory_space<vmem>>, vector<1x8x1024xf32>
    %304 = vector.shape_cast %303 : vector<1x8x1024xf32> to vector<8x1024xf32>
    %305 = vector.extract_strided_slice %304 {offsets = [0, 512], sizes = [8, 512], strides = [1, 1]} : vector<8x1024xf32> to vector<8x512xf32>
    %cst_87 = arith.constant dense<0.000000e+00> : vector<8x512xf32>
    %306 = tpu.matmul %286, %9, %cst_87 {dimension_numbers = #tpu.dot_dimension_numbers<[1], [0], [0], [1], [0, 0, 1, 1], [], []>} : vector<8x128xf32>, vector<128x512xf32>, vector<8x512xf32> -> vector<8x512xf32>
    %307 = arith.addf %305, %306 : vector<8x512xf32>
    %308 = vector.extract_strided_slice %301 {offsets = [0, 0], sizes = [8, 128], strides = [1, 1]} : vector<8x512xf32> to vector<8x128xf32>
    %309 = arith.negf %308 : vector<8x128xf32>
    %310 = math.exp %309 : vector<8x128xf32>
    %cst_88 = arith.constant 1.000000e+00 : f32
    %311 = vector.broadcast %cst_88 : f32 to vector<8x128xf32>
    %312 = arith.addf %311, %310 : vector<8x128xf32>
    %313 = arith.divf %311, %312 : vector<8x128xf32>
    %314 = vector.extract_strided_slice %301 {offsets = [0, 128], sizes = [8, 128], strides = [1, 1]} : vector<8x512xf32> to vector<8x128xf32>
    %315 = arith.negf %314 : vector<8x128xf32>
    %316 = math.exp %315 : vector<8x128xf32>
    %cst_89 = arith.constant 1.000000e+00 : f32
    %317 = vector.broadcast %cst_89 : f32 to vector<8x128xf32>
    %318 = arith.addf %317, %316 : vector<8x128xf32>
    %319 = arith.divf %317, %318 : vector<8x128xf32>
    %320 = vector.extract_strided_slice %301 {offsets = [0, 256], sizes = [8, 128], strides = [1, 1]} : vector<8x512xf32> to vector<8x128xf32>
    %321 = math.tanh %320 : vector<8x128xf32>
    %322 = vector.extract_strided_slice %301 {offsets = [0, 384], sizes = [8, 128], strides = [1, 1]} : vector<8x512xf32> to vector<8x128xf32>
    %323 = arith.negf %322 : vector<8x128xf32>
    %324 = math.exp %323 : vector<8x128xf32>
    %cst_90 = arith.constant 1.000000e+00 : f32
    %325 = vector.broadcast %cst_90 : f32 to vector<8x128xf32>
    %326 = arith.addf %325, %324 : vector<8x128xf32>
    %327 = arith.divf %325, %326 : vector<8x128xf32>
    %328 = arith.mulf %319, %259 : vector<8x128xf32>
    %329 = arith.mulf %313, %321 : vector<8x128xf32>
    %330 = arith.addf %328, %329 : vector<8x128xf32>
    %331 = math.tanh %330 : vector<8x128xf32>
    %332 = arith.mulf %327, %331 : vector<8x128xf32>
    %333 = vector.extract_strided_slice %307 {offsets = [0, 0], sizes = [8, 128], strides = [1, 1]} : vector<8x512xf32> to vector<8x128xf32>
    %334 = arith.negf %333 : vector<8x128xf32>
    %335 = math.exp %334 : vector<8x128xf32>
    %cst_91 = arith.constant 1.000000e+00 : f32
    %336 = vector.broadcast %cst_91 : f32 to vector<8x128xf32>
    %337 = arith.addf %336, %335 : vector<8x128xf32>
    %338 = arith.divf %336, %337 : vector<8x128xf32>
    %339 = vector.extract_strided_slice %307 {offsets = [0, 128], sizes = [8, 128], strides = [1, 1]} : vector<8x512xf32> to vector<8x128xf32>
    %340 = arith.negf %339 : vector<8x128xf32>
    %341 = math.exp %340 : vector<8x128xf32>
    %cst_92 = arith.constant 1.000000e+00 : f32
    %342 = vector.broadcast %cst_92 : f32 to vector<8x128xf32>
    %343 = arith.addf %342, %341 : vector<8x128xf32>
    %344 = arith.divf %342, %343 : vector<8x128xf32>
    %345 = vector.extract_strided_slice %307 {offsets = [0, 256], sizes = [8, 128], strides = [1, 1]} : vector<8x512xf32> to vector<8x128xf32>
    %346 = math.tanh %345 : vector<8x128xf32>
    %347 = vector.extract_strided_slice %307 {offsets = [0, 384], sizes = [8, 128], strides = [1, 1]} : vector<8x512xf32> to vector<8x128xf32>
    %348 = arith.negf %347 : vector<8x128xf32>
    %349 = math.exp %348 : vector<8x128xf32>
    %cst_93 = arith.constant 1.000000e+00 : f32
    %350 = vector.broadcast %cst_93 : f32 to vector<8x128xf32>
    %351 = arith.addf %350, %349 : vector<8x128xf32>
    %352 = arith.divf %350, %351 : vector<8x128xf32>
    %353 = arith.mulf %344, %284 : vector<8x128xf32>
    %354 = arith.mulf %338, %346 : vector<8x128xf32>
    %355 = arith.addf %353, %354 : vector<8x128xf32>
    %356 = math.tanh %355 : vector<8x128xf32>
    %357 = arith.mulf %352, %356 : vector<8x128xf32>
    %358 = arith.index_cast %c4_i32 : i32 to index
    %c0_94 = arith.constant 0 : index
    %c0_95 = arith.constant 0 : index
    %359 = vector.load %arg11[%358, %c0_94, %c0_95] : memref<8x8x128xf32, #tpu.memory_space<vmem>>, vector<1x8x128xf32>
    %360 = vector.shape_cast %359 : vector<1x8x128xf32> to vector<8x128xf32>
    %361 = vector.shape_cast %332 : vector<8x128xf32> to vector<1x8x128xf32>
    tpu.vector_store %arg11[%358, %c0_94, %c0_95], %361 {strides = array<i32>} : memref<8x8x128xf32, #tpu.memory_space<vmem>>, vector<1x8x128xf32>,
    %362 = arith.index_cast %295 : i32 to index
    %c0_96 = arith.constant 0 : index
    %c0_97 = arith.constant 0 : index
    %363 = vector.load %arg12[%362, %c0_96, %c0_97] : memref<8x8x128xf32, #tpu.memory_space<vmem>>, vector<1x8x128xf32>
    %364 = vector.shape_cast %363 : vector<1x8x128xf32> to vector<8x128xf32>
    %365 = vector.shape_cast %357 : vector<8x128xf32> to vector<1x8x128xf32>
    tpu.vector_store %arg12[%362, %c0_96, %c0_97], %365 {strides = array<i32>} : memref<8x8x128xf32, #tpu.memory_space<vmem>>, vector<1x8x128xf32>,
    %c5_i32 = arith.constant 5 : i32
    %c7_i32_98 = arith.constant 7 : i32
    %366 = arith.subi %c7_i32_98, %c5_i32 : i32
    %367 = arith.index_cast %c5_i32 : i32 to index
    %c0_99 = arith.constant 0 : index
    %c0_100 = arith.constant 0 : index
    %368 = vector.load %arg10[%367, %c0_99, %c0_100] : memref<8x8x1024xf32, #tpu.memory_space<vmem>>, vector<1x8x1024xf32>
    %369 = vector.shape_cast %368 : vector<1x8x1024xf32> to vector<8x1024xf32>
    %370 = vector.extract_strided_slice %369 {offsets = [0, 0], sizes = [8, 512], strides = [1, 1]} : vector<8x1024xf32> to vector<8x512xf32>
    %cst_101 = arith.constant dense<0.000000e+00> : vector<8x512xf32>
    %371 = tpu.matmul %332, %8, %cst_101 {dimension_numbers = #tpu.dot_dimension_numbers<[1], [0], [0], [1], [0, 0, 1, 1], [], []>} : vector<8x128xf32>, vector<128x512xf32>, vector<8x512xf32> -> vector<8x512xf32>
    %372 = arith.addf %370, %371 : vector<8x512xf32>
    %373 = arith.index_cast %366 : i32 to index
    %c0_102 = arith.constant 0 : index
    %c0_103 = arith.constant 0 : index
    %374 = vector.load %arg10[%373, %c0_102, %c0_103] : memref<8x8x1024xf32, #tpu.memory_space<vmem>>, vector<1x8x1024xf32>
    %375 = vector.shape_cast %374 : vector<1x8x1024xf32> to vector<8x1024xf32>
    %376 = vector.extract_strided_slice %375 {offsets = [0, 512], sizes = [8, 512], strides = [1, 1]} : vector<8x1024xf32> to vector<8x512xf32>
    %cst_104 = arith.constant dense<0.000000e+00> : vector<8x512xf32>
    %377 = tpu.matmul %357, %9, %cst_104 {dimension_numbers = #tpu.dot_dimension_numbers<[1], [0], [0], [1], [0, 0, 1, 1], [], []>} : vector<8x128xf32>, vector<128x512xf32>, vector<8x512xf32> -> vector<8x512xf32>
    %378 = arith.addf %376, %377 : vector<8x512xf32>
    %379 = vector.extract_strided_slice %372 {offsets = [0, 0], sizes = [8, 128], strides = [1, 1]} : vector<8x512xf32> to vector<8x128xf32>
    %380 = arith.negf %379 : vector<8x128xf32>
    %381 = math.exp %380 : vector<8x128xf32>
    %cst_105 = arith.constant 1.000000e+00 : f32
    %382 = vector.broadcast %cst_105 : f32 to vector<8x128xf32>
    %383 = arith.addf %382, %381 : vector<8x128xf32>
    %384 = arith.divf %382, %383 : vector<8x128xf32>
    %385 = vector.extract_strided_slice %372 {offsets = [0, 128], sizes = [8, 128], strides = [1, 1]} : vector<8x512xf32> to vector<8x128xf32>
    %386 = arith.negf %385 : vector<8x128xf32>
    %387 = math.exp %386 : vector<8x128xf32>
    %cst_106 = arith.constant 1.000000e+00 : f32
    %388 = vector.broadcast %cst_106 : f32 to vector<8x128xf32>
    %389 = arith.addf %388, %387 : vector<8x128xf32>
    %390 = arith.divf %388, %389 : vector<8x128xf32>
    %391 = vector.extract_strided_slice %372 {offsets = [0, 256], sizes = [8, 128], strides = [1, 1]} : vector<8x512xf32> to vector<8x128xf32>
    %392 = math.tanh %391 : vector<8x128xf32>
    %393 = vector.extract_strided_slice %372 {offsets = [0, 384], sizes = [8, 128], strides = [1, 1]} : vector<8x512xf32> to vector<8x128xf32>
    %394 = arith.negf %393 : vector<8x128xf32>
    %395 = math.exp %394 : vector<8x128xf32>
    %cst_107 = arith.constant 1.000000e+00 : f32
    %396 = vector.broadcast %cst_107 : f32 to vector<8x128xf32>
    %397 = arith.addf %396, %395 : vector<8x128xf32>
    %398 = arith.divf %396, %397 : vector<8x128xf32>
    %399 = arith.mulf %390, %330 : vector<8x128xf32>
    %400 = arith.mulf %384, %392 : vector<8x128xf32>
    %401 = arith.addf %399, %400 : vector<8x128xf32>
    %402 = math.tanh %401 : vector<8x128xf32>
    %403 = arith.mulf %398, %402 : vector<8x128xf32>
    %404 = vector.extract_strided_slice %378 {offsets = [0, 0], sizes = [8, 128], strides = [1, 1]} : vector<8x512xf32> to vector<8x128xf32>
    %405 = arith.negf %404 : vector<8x128xf32>
    %406 = math.exp %405 : vector<8x128xf32>
    %cst_108 = arith.constant 1.000000e+00 : f32
    %407 = vector.broadcast %cst_108 : f32 to vector<8x128xf32>
    %408 = arith.addf %407, %406 : vector<8x128xf32>
    %409 = arith.divf %407, %408 : vector<8x128xf32>
    %410 = vector.extract_strided_slice %378 {offsets = [0, 128], sizes = [8, 128], strides = [1, 1]} : vector<8x512xf32> to vector<8x128xf32>
    %411 = arith.negf %410 : vector<8x128xf32>
    %412 = math.exp %411 : vector<8x128xf32>
    %cst_109 = arith.constant 1.000000e+00 : f32
    %413 = vector.broadcast %cst_109 : f32 to vector<8x128xf32>
    %414 = arith.addf %413, %412 : vector<8x128xf32>
    %415 = arith.divf %413, %414 : vector<8x128xf32>
    %416 = vector.extract_strided_slice %378 {offsets = [0, 256], sizes = [8, 128], strides = [1, 1]} : vector<8x512xf32> to vector<8x128xf32>
    %417 = math.tanh %416 : vector<8x128xf32>
    %418 = vector.extract_strided_slice %378 {offsets = [0, 384], sizes = [8, 128], strides = [1, 1]} : vector<8x512xf32> to vector<8x128xf32>
    %419 = arith.negf %418 : vector<8x128xf32>
    %420 = math.exp %419 : vector<8x128xf32>
    %cst_110 = arith.constant 1.000000e+00 : f32
    %421 = vector.broadcast %cst_110 : f32 to vector<8x128xf32>
    %422 = arith.addf %421, %420 : vector<8x128xf32>
    %423 = arith.divf %421, %422 : vector<8x128xf32>
    %424 = arith.mulf %415, %355 : vector<8x128xf32>
    %425 = arith.mulf %409, %417 : vector<8x128xf32>
    %426 = arith.addf %424, %425 : vector<8x128xf32>
    %427 = math.tanh %426 : vector<8x128xf32>
    %428 = arith.mulf %423, %427 : vector<8x128xf32>
    %429 = arith.index_cast %c5_i32 : i32 to index
    %c0_111 = arith.constant 0 : index
    %c0_112 = arith.constant 0 : index
    %430 = vector.load %arg11[%429, %c0_111, %c0_112] : memref<8x8x128xf32, #tpu.memory_space<vmem>>, vector<1x8x128xf32>
    %431 = vector.shape_cast %430 : vector<1x8x128xf32> to vector<8x128xf32>
    %432 = vector.shape_cast %403 : vector<8x128xf32> to vector<1x8x128xf32>
    tpu.vector_store %arg11[%429, %c0_111, %c0_112], %432 {strides = array<i32>} : memref<8x8x128xf32, #tpu.memory_space<vmem>>, vector<1x8x128xf32>,
    %433 = arith.index_cast %366 : i32 to index
    %c0_113 = arith.constant 0 : index
    %c0_114 = arith.constant 0 : index
    %434 = vector.load %arg12[%433, %c0_113, %c0_114] : memref<8x8x128xf32, #tpu.memory_space<vmem>>, vector<1x8x128xf32>
    %435 = vector.shape_cast %434 : vector<1x8x128xf32> to vector<8x128xf32>
    %436 = vector.shape_cast %428 : vector<8x128xf32> to vector<1x8x128xf32>
    tpu.vector_store %arg12[%433, %c0_113, %c0_114], %436 {strides = array<i32>} : memref<8x8x128xf32, #tpu.memory_space<vmem>>, vector<1x8x128xf32>,
    %c6_i32 = arith.constant 6 : i32
    %c7_i32_115 = arith.constant 7 : i32
    %437 = arith.subi %c7_i32_115, %c6_i32 : i32
    %438 = arith.index_cast %c6_i32 : i32 to index
    %c0_116 = arith.constant 0 : index
    %c0_117 = arith.constant 0 : index
    %439 = vector.load %arg10[%438, %c0_116, %c0_117] : memref<8x8x1024xf32, #tpu.memory_space<vmem>>, vector<1x8x1024xf32>
    %440 = vector.shape_cast %439 : vector<1x8x1024xf32> to vector<8x1024xf32>
    %441 = vector.extract_strided_slice %440 {offsets = [0, 0], sizes = [8, 512], strides = [1, 1]} : vector<8x1024xf32> to vector<8x512xf32>
    %cst_118 = arith.constant dense<0.000000e+00> : vector<8x512xf32>
    %442 = tpu.matmul %403, %8, %cst_118 {dimension_numbers = #tpu.dot_dimension_numbers<[1], [0], [0], [1], [0, 0, 1, 1], [], []>} : vector<8x128xf32>, vector<128x512xf32>, vector<8x512xf32> -> vector<8x512xf32>
    %443 = arith.addf %441, %442 : vector<8x512xf32>
    %444 = arith.index_cast %437 : i32 to index
    %c0_119 = arith.constant 0 : index
    %c0_120 = arith.constant 0 : index
    %445 = vector.load %arg10[%444, %c0_119, %c0_120] : memref<8x8x1024xf32, #tpu.memory_space<vmem>>, vector<1x8x1024xf32>
    %446 = vector.shape_cast %445 : vector<1x8x1024xf32> to vector<8x1024xf32>
    %447 = vector.extract_strided_slice %446 {offsets = [0, 512], sizes = [8, 512], strides = [1, 1]} : vector<8x1024xf32> to vector<8x512xf32>
    %cst_121 = arith.constant dense<0.000000e+00> : vector<8x512xf32>
    %448 = tpu.matmul %428, %9, %cst_121 {dimension_numbers = #tpu.dot_dimension_numbers<[1], [0], [0], [1], [0, 0, 1, 1], [], []>} : vector<8x128xf32>, vector<128x512xf32>, vector<8x512xf32> -> vector<8x512xf32>
    %449 = arith.addf %447, %448 : vector<8x512xf32>
    %450 = vector.extract_strided_slice %443 {offsets = [0, 0], sizes = [8, 128], strides = [1, 1]} : vector<8x512xf32> to vector<8x128xf32>
    %451 = arith.negf %450 : vector<8x128xf32>
    %452 = math.exp %451 : vector<8x128xf32>
    %cst_122 = arith.constant 1.000000e+00 : f32
    %453 = vector.broadcast %cst_122 : f32 to vector<8x128xf32>
    %454 = arith.addf %453, %452 : vector<8x128xf32>
    %455 = arith.divf %453, %454 : vector<8x128xf32>
    %456 = vector.extract_strided_slice %443 {offsets = [0, 128], sizes = [8, 128], strides = [1, 1]} : vector<8x512xf32> to vector<8x128xf32>
    %457 = arith.negf %456 : vector<8x128xf32>
    %458 = math.exp %457 : vector<8x128xf32>
    %cst_123 = arith.constant 1.000000e+00 : f32
    %459 = vector.broadcast %cst_123 : f32 to vector<8x128xf32>
    %460 = arith.addf %459, %458 : vector<8x128xf32>
    %461 = arith.divf %459, %460 : vector<8x128xf32>
    %462 = vector.extract_strided_slice %443 {offsets = [0, 256], sizes = [8, 128], strides = [1, 1]} : vector<8x512xf32> to vector<8x128xf32>
    %463 = math.tanh %462 : vector<8x128xf32>
    %464 = vector.extract_strided_slice %443 {offsets = [0, 384], sizes = [8, 128], strides = [1, 1]} : vector<8x512xf32> to vector<8x128xf32>
    %465 = arith.negf %464 : vector<8x128xf32>
    %466 = math.exp %465 : vector<8x128xf32>
    %cst_124 = arith.constant 1.000000e+00 : f32
    %467 = vector.broadcast %cst_124 : f32 to vector<8x128xf32>
    %468 = arith.addf %467, %466 : vector<8x128xf32>
    %469 = arith.divf %467, %468 : vector<8x128xf32>
    %470 = arith.mulf %461, %401 : vector<8x128xf32>
    %471 = arith.mulf %455, %463 : vector<8x128xf32>
    %472 = arith.addf %470, %471 : vector<8x128xf32>
    %473 = math.tanh %472 : vector<8x128xf32>
    %474 = arith.mulf %469, %473 : vector<8x128xf32>
    %475 = vector.extract_strided_slice %449 {offsets = [0, 0], sizes = [8, 128], strides = [1, 1]} : vector<8x512xf32> to vector<8x128xf32>
    %476 = arith.negf %475 : vector<8x128xf32>
    %477 = math.exp %476 : vector<8x128xf32>
    %cst_125 = arith.constant 1.000000e+00 : f32
    %478 = vector.broadcast %cst_125 : f32 to vector<8x128xf32>
    %479 = arith.addf %478, %477 : vector<8x128xf32>
    %480 = arith.divf %478, %479 : vector<8x128xf32>
    %481 = vector.extract_strided_slice %449 {offsets = [0, 128], sizes = [8, 128], strides = [1, 1]} : vector<8x512xf32> to vector<8x128xf32>
    %482 = arith.negf %481 : vector<8x128xf32>
    %483 = math.exp %482 : vector<8x128xf32>
    %cst_126 = arith.constant 1.000000e+00 : f32
    %484 = vector.broadcast %cst_126 : f32 to vector<8x128xf32>
    %485 = arith.addf %484, %483 : vector<8x128xf32>
    %486 = arith.divf %484, %485 : vector<8x128xf32>
    %487 = vector.extract_strided_slice %449 {offsets = [0, 256], sizes = [8, 128], strides = [1, 1]} : vector<8x512xf32> to vector<8x128xf32>
    %488 = math.tanh %487 : vector<8x128xf32>
    %489 = vector.extract_strided_slice %449 {offsets = [0, 384], sizes = [8, 128], strides = [1, 1]} : vector<8x512xf32> to vector<8x128xf32>
    %490 = arith.negf %489 : vector<8x128xf32>
    %491 = math.exp %490 : vector<8x128xf32>
    %cst_127 = arith.constant 1.000000e+00 : f32
    %492 = vector.broadcast %cst_127 : f32 to vector<8x128xf32>
    %493 = arith.addf %492, %491 : vector<8x128xf32>
    %494 = arith.divf %492, %493 : vector<8x128xf32>
    %495 = arith.mulf %486, %426 : vector<8x128xf32>
    %496 = arith.mulf %480, %488 : vector<8x128xf32>
    %497 = arith.addf %495, %496 : vector<8x128xf32>
    %498 = math.tanh %497 : vector<8x128xf32>
    %499 = arith.mulf %494, %498 : vector<8x128xf32>
    %500 = arith.index_cast %c6_i32 : i32 to index
    %c0_128 = arith.constant 0 : index
    %c0_129 = arith.constant 0 : index
    %501 = vector.load %arg11[%500, %c0_128, %c0_129] : memref<8x8x128xf32, #tpu.memory_space<vmem>>, vector<1x8x128xf32>
    %502 = vector.shape_cast %501 : vector<1x8x128xf32> to vector<8x128xf32>
    %503 = vector.shape_cast %474 : vector<8x128xf32> to vector<1x8x128xf32>
    tpu.vector_store %arg11[%500, %c0_128, %c0_129], %503 {strides = array<i32>} : memref<8x8x128xf32, #tpu.memory_space<vmem>>, vector<1x8x128xf32>,
    %504 = arith.index_cast %437 : i32 to index
    %c0_130 = arith.constant 0 : index
    %c0_131 = arith.constant 0 : index
    %505 = vector.load %arg12[%504, %c0_130, %c0_131] : memref<8x8x128xf32, #tpu.memory_space<vmem>>, vector<1x8x128xf32>
    %506 = vector.shape_cast %505 : vector<1x8x128xf32> to vector<8x128xf32>
    %507 = vector.shape_cast %499 : vector<8x128xf32> to vector<1x8x128xf32>
    tpu.vector_store %arg12[%504, %c0_130, %c0_131], %507 {strides = array<i32>} : memref<8x8x128xf32, #tpu.memory_space<vmem>>, vector<1x8x128xf32>,
    %c7_i32_132 = arith.constant 7 : i32
    %c7_i32_133 = arith.constant 7 : i32
    %508 = arith.subi %c7_i32_133, %c7_i32_132 : i32
    %509 = arith.index_cast %c7_i32_132 : i32 to index
    %c0_134 = arith.constant 0 : index
    %c0_135 = arith.constant 0 : index
    %510 = vector.load %arg10[%509, %c0_134, %c0_135] : memref<8x8x1024xf32, #tpu.memory_space<vmem>>, vector<1x8x1024xf32>
    %511 = vector.shape_cast %510 : vector<1x8x1024xf32> to vector<8x1024xf32>
    %512 = vector.extract_strided_slice %511 {offsets = [0, 0], sizes = [8, 512], strides = [1, 1]} : vector<8x1024xf32> to vector<8x512xf32>
    %cst_136 = arith.constant dense<0.000000e+00> : vector<8x512xf32>
    %513 = tpu.matmul %474, %8, %cst_136 {dimension_numbers = #tpu.dot_dimension_numbers<[1], [0], [0], [1], [0, 0, 1, 1], [], []>} : vector<8x128xf32>, vector<128x512xf32>, vector<8x512xf32> -> vector<8x512xf32>
    %514 = arith.addf %512, %513 : vector<8x512xf32>
    %515 = arith.index_cast %508 : i32 to index
    %c0_137 = arith.constant 0 : index
    %c0_138 = arith.constant 0 : index
    %516 = vector.load %arg10[%515, %c0_137, %c0_138] : memref<8x8x1024xf32, #tpu.memory_space<vmem>>, vector<1x8x1024xf32>
    %517 = vector.shape_cast %516 : vector<1x8x1024xf32> to vector<8x1024xf32>
    %518 = vector.extract_strided_slice %517 {offsets = [0, 512], sizes = [8, 512], strides = [1, 1]} : vector<8x1024xf32> to vector<8x512xf32>
    %cst_139 = arith.constant dense<0.000000e+00> : vector<8x512xf32>
    %519 = tpu.matmul %499, %9, %cst_139 {dimension_numbers = #tpu.dot_dimension_numbers<[1], [0], [0], [1], [0, 0, 1, 1], [], []>} : vector<8x128xf32>, vector<128x512xf32>, vector<8x512xf32> -> vector<8x512xf32>
    %520 = arith.addf %518, %519 : vector<8x512xf32>
    %521 = vector.extract_strided_slice %514 {offsets = [0, 0], sizes = [8, 128], strides = [1, 1]} : vector<8x512xf32> to vector<8x128xf32>
    %522 = arith.negf %521 : vector<8x128xf32>
    %523 = math.exp %522 : vector<8x128xf32>
    %cst_140 = arith.constant 1.000000e+00 : f32
    %524 = vector.broadcast %cst_140 : f32 to vector<8x128xf32>
    %525 = arith.addf %524, %523 : vector<8x128xf32>
    %526 = arith.divf %524, %525 : vector<8x128xf32>
    %527 = vector.extract_strided_slice %514 {offsets = [0, 128], sizes = [8, 128], strides = [1, 1]} : vector<8x512xf32> to vector<8x128xf32>
    %528 = arith.negf %527 : vector<8x128xf32>
    %529 = math.exp %528 : vector<8x128xf32>
    %cst_141 = arith.constant 1.000000e+00 : f32
    %530 = vector.broadcast %cst_141 : f32 to vector<8x128xf32>
    %531 = arith.addf %530, %529 : vector<8x128xf32>
    %532 = arith.divf %530, %531 : vector<8x128xf32>
    %533 = vector.extract_strided_slice %514 {offsets = [0, 256], sizes = [8, 128], strides = [1, 1]} : vector<8x512xf32> to vector<8x128xf32>
    %534 = math.tanh %533 : vector<8x128xf32>
    %535 = vector.extract_strided_slice %514 {offsets = [0, 384], sizes = [8, 128], strides = [1, 1]} : vector<8x512xf32> to vector<8x128xf32>
    %536 = arith.negf %535 : vector<8x128xf32>
    %537 = math.exp %536 : vector<8x128xf32>
    %cst_142 = arith.constant 1.000000e+00 : f32
    %538 = vector.broadcast %cst_142 : f32 to vector<8x128xf32>
    %539 = arith.addf %538, %537 : vector<8x128xf32>
    %540 = arith.divf %538, %539 : vector<8x128xf32>
    %541 = arith.mulf %532, %472 : vector<8x128xf32>
    %542 = arith.mulf %526, %534 : vector<8x128xf32>
    %543 = arith.addf %541, %542 : vector<8x128xf32>
    %544 = math.tanh %543 : vector<8x128xf32>
    %545 = arith.mulf %540, %544 : vector<8x128xf32>
    %546 = vector.extract_strided_slice %520 {offsets = [0, 0], sizes = [8, 128], strides = [1, 1]} : vector<8x512xf32> to vector<8x128xf32>
    %547 = arith.negf %546 : vector<8x128xf32>
    %548 = math.exp %547 : vector<8x128xf32>
    %cst_143 = arith.constant 1.000000e+00 : f32
    %549 = vector.broadcast %cst_143 : f32 to vector<8x128xf32>
    %550 = arith.addf %549, %548 : vector<8x128xf32>
    %551 = arith.divf %549, %550 : vector<8x128xf32>
    %552 = vector.extract_strided_slice %520 {offsets = [0, 128], sizes = [8, 128], strides = [1, 1]} : vector<8x512xf32> to vector<8x128xf32>
    %553 = arith.negf %552 : vector<8x128xf32>
    %554 = math.exp %553 : vector<8x128xf32>
    %cst_144 = arith.constant 1.000000e+00 : f32
    %555 = vector.broadcast %cst_144 : f32 to vector<8x128xf32>
    %556 = arith.addf %555, %554 : vector<8x128xf32>
    %557 = arith.divf %555, %556 : vector<8x128xf32>
    %558 = vector.extract_strided_slice %520 {offsets = [0, 256], sizes = [8, 128], strides = [1, 1]} : vector<8x512xf32> to vector<8x128xf32>
    %559 = math.tanh %558 : vector<8x128xf32>
    %560 = vector.extract_strided_slice %520 {offsets = [0, 384], sizes = [8, 128], strides = [1, 1]} : vector<8x512xf32> to vector<8x128xf32>
    %561 = arith.negf %560 : vector<8x128xf32>
    %562 = math.exp %561 : vector<8x128xf32>
    %cst_145 = arith.constant 1.000000e+00 : f32
    %563 = vector.broadcast %cst_145 : f32 to vector<8x128xf32>
    %564 = arith.addf %563, %562 : vector<8x128xf32>
    %565 = arith.divf %563, %564 : vector<8x128xf32>
    %566 = arith.mulf %557, %497 : vector<8x128xf32>
    %567 = arith.mulf %551, %559 : vector<8x128xf32>
    %568 = arith.addf %566, %567 : vector<8x128xf32>
    %569 = math.tanh %568 : vector<8x128xf32>
    %570 = arith.mulf %565, %569 : vector<8x128xf32>
    %571 = arith.index_cast %c7_i32_132 : i32 to index
    %c0_146 = arith.constant 0 : index
    %c0_147 = arith.constant 0 : index
    %572 = vector.load %arg11[%571, %c0_146, %c0_147] : memref<8x8x128xf32, #tpu.memory_space<vmem>>, vector<1x8x128xf32>
    %573 = vector.shape_cast %572 : vector<1x8x128xf32> to vector<8x128xf32>
    %574 = vector.shape_cast %545 : vector<8x128xf32> to vector<1x8x128xf32>
    tpu.vector_store %arg11[%571, %c0_146, %c0_147], %574 {strides = array<i32>} : memref<8x8x128xf32, #tpu.memory_space<vmem>>, vector<1x8x128xf32>,
    %575 = arith.index_cast %508 : i32 to index
    %c0_148 = arith.constant 0 : index
    %c0_149 = arith.constant 0 : index
    %576 = vector.load %arg12[%575, %c0_148, %c0_149] : memref<8x8x128xf32, #tpu.memory_space<vmem>>, vector<1x8x128xf32>
    %577 = vector.shape_cast %576 : vector<1x8x128xf32> to vector<8x128xf32>
    %578 = vector.shape_cast %570 : vector<8x128xf32> to vector<1x8x128xf32>
    tpu.vector_store %arg12[%575, %c0_148, %c0_149], %578 {strides = array<i32>} : memref<8x8x128xf32, #tpu.memory_space<vmem>>, vector<1x8x128xf32>,
    %c8_i32 = arith.constant 8 : i32
    %c0_150 = arith.constant 0 : index
    %c0_151 = arith.constant 0 : index
    %c0_152 = arith.constant 0 : index
    %579 = vector.load %arg11[%c0_150, %c0_151, %c0_152] : memref<8x8x128xf32, #tpu.memory_space<vmem>>, vector<8x8x128xf32>
    %c0_153 = arith.constant 0 : index
    %c0_154 = arith.constant 0 : index
    %580 = vector.load %arg6[%c0_153, %c0_154] : memref<128x128xf32, #tpu.memory_space<vmem>>, vector<128x128xf32>
    "tpu.trace_start"() <{level = 10 : i32, message = "tbh,hc->tbc"}> : () -> ()
    %cst_155 = arith.constant dense<0.000000e+00> : vector<8x8x128xf32>
    %581 = tpu.matmul %579, %580, %cst_155 {dimension_numbers = #tpu.dot_dimension_numbers<[2], [0], [0, 1], [1], [0, 0, 0, 1, 1, 1], [], []>} : vector<8x8x128xf32>, vector<128x128xf32>, vector<8x8x128xf32> -> vector<8x8x128xf32>
    "tpu.trace_stop"() : () -> ()
    %c0_156 = arith.constant 0 : index
    %c0_157 = arith.constant 0 : index
    %c0_158 = arith.constant 0 : index
    %582 = vector.load %arg12[%c0_156, %c0_157, %c0_158] : memref<8x8x128xf32, #tpu.memory_space<vmem>>, vector<8x8x128xf32>
    %c0_159 = arith.constant 0 : index
    %c0_160 = arith.constant 0 : index
    %583 = vector.load %arg7[%c0_159, %c0_160] : memref<128x128xf32, #tpu.memory_space<vmem>>, vector<128x128xf32>
    "tpu.trace_start"() <{level = 10 : i32, message = "tbh,hc->tbc"}> : () -> ()
    %cst_161 = arith.constant dense<0.000000e+00> : vector<8x8x128xf32>
    %584 = tpu.matmul %582, %583, %cst_161 {dimension_numbers = #tpu.dot_dimension_numbers<[2], [0], [0, 1], [1], [0, 0, 0, 1, 1, 1], [], []>} : vector<8x8x128xf32>, vector<128x128xf32>, vector<8x8x128xf32> -> vector<8x8x128xf32>
    "tpu.trace_stop"() : () -> ()
    %585 = arith.addf %581, %584 : vector<8x8x128xf32>
    %c0_162 = arith.constant 0 : index
    %c0_163 = arith.constant 0 : index
    %586 = vector.load %arg8[%c0_162, %c0_163] : memref<1x128xf32, #tpu.memory_space<vmem>>, vector<1x128xf32>
    %587 = vector.shape_cast %586 : vector<1x128xf32> to vector<1x1x128xf32>
    %588 = vector.broadcast %587 : vector<1x1x128xf32> to vector<8x8x128xf32>
    %589 = arith.addf %585, %588 : vector<8x8x128xf32>
    %c0_164 = arith.constant 0 : index
    %c0_165 = arith.constant 0 : index
    %c0_166 = arith.constant 0 : index
    %590 = vector.load %arg9[%c0_164, %c0_165, %c0_166] : memref<8x8x128xf32, #tpu.memory_space<vmem>>, vector<8x8x128xf32>
    tpu.vector_store %arg9[%c0_164, %c0_165, %c0_166], %589 {strides = array<i32>} : memref<8x8x128xf32, #tpu.memory_space<vmem>>, vector<8x8x128xf32>,
    return
  }
  func.func @transform_0(%arg0: i32) -> (i32, i32, i32) {
    %c0_i32 = arith.constant 0 : i32
    %c0_i32_0 = arith.constant 0 : i32
    %c0_i32_1 = arith.constant 0 : i32
    return %c0_i32, %arg0, %c0_i32_0 : i32, i32, i32
  }
  func.func @transform_1(%arg0: i32) -> (i32, i32) {
    %c0_i32 = arith.constant 0 : i32
    %c0_i32_0 = arith.constant 0 : i32
    %c0_i32_1 = arith.constant 0 : i32
    return %c0_i32, %c0_i32_0 : i32, i32
  }
  func.func @transform_2(%arg0: i32) -> (i32, i32) {
    %c0_i32 = arith.constant 0 : i32
    %c0_i32_0 = arith.constant 0 : i32
    %c0_i32_1 = arith.constant 0 : i32
    return %c0_i32, %c0_i32_0 : i32, i32
  }
  func.func @transform_3(%arg0: i32) -> (i32, i32) {
    %c0_i32 = arith.constant 0 : i32
    %c0_i32_0 = arith.constant 0 : i32
    %c0_i32_1 = arith.constant 0 : i32
    return %c0_i32, %c0_i32_0 : i32, i32
  }
  func.func @transform_4(%arg0: i32) -> (i32, i32) {
    %c0_i32 = arith.constant 0 : i32
    %c0_i32_0 = arith.constant 0 : i32
    %c0_i32_1 = arith.constant 0 : i32
    return %c0_i32, %c0_i32_0 : i32, i32
  }
  func.func @transform_5(%arg0: i32) -> (i32, i32) {
    %c0_i32 = arith.constant 0 : i32
    %c0_i32_0 = arith.constant 0 : i32
    %c0_i32_1 = arith.constant 0 : i32
    return %c0_i32, %c0_i32_0 : i32, i32
  }
  func.func @transform_6(%arg0: i32) -> (i32, i32) {
    %c0_i32 = arith.constant 0 : i32
    %c0_i32_0 = arith.constant 0 : i32
    %c0_i32_1 = arith.constant 0 : i32
    return %c0_i32, %c0_i32_0 : i32, i32
  }
  func.func @transform_7(%arg0: i32) -> (i32, i32) {
    %c0_i32 = arith.constant 0 : i32
    %c0_i32_0 = arith.constant 0 : i32
    %c0_i32_1 = arith.constant 0 : i32
    return %c0_i32, %c0_i32_0 : i32, i32
  }
  func.func @transform_8(%arg0: i32) -> (i32, i32, i32) {
    %c0_i32 = arith.constant 0 : i32
    %c0_i32_0 = arith.constant 0 : i32
    %c0_i32_1 = arith.constant 0 : i32
    return %c0_i32, %arg0, %c0_i32_0 : i32, i32, i32
  }
}

</mosaic_0001>

<bundles_post_ra>
// kernel: tpu_custom_call.1
= control target key start
LH: loop header
LB: loop body
LE: loop exit
PB: predicated region body
PF: predicated region fallthrough
CT: control target
= control target key end

     0   :  { %13 = vsyncpa [#allocation6], 0  ;;  %s7368_s0 = inlined_call_operand.hbm [shape: f32[8,8,128], index: 0, kind: input, shape index: {}]   ;;  %s7369_s1 = inlined_call_operand.hbm [shape: f32[128,1024], index: 1, kind: input, shape index: {}]   ;;  %s7370_s2 = inlined_call_operand.hbm [shape: f32[1,1024], index: 2, kind: input, shape index: {}]   ;;  %s7371_s3 = inlined_call_operand.hbm [shape: f32[128,512], index: 3, kind: input, shape index: {}]   ;;  %s7372_s4 = inlined_call_operand.hbm [shape: f32[128,512], index: 4, kind: input, shape index: {}]   ;;  %s7373_s5 = inlined_call_operand.hbm [shape: f32[128,128], index: 5, kind: input, shape index: {}]   ;;  %s7374_s6 = inlined_call_operand.hbm [shape: f32[128,128], index: 6, kind: input, shape index: {}]   ;;  %s7375_s7 = inlined_call_operand.vmem [shape: f32[1,128], index: 7, kind: input, shape index: {}]   ;;  %s7376_s8 = inlined_call_operand.hbm [shape: f32[8,8,128], index: 8, kind: output, shape index: {}]  }
   0x1   :  { %14 = vsyncpa [#allocation9], 0 }
   0x2   :  { %15 = vsyncpa [#allocation12], 0 }
   0x3   :  { %16 = vsyncpa [#allocation15], 0 }
   0x4   :  { %17 = vsyncpa [#allocation7], 0  ;;  %s4949_s27 = smov [#allocation8]  }
   0x5   :  { %s35_s28 = sshll.u32 %s4949_s27, 4  ;;  %s36_s28 = int_to_ptr.vmem [resolvable:$true] %s35_s28 }
   0x6   :  { %s4787_s29 = scalar_lea.vmem %s36_s28, 16384  ;;  %p4792_p1 = scmp.lt.s32.totalorder %s36_s28, %s36_s28 }
   0x7   :  { %p4788_p0 = scmp.ne.s32.totalorder %s36_s28, %s4787_s29  ;;  %p4793_p2 = scmp.lt.s32.totalorder %s4787_s29, %s4787_s29 }
   0x9   :  { %p4794_p3 = por %p4793_p2, %p4792_p1 }
   0xb   :  { %p4795_p4 = pnand %p4794_p3, %p4788_p0 }
   0xd   :  { %4798 = shalt.err (!%p4795_p4)
}
   0xe   :  { %s4950_s30 = smov 1024   ;;  %s4951_s9 = smov 64  }
   0xf   :  { %41 = dma.hbm_to_vmem [thread:$0]  %s7369_s1, 16384, %s36_s28, [#allocation9], %s4950_s30, %s4950_s30, %s4951_s9  }
  0x10   :  { %s4952_s12 = smov [#allocation11]  }
  0x11   :  { %s57_s13 = sshll.u32 %s4952_s12, 4  ;;  %s58_s13 = int_to_ptr.vmem [resolvable:$true] %s57_s13 }
  0x12   :  { %s4807_s14 = scalar_lea.vmem %s58_s13, 8192  ;;  %p4812_p6 = scmp.lt.s32.totalorder %s58_s13, %s58_s13 }
  0x13   :  { %p4808_p5 = scmp.ne.s32.totalorder %s58_s13, %s4807_s14  ;;  %p4813_p7 = scmp.lt.s32.totalorder %s4807_s14, %s4807_s14 }
  0x15   :  { %p4814_p8 = por %p4813_p7, %p4812_p6 }
  0x17   :  { %p4815_p9 = pnand %p4814_p8, %p4808_p5 }
  0x19   :  { %4818 = shalt.err (!%p4815_p9)
}
  0x1a   :  { %s4953_s15 = smov 512   ;;  %s4954_s16 = smov 32  }
  0x1b   :  { %63 = dma.hbm_to_vmem [thread:$0]  %s7371_s3, 8192, %s58_s13, [#allocation12], %s4953_s15, %s4953_s15, %s4954_s16  }
  0x1c   :  { %s4955_s1 = smov [#allocation14]   ;;  %s4956_s20 = smov [#allocation5]  }
  0x1d   :  { %s81_s19 = sshll.u32 %s4955_s1, 4  ;;  %s23_s21 = sshll.u32 %s4956_s20, 4  ;;  %s82_s19 = int_to_ptr.vmem [resolvable:$true] %s81_s19  ;;  %s24_s21 = int_to_ptr.vmem [resolvable:$true] %s23_s21 }
  0x1e   :  { %s4827_s22 = scalar_lea.vmem %s82_s19, 2048  ;;  %p4832_p11 = scmp.lt.s32.totalorder %s82_s19, %s82_s19 }
  0x1f   :  { %p4828_p10 = scmp.ne.s32.totalorder %s82_s19, %s4827_s22  ;;  %p4833_p12 = scmp.lt.s32.totalorder %s4827_s22, %s4827_s22 }
  0x21   :  { %p4834_p13 = por %p4833_p12, %p4832_p11 }
  0x23   :  { %p4835_p0 = pnand %p4834_p13, %p4828_p10 }
  0x25   :  { %4838 = shalt.err (!%p4835_p0)
}
  0x26   :  { %s4957_s23 = smov 128   ;;  %s4958_s24 = smov 8  }
  0x27   :  { %87 = dma.hbm_to_vmem [thread:$0]  %s7373_s5, 2048, %s82_s19, [#allocation15], %s4957_s23, %s4957_s23, %s4958_s24  }
  0x28   :  { %s4847_s26 = scalar_lea.vmem %s24_s21, 1024  ;;  %p4852_p2 = scmp.lt.s32.totalorder %s24_s21, %s24_s21 }
  0x29   :  { %p4848_p1 = scmp.ne.s32.totalorder %s24_s21, %s4847_s26  ;;  %p4853_p3 = scmp.lt.s32.totalorder %s4847_s26, %s4847_s26 }
  0x2b   :  { %p4854_p4 = por %p4853_p3, %p4852_p2 }
  0x2d   :  { %p4855_p5 = pnand %p4854_p4, %p4848_p1 }
  0x2f   :  { %4858 = shalt.err (!%p4855_p5)
}
  0x30   :  { %29 = dma.hbm_to_vmem [thread:$0]  %s7368_s0, 1024, %s24_s21, [#allocation6], %s4957_s23, %s4957_s23, %s4958_s24  }
  0x31   :  { %s4959_s29 = smov [#allocation10]   ;;  %s4960_s9 = smov [#allocation13]  }
  0x32   :  { %s48_s30 = sshll.u32 %s4959_s29, 4  ;;  %s69_s10 = sshll.u32 %s4960_s9, 4  ;;  %s49_s30 = int_to_ptr.vmem [resolvable:$true] %s48_s30  ;;  %s70_s10 = int_to_ptr.vmem [resolvable:$true] %s69_s10 }
  0x33   :  { %s4867_s5 = scalar_lea.vmem %s49_s30, 128  ;;  %p4872_p7 = scmp.lt.s32.totalorder %s49_s30, %s49_s30 }
  0x34   :  { %p4868_p6 = scmp.ne.s32.totalorder %s49_s30, %s4867_s5  ;;  %p4873_p8 = scmp.lt.s32.totalorder %s4867_s5, %s4867_s5 }
  0x36   :  { %p4874_p9 = por %p4873_p8, %p4872_p7 }
  0x38   :  { %p4875_p10 = pnand %p4874_p9, %p4868_p6 }
  0x3a   :  { %4878 = shalt.err (!%p4875_p10)
}
  0x3b   :  { %51 = dma.hbm_to_vmem [thread:$0]  %s7370_s2, 128, %s49_s30, [#allocation9]  }
  0x3c   :  { %s4887_s13 = scalar_lea.vmem %s70_s10, 8192  ;;  %p4892_p12 = scmp.lt.s32.totalorder %s70_s10, %s70_s10 }
  0x3d   :  { %p4888_p11 = scmp.ne.s32.totalorder %s70_s10, %s4887_s13  ;;  %p4893_p13 = scmp.lt.s32.totalorder %s4887_s13, %s4887_s13 }
  0x3f   :  { %p4894_p0 = por %p4893_p13, %p4892_p12 }
  0x41   :  { %p4895_p1 = pnand %p4894_p0, %p4888_p11 }
  0x43   :  { %4898 = shalt.err (!%p4895_p1)
}
  0x44   :  { %75 = dma.hbm_to_vmem [thread:$0]  %s7372_s4, 8192, %s70_s10, [#allocation12], %s4953_s15, %s4953_s15, %s4954_s16  }
  0x45   :  { %s4961_s17 = smov [#allocation16]  }
  0x46   :  { %s93_s18 = sshll.u32 %s4961_s17, 4  ;;  %s94_s18 = int_to_ptr.vmem [resolvable:$true] %s93_s18 }
  0x47   :  { %s4907_s1 = scalar_lea.vmem %s94_s18, 2048  ;;  %p4912_p3 = scmp.lt.s32.totalorder %s94_s18, %s94_s18 }
  0x48   :  { %p4908_p2 = scmp.ne.s32.totalorder %s94_s18, %s4907_s1  ;;  %p4913_p4 = scmp.lt.s32.totalorder %s4907_s1, %s4907_s1 }
  0x4a   :  { %p4914_p5 = por %p4913_p4, %p4912_p3 }
  0x4c   :  { %p4915_p6 = pnand %p4914_p5, %p4908_p2 }
  0x4e   :  { %4918 = shalt.err (!%p4915_p6)
}
  0x4f   :  { %99 = dma.hbm_to_vmem [thread:$0]  %s7374_s6, 2048, %s94_s18, [#allocation15], %s4957_s23, %s4957_s23, %s4958_s24  }
  0x50   :  { %4939 = dma.done.wait [#allocation6], 1024  }
  0x51   :  { %4940 = vsyncadd [#allocation6], 4294966272 }
  0x52   :  { %4941 = dma.done.wait [#allocation9], 16512  }
  0x53   :  { %4942 = vsyncadd [#allocation9], 4294950784 }
  0x54   :  { %4943 = dma.done.wait [#allocation12], 16384  }
  0x55   :  { %4944 = vsyncadd [#allocation12], 4294950912 }
  0x56   :  { %4945 = dma.done.wait [#allocation15], 4096  }
  0x57   :  { %4946 = vsyncadd [#allocation15], 4294963200  ;;  %v7377_v0 = vmov 0.0   ;;  %v252_v1 = vld [vmem:[#allocation8 + $0x3c8] sm:$0xff]  ;;  %v254_v2 = vld [vmem:[#allocation8 + $0x3d8] sm:$0xff] }
  0x58   :  { %365 = vmatprep.mubr.f32.mxu0 %v7377_v0  ;;  %478 = vmatprep.mubr.f32.mxu1 %v7377_v0  ;;  %v251_v3 = vld [vmem:[#allocation8 + $0x3c0] sm:$0xff]  ;;  %v253_v4 = vld [vmem:[#allocation8 + $0x3d0] sm:$0xff]  ;;  %v244_v5 = vld [vmem:[#allocation8 + $0x388] sm:$0xff] }
  0x59   :  { %301 = vmatprep.subr.mxu0 %v252_v1  ;;  %414 = vmatprep.subr.mxu1 %v254_v2  ;;  %v246_v6 = vld [vmem:[#allocation8 + $0x398] sm:$0xff]  ;;  %v243_v7 = vld [vmem:[#allocation8 + $0x380] sm:$0xff]  ;;  %v245_v8 = vld [vmem:[#allocation8 + $0x390] sm:$0xff] }
  0x5a   :  { %302 = vmatpush1.msra.mxu0 %v251_v3  ;;  %415 = vmatpush1.msra.mxu1 %v253_v4  ;;  %v236_v9 = vld [vmem:[#allocation8 + $0x348] sm:$0xff]  ;;  %v238_v10 = vld [vmem:[#allocation8 + $0x358] sm:$0xff]  ;;  %v235_v11 = vld [vmem:[#allocation8 + $0x340] sm:$0xff] }
  0x5b   :  { %303 = vmatprep.subr.mxu0 %v244_v5  ;;  %416 = vmatprep.subr.mxu1 %v246_v6  ;;  %v237_v12 = vld [vmem:[#allocation8 + $0x350] sm:$0xff]  ;;  %v228_v13 = vld [vmem:[#allocation8 + $0x308] sm:$0xff]  ;;  %v230_v14 = vld [vmem:[#allocation8 + $0x318] sm:$0xff] }
  0x5c   :  { %304 = vmatpush1.msra.mxu0 %v243_v7  ;;  %417 = vmatpush1.msra.mxu1 %v245_v8  ;;  %v227_v15 = vld [vmem:[#allocation8 + $0x300] sm:$0xff]  ;;  %v229_v16 = vld [vmem:[#allocation8 + $0x310] sm:$0xff]  ;;  %v220_v17 = vld [vmem:[#allocation8 + $0x2c8] sm:$0xff] }
  0x5d   :  { %305 = vmatprep.subr.mxu0 %v236_v9  ;;  %418 = vmatprep.subr.mxu1 %v238_v10  ;;  %v222_v18 = vld [vmem:[#allocation8 + $0x2d8] sm:$0xff]  ;;  %v219_v19 = vld [vmem:[#allocation8 + $0x2c0] sm:$0xff]  ;;  %v221_v20 = vld [vmem:[#allocation8 + $0x2d0] sm:$0xff] }
  0x5e   :  { %306 = vmatpush1.msra.mxu0 %v235_v11  ;;  %419 = vmatpush1.msra.mxu1 %v237_v12  ;;  %v212_v21 = vld [vmem:[#allocation8 + $0x288] sm:$0xff]  ;;  %v214_v22 = vld [vmem:[#allocation8 + $0x298] sm:$0xff]  ;;  %v211_v23 = vld [vmem:[#allocation8 + $0x280] sm:$0xff] }
  0x5f   :  { %307 = vmatprep.subr.mxu0 %v228_v13  ;;  %420 = vmatprep.subr.mxu1 %v230_v14  ;;  %v213_v24 = vld [vmem:[#allocation8 + $0x290] sm:$0xff]  ;;  %v204_v25 = vld [vmem:[#allocation8 + $0x248] sm:$0xff]  ;;  %v206_v26 = vld [vmem:[#allocation8 + $0x258] sm:$0xff] }
  0x60   :  { %308 = vmatpush1.msra.mxu0 %v227_v15  ;;  %421 = vmatpush1.msra.mxu1 %v229_v16  ;;  %v203_v27 = vld [vmem:[#allocation8 + $0x240] sm:$0xff]  ;;  %v205_v28 = vld [vmem:[#allocation8 + $0x250] sm:$0xff]  ;;  %v196_v29 = vld [vmem:[#allocation8 + $0x208] sm:$0xff] }
  0x61   :  { %309 = vmatprep.subr.mxu0 %v220_v17  ;;  %422 = vmatprep.subr.mxu1 %v222_v18  ;;  %v198_v30 = vld [vmem:[#allocation8 + $0x218] sm:$0xff]  ;;  %v195_v31 = vld [vmem:[#allocation8 + $0x200] sm:$0xff]  ;;  %v197_v32 = vld [vmem:[#allocation8 + $0x210] sm:$0xff] }
  0x62   :  { %310 = vmatpush1.msra.mxu0 %v219_v19  ;;  %423 = vmatpush1.msra.mxu1 %v221_v20  ;;  %v188_v33 = vld [vmem:[#allocation8 + $0x1c8] sm:$0xff]  ;;  %v190_v34 = vld [vmem:[#allocation8 + $0x1d8] sm:$0xff]  ;;  %v187_v35 = vld [vmem:[#allocation8 + $0x1c0] sm:$0xff] }
  0x63   :  { %311 = vmatprep.subr.mxu0 %v212_v21  ;;  %424 = vmatprep.subr.mxu1 %v214_v22  ;;  %v189_v36 = vld [vmem:[#allocation8 + $0x1d0] sm:$0xff]  ;;  %v180_v37 = vld [vmem:[#allocation8 + $0x188] sm:$0xff]  ;;  %v182_v38 = vld [vmem:[#allocation8 + $0x198] sm:$0xff] }
  0x64   :  { %312 = vmatpush1.msra.mxu0 %v211_v23  ;;  %425 = vmatpush1.msra.mxu1 %v213_v24  ;;  %v179_v39 = vld [vmem:[#allocation8 + $0x180] sm:$0xff]  ;;  %v181_v40 = vld [vmem:[#allocation8 + $0x190] sm:$0xff]  ;;  %v172_v41 = vld [vmem:[#allocation8 + $0x148] sm:$0xff] }
  0x65   :  { %313 = vmatprep.subr.mxu0 %v204_v25  ;;  %426 = vmatprep.subr.mxu1 %v206_v26  ;;  %v174_v42 = vld [vmem:[#allocation8 + $0x158] sm:$0xff]  ;;  %v171_v43 = vld [vmem:[#allocation8 + $0x140] sm:$0xff]  ;;  %v173_v44 = vld [vmem:[#allocation8 + $0x150] sm:$0xff] }
  0x66   :  { %314 = vmatpush1.msra.mxu0 %v203_v27  ;;  %427 = vmatpush1.msra.mxu1 %v205_v28  ;;  %v164_v45 = vld [vmem:[#allocation8 + $0x108] sm:$0xff]  ;;  %v166_v46 = vld [vmem:[#allocation8 + $0x118] sm:$0xff]  ;;  %v163_v47 = vld [vmem:[#allocation8 + $0x100] sm:$0xff] }
  0x67   :  { %315 = vmatprep.subr.mxu0 %v196_v29  ;;  %428 = vmatprep.subr.mxu1 %v198_v30  ;;  %v165_v48 = vld [vmem:[#allocation8 + $0x110] sm:$0xff]  ;;  %v156_v49 = vld [vmem:[#allocation8 + $0xc8] sm:$0xff]  ;;  %v158_v50 = vld [vmem:[#allocation8 + $0xd8] sm:$0xff] }
  0x68   :  { %316 = vmatpush1.msra.mxu0 %v195_v31  ;;  %429 = vmatpush1.msra.mxu1 %v197_v32  ;;  %v155_v51 = vld [vmem:[#allocation8 + $0xc0] sm:$0xff]  ;;  %v157_v52 = vld [vmem:[#allocation8 + $0xd0] sm:$0xff]  ;;  %v148_v53 = vld [vmem:[#allocation8 + $0x88] sm:$0xff] }
  0x69   :  { %317 = vmatprep.subr.mxu0 %v188_v33  ;;  %430 = vmatprep.subr.mxu1 %v190_v34  ;;  %v150_v54 = vld [vmem:[#allocation8 + $0x98] sm:$0xff]  ;;  %v147_v55 = vld [vmem:[#allocation8 + $0x80] sm:$0xff]  ;;  %v149_v56 = vld [vmem:[#allocation8 + $0x90] sm:$0xff] }
  0x6a   :  { %318 = vmatpush1.msra.mxu0 %v187_v35  ;;  %431 = vmatpush1.msra.mxu1 %v189_v36  ;;  %v140_v57 = vld [vmem:[#allocation8 + $0x48] sm:$0xff]  ;;  %v142_v58 = vld [vmem:[#allocation8 + $0x58] sm:$0xff]  ;;  %v139_v59 = vld [vmem:[#allocation8 + $0x40] sm:$0xff] }
  0x6b   :  { %319 = vmatprep.subr.mxu0 %v180_v37  ;;  %432 = vmatprep.subr.mxu1 %v182_v38  ;;  %v141_v60 = vld [vmem:[#allocation8 + $0x50] sm:$0xff]  ;;  %v132_v61 = vld [vmem:[#allocation8 + $0x8] sm:$0xff]  ;;  %v134_v62 = vld [vmem:[#allocation8 + $0x18] sm:$0xff] }
  0x6c   :  { %320 = vmatpush1.msra.mxu0 %v179_v39  ;;  %433 = vmatpush1.msra.mxu1 %v181_v40  ;;  %v131_v63 = vld [vmem:[#allocation8] sm:$0xff]  ;;  %v133_v1 = vld [vmem:[#allocation8 + $0x10] sm:$0xff]  ;;  %v256_v3 = vld [vmem:[#allocation8 + $0x3e8] sm:$0xff] }
  0x6d   :  { %321 = vmatprep.subr.mxu0 %v172_v41  ;;  %434 = vmatprep.subr.mxu1 %v174_v42  ;;  %v5047_v2 = vld [vmem:[#allocation5] sm:$0xff]  ;;  %v258_v4 = vld [vmem:[#allocation8 + $0x3f8] sm:$0xff]  ;;  %v257_v6 = vld [vmem:[#allocation8 + $0x3f0] sm:$0xff] }
  0x6e   :  { %322 = vmatpush1.msra.mxu0 %v171_v43  ;;  %435 = vmatpush1.msra.mxu1 %v173_v44  ;;  %v255_v5 = vld [vmem:[#allocation8 + $0x3e0] sm:$0xff]  ;;  %v248_v7 = vld [vmem:[#allocation8 + $0x3a8] sm:$0xff]  ;;  %v250_v8 = vld [vmem:[#allocation8 + $0x3b8] sm:$0xff] }
  0x6f   :  { %323 = vmatprep.subr.mxu0 %v164_v45  ;;  %436 = vmatprep.subr.mxu1 %v166_v46  ;;  %v247_v9 = vld [vmem:[#allocation8 + $0x3a0] sm:$0xff]  ;;  %v249_v10 = vld [vmem:[#allocation8 + $0x3b0] sm:$0xff]  ;;  %v5051_v11 = vld [vmem:[#allocation5 + $0x8] sm:$0xff] }
  0x70   :  { %324 = vmatpush1.msra.mxu0 %v163_v47  ;;  %437 = vmatpush1.msra.mxu1 %v165_v48  ;;  %v240_v12 = vld [vmem:[#allocation8 + $0x368] sm:$0xff]  ;;  %v242_v13 = vld [vmem:[#allocation8 + $0x378] sm:$0xff]  ;;  %v239_v14 = vld [vmem:[#allocation8 + $0x360] sm:$0xff] }
  0x71   :  { %325 = vmatprep.subr.mxu0 %v156_v49  ;;  %438 = vmatprep.subr.mxu1 %v158_v50  ;;  %v241_v15 = vld [vmem:[#allocation8 + $0x370] sm:$0xff]  ;;  %v232_v16 = vld [vmem:[#allocation8 + $0x328] sm:$0xff]  ;;  %v234_v17 = vld [vmem:[#allocation8 + $0x338] sm:$0xff] }
  0x72   :  { %326 = vmatpush1.msra.mxu0 %v155_v51  ;;  %439 = vmatpush1.msra.mxu1 %v157_v52  ;;  %v231_v18 = vld [vmem:[#allocation8 + $0x320] sm:$0xff]  ;;  %v233_v19 = vld [vmem:[#allocation8 + $0x330] sm:$0xff]  ;;  %v224_v21 = vld [vmem:[#allocation8 + $0x2e8] sm:$0xff] }
  0x73   :  { %327 = vmatprep.subr.mxu0 %v148_v53  ;;  %440 = vmatprep.subr.mxu1 %v150_v54  ;;  %v5057_v20 = vld [vmem:[#allocation5 + $0x10] sm:$0xff]  ;;  %v226_v22 = vld [vmem:[#allocation8 + $0x2f8] sm:$0xff]  ;;  %v223_v23 = vld [vmem:[#allocation8 + $0x2e0] sm:$0xff] }
  0x74   :  { %328 = vmatpush1.msra.mxu0 %v147_v55  ;;  %441 = vmatpush1.msra.mxu1 %v149_v56  ;;  %v225_v24 = vld [vmem:[#allocation8 + $0x2f0] sm:$0xff]  ;;  %v216_v25 = vld [vmem:[#allocation8 + $0x2a8] sm:$0xff]  ;;  %v218_v26 = vld [vmem:[#allocation8 + $0x2b8] sm:$0xff] }
  0x75   :  { %329 = vmatprep.subr.mxu0 %v140_v57  ;;  %442 = vmatprep.subr.mxu1 %v142_v58  ;;  %v215_v27 = vld [vmem:[#allocation8 + $0x2a0] sm:$0xff]  ;;  %v217_v28 = vld [vmem:[#allocation8 + $0x2b0] sm:$0xff]  ;;  %v5063_v29 = vld [vmem:[#allocation5 + $0x18] sm:$0xff] }
  0x76   :  { %330 = vmatpush1.msra.mxu0 %v139_v59  ;;  %443 = vmatpush1.msra.mxu1 %v141_v60  ;;  %v208_v30 = vld [vmem:[#allocation8 + $0x268] sm:$0xff]  ;;  %v210_v31 = vld [vmem:[#allocation8 + $0x278] sm:$0xff]  ;;  %v207_v32 = vld [vmem:[#allocation8 + $0x260] sm:$0xff] }
  0x77   :  { %331 = vmatprep.subr.mxu0 %v132_v61  ;;  %444 = vmatprep.subr.mxu1 %v134_v62  ;;  %v209_v33 = vld [vmem:[#allocation8 + $0x270] sm:$0xff]  ;;  %v200_v34 = vld [vmem:[#allocation8 + $0x228] sm:$0xff]  ;;  %v202_v35 = vld [vmem:[#allocation8 + $0x238] sm:$0xff] }
  0x78   :  { %332 = vmatpush1.msra.mxu0 %v131_v63  ;;  %445 = vmatpush1.msra.mxu1 %v133_v1  ;;  %v199_v36 = vld [vmem:[#allocation8 + $0x220] sm:$0xff]  ;;  %v201_v37 = vld [vmem:[#allocation8 + $0x230] sm:$0xff]  ;;  %v192_v39 = vld [vmem:[#allocation8 + $0x1e8] sm:$0xff] }
  0x79   :  { %366 = vmatmul.mubr.f32.vlgmr.msra.gmra.mxu0 %v5047_v2  ;;  %479 = vmatmul.mubr.f32.vlgmr.msra.gmra.mxu1 %v5047_v2  ;;  %v5069_v38 = vld [vmem:[#allocation5 + $0x20] sm:$0xff]  ;;  %v194_v40 = vld [vmem:[#allocation8 + $0x1f8] sm:$0xff]  ;;  %v193_v42 = vld [vmem:[#allocation8 + $0x1f0] sm:$0xff] }
  0x7a   :  { %527 = vmatprep.subr.mxu0 %v256_v3  ;;  %640 = vmatprep.subr.mxu1 %v258_v4  ;;  %v191_v41 = vld [vmem:[#allocation8 + $0x1e0] sm:$0xff]  ;;  %v184_v43 = vld [vmem:[#allocation8 + $0x1a8] sm:$0xff]  ;;  %v186_v44 = vld [vmem:[#allocation8 + $0x1b8] sm:$0xff] }
  0x7b   :  { %528 = vmatpush1.msra.mxu0 %v255_v5  ;;  %641 = vmatpush1.msra.mxu1 %v257_v6  ;;  %v183_v45 = vld [vmem:[#allocation8 + $0x1a0] sm:$0xff]  ;;  %v185_v46 = vld [vmem:[#allocation8 + $0x1b0] sm:$0xff]  ;;  %v5075_v47 = vld [vmem:[#allocation5 + $0x28] sm:$0xff] }
  0x7c   :  { %529 = vmatprep.subr.mxu0 %v248_v7  ;;  %642 = vmatprep.subr.mxu1 %v250_v8  ;;  %v176_v48 = vld [vmem:[#allocation8 + $0x168] sm:$0xff]  ;;  %v178_v49 = vld [vmem:[#allocation8 + $0x178] sm:$0xff]  ;;  %v175_v50 = vld [vmem:[#allocation8 + $0x160] sm:$0xff] }
  0x7d   :  { %371 = vmatprep.mubr.f32.mxu0 %v7377_v0  ;;  %484 = vmatprep.mubr.f32.mxu1 %v7377_v0  ;;  %v177_v51 = vld [vmem:[#allocation8 + $0x170] sm:$0xff]  ;;  %v168_v52 = vld [vmem:[#allocation8 + $0x128] sm:$0xff]  ;;  %v170_v53 = vld [vmem:[#allocation8 + $0x138] sm:$0xff] }
  0x7e   :  { %530 = vmatpush1.msra.mxu0 %v247_v9  ;;  %643 = vmatpush1.msra.mxu1 %v249_v10  ;;  %v167_v54 = vld [vmem:[#allocation8 + $0x120] sm:$0xff]  ;;  %v169_v55 = vld [vmem:[#allocation8 + $0x130] sm:$0xff]  ;;  %v160_v57 = vld [vmem:[#allocation8 + $0xe8] sm:$0xff] }
  0x7f   :  { %372 = vmatmul.mubr.f32.gmra.mxu0 %v5051_v11  ;;  %485 = vmatmul.mubr.f32.gmra.mxu1 %v5051_v11  ;;  %v5081_v56 = vld [vmem:[#allocation5 + $0x30] sm:$0xff]  ;;  %v162_v58 = vld [vmem:[#allocation8 + $0xf8] sm:$0xff]  ;;  %v159_v59 = vld [vmem:[#allocation8 + $0xe0] sm:$0xff] }
  0x80   :  { %531 = vmatprep.subr.mxu0 %v240_v12  ;;  %644 = vmatprep.subr.mxu1 %v242_v13  ;;  %v161_v60 = vld [vmem:[#allocation8 + $0xf0] sm:$0xff]  ;;  %v152_v61 = vld [vmem:[#allocation8 + $0xa8] sm:$0xff]  ;;  %v154_v62 = vld [vmem:[#allocation8 + $0xb8] sm:$0xff] }
  0x81   :  { %532 = vmatpush1.msra.mxu0 %v239_v14  ;;  %645 = vmatpush1.msra.mxu1 %v241_v15  ;;  %v151_v63 = vld [vmem:[#allocation8 + $0xa0] sm:$0xff]  ;;  %v153_v1 = vld [vmem:[#allocation8 + $0xb0] sm:$0xff]  ;;  %v5087_v3 = vld [vmem:[#allocation5 + $0x38] sm:$0xff] }
  0x82   :  { %533 = vmatprep.subr.mxu0 %v232_v16  ;;  %646 = vmatprep.subr.mxu1 %v234_v17  ;;  %v144_v4 = vld [vmem:[#allocation8 + $0x68] sm:$0xff]  ;;  %v146_v5 = vld [vmem:[#allocation8 + $0x78] sm:$0xff]  ;;  %v143_v6 = vld [vmem:[#allocation8 + $0x60] sm:$0xff] }
  0x83   :  { %377 = vmatprep.mubr.f32.mxu0 %v7377_v0  ;;  %490 = vmatprep.mubr.f32.mxu1 %v7377_v0  ;;  %v145_v7 = vld [vmem:[#allocation8 + $0x70] sm:$0xff]  ;;  %v136_v8 = vld [vmem:[#allocation8 + $0x28] sm:$0xff]  ;;  %v138_v9 = vld [vmem:[#allocation8 + $0x38] sm:$0xff] }
  0x84   :  { %534 = vmatpush1.msra.mxu0 %v231_v18  ;;  %647 = vmatpush1.msra.mxu1 %v233_v19  ;;  %v135_v10 = vld [vmem:[#allocation8 + $0x20] sm:$0xff]  ;;  %v137_v12 = vld [vmem:[#allocation8 + $0x30] sm:$0xff]  ;;  %v5099_v15 = vld [vmem:[#allocation11 + $0x1e0] sm:$0xff] }
  0x85   :  { %378 = vmatmul.mubr.f32.gmra.mxu0 %v5057_v20  ;;  %491 = vmatmul.mubr.f32.gmra.mxu1 %v5057_v20  ;;  %v5094_v13 = vld [vmem:[#allocation11 + $0x1e8] sm:$0xff]  ;;  %v5096_v14 = vld [vmem:[#allocation11 + $0x1f8] sm:$0xff]  ;;  %v5101_v16 = vld [vmem:[#allocation11 + $0x1f0] sm:$0xff] }
  0x86   :  { %535 = vmatprep.subr.mxu0 %v224_v21  ;;  %648 = vmatprep.subr.mxu1 %v226_v22  ;;  %v5105_v17 = vld [vmem:[#allocation11 + $0x1c8] sm:$0xff]  ;;  %v5107_v18 = vld [vmem:[#allocation11 + $0x1d8] sm:$0xff]  ;;  %v5113_v19 = vld [vmem:[#allocation11 + $0x1c0] sm:$0xff] }
  0x87   :  { %536 = vmatpush1.msra.mxu0 %v223_v23  ;;  %649 = vmatpush1.msra.mxu1 %v225_v24  ;;  %v5115_v21 = vld [vmem:[#allocation11 + $0x1d0] sm:$0xff]  ;;  %v5123_v22 = vld [vmem:[#allocation11 + $0x1b8] sm:$0xff]  ;;  %v5127_v23 = vld [vmem:[#allocation11 + $0x1a0] sm:$0xff] }
  0x88   :  { %537 = vmatprep.subr.mxu0 %v216_v25  ;;  %650 = vmatprep.subr.mxu1 %v218_v26  ;;  %v5129_v24 = vld [vmem:[#allocation11 + $0x1b0] sm:$0xff]  ;;  %v5133_v25 = vld [vmem:[#allocation11 + $0x188] sm:$0xff]  ;;  %v5135_v26 = vld [vmem:[#allocation11 + $0x198] sm:$0xff] }
  0x89   :  { %383 = vmatprep.mubr.f32.mxu0 %v7377_v0  ;;  %496 = vmatprep.mubr.f32.mxu1 %v7377_v0 }
  0x8a   :  { %538 = vmatpush1.msra.mxu0 %v215_v27  ;;  %651 = vmatpush1.msra.mxu1 %v217_v28  ;;  %v5141_v27 = vld [vmem:[#allocation11 + $0x180] sm:$0xff]  ;;  %v5143_v28 = vld [vmem:[#allocation11 + $0x190] sm:$0xff] }
  0x8b   :  { %384 = vmatmul.mubr.f32.gmra.mxu0 %v5063_v29  ;;  %497 = vmatmul.mubr.f32.gmra.mxu1 %v5063_v29 }
  0x8c   :  { %539 = vmatprep.subr.mxu0 %v208_v30  ;;  %652 = vmatprep.subr.mxu1 %v210_v31  ;;  %v5151_v30 = vld [vmem:[#allocation11 + $0x178] sm:$0xff]  ;;  %v5155_v31 = vld [vmem:[#allocation11 + $0x160] sm:$0xff] }
  0x8d   :  { %540 = vmatpush1.msra.mxu0 %v207_v32  ;;  %653 = vmatpush1.msra.mxu1 %v209_v33  ;;  %v5157_v32 = vld [vmem:[#allocation11 + $0x170] sm:$0xff]  ;;  %v5161_v33 = vld [vmem:[#allocation11 + $0x148] sm:$0xff] }
  0x8e   :  { %541 = vmatprep.subr.mxu0 %v200_v34  ;;  %654 = vmatprep.subr.mxu1 %v202_v35  ;;  %v5163_v34 = vld [vmem:[#allocation11 + $0x158] sm:$0xff]  ;;  %v5169_v35 = vld [vmem:[#allocation11 + $0x140] sm:$0xff] }
  0x8f   :  { %389 = vmatprep.mubr.f32.mxu0 %v7377_v0  ;;  %502 = vmatprep.mubr.f32.mxu1 %v7377_v0 }
  0x90   :  { %542 = vmatpush1.msra.mxu0 %v199_v36  ;;  %655 = vmatpush1.msra.mxu1 %v201_v37  ;;  %v5171_v36 = vld [vmem:[#allocation11 + $0x150] sm:$0xff]  ;;  %v5179_v37 = vld [vmem:[#allocation11 + $0x138] sm:$0xff] }
  0x91   :  { %390 = vmatmul.mubr.f32.gmra.mxu0 %v5069_v38  ;;  %503 = vmatmul.mubr.f32.gmra.mxu1 %v5069_v38 }
  0x92   :  { %543 = vmatprep.subr.mxu0 %v192_v39  ;;  %656 = vmatprep.subr.mxu1 %v194_v40  ;;  %v5183_v39 = vld [vmem:[#allocation11 + $0x120] sm:$0xff]  ;;  %v5185_v40 = vld [vmem:[#allocation11 + $0x130] sm:$0xff] }
  0x93   :  { %544 = vmatpush1.msra.mxu0 %v191_v41  ;;  %657 = vmatpush1.msra.mxu1 %v193_v42  ;;  %v5189_v41 = vld [vmem:[#allocation11 + $0x108] sm:$0xff]  ;;  %v5191_v42 = vld [vmem:[#allocation11 + $0x118] sm:$0xff] }
  0x94   :  { %545 = vmatprep.subr.mxu0 %v184_v43  ;;  %658 = vmatprep.subr.mxu1 %v186_v44  ;;  %v5197_v43 = vld [vmem:[#allocation11 + $0x100] sm:$0xff]  ;;  %v5199_v44 = vld [vmem:[#allocation11 + $0x110] sm:$0xff] }
  0x95   :  { %395 = vmatprep.mubr.f32.mxu0 %v7377_v0  ;;  %508 = vmatprep.mubr.f32.mxu1 %v7377_v0 }
  0x96   :  { %546 = vmatpush1.msra.mxu0 %v183_v45  ;;  %659 = vmatpush1.msra.mxu1 %v185_v46  ;;  %v5207_v45 = vld [vmem:[#allocation11 + $0xf8] sm:$0xff]  ;;  %v5211_v46 = vld [vmem:[#allocation11 + $0xe0] sm:$0xff] }
  0x97   :  { %396 = vmatmul.mubr.f32.gmra.mxu0 %v5075_v47  ;;  %509 = vmatmul.mubr.f32.gmra.mxu1 %v5075_v47 }
  0x98   :  { %547 = vmatprep.subr.mxu0 %v176_v48  ;;  %660 = vmatprep.subr.mxu1 %v178_v49  ;;  %v5213_v48 = vld [vmem:[#allocation11 + $0xf0] sm:$0xff]  ;;  %v5217_v49 = vld [vmem:[#allocation11 + $0xc8] sm:$0xff] }
  0x99   :  { %548 = vmatpush1.msra.mxu0 %v175_v50  ;;  %661 = vmatpush1.msra.mxu1 %v177_v51  ;;  %v5219_v50 = vld [vmem:[#allocation11 + $0xd8] sm:$0xff]  ;;  %v5225_v51 = vld [vmem:[#allocation11 + $0xc0] sm:$0xff] }
  0x9a   :  { %549 = vmatprep.subr.mxu0 %v168_v52  ;;  %662 = vmatprep.subr.mxu1 %v170_v53  ;;  %v5227_v52 = vld [vmem:[#allocation11 + $0xd0] sm:$0xff]  ;;  %v5235_v53 = vld [vmem:[#allocation11 + $0xb8] sm:$0xff] }
  0x9b   :  { %401 = vmatprep.mubr.f32.mxu0 %v7377_v0  ;;  %514 = vmatprep.mubr.f32.mxu1 %v7377_v0 }
  0x9c   :  { %550 = vmatpush1.msra.mxu0 %v167_v54  ;;  %663 = vmatpush1.msra.mxu1 %v169_v55  ;;  %v5239_v54 = vld [vmem:[#allocation11 + $0xa0] sm:$0xff]  ;;  %v5241_v55 = vld [vmem:[#allocation11 + $0xb0] sm:$0xff] }
  0x9d   :  { %402 = vmatmul.mubr.f32.gmra.mxu0 %v5081_v56  ;;  %515 = vmatmul.mubr.f32.gmra.mxu1 %v5081_v56 }
  0x9e   :  { %551 = vmatprep.subr.mxu0 %v160_v57  ;;  %664 = vmatprep.subr.mxu1 %v162_v58  ;;  %v5245_v57 = vld [vmem:[#allocation11 + $0x88] sm:$0xff]  ;;  %v5247_v58 = vld [vmem:[#allocation11 + $0x98] sm:$0xff] }
  0x9f   :  { %552 = vmatpush1.msra.mxu0 %v159_v59  ;;  %665 = vmatpush1.msra.mxu1 %v161_v60  ;;  %v5253_v59 = vld [vmem:[#allocation11 + $0x80] sm:$0xff]  ;;  %v5255_v60 = vld [vmem:[#allocation11 + $0x90] sm:$0xff] }
  0xa0   :  { %553 = vmatprep.subr.mxu0 %v152_v61  ;;  %666 = vmatprep.subr.mxu1 %v154_v62  ;;  %v5263_v61 = vld [vmem:[#allocation11 + $0x78] sm:$0xff]  ;;  %v5267_v62 = vld [vmem:[#allocation11 + $0x60] sm:$0xff] }
  0xa1   :  { %407 = vmatprep.mubr.f32.mxu0 %v7377_v0  ;;  %520 = vmatprep.mubr.f32.mxu1 %v7377_v0 }
  0xa2   :  { %554 = vmatpush1.msra.mxu0 %v151_v63  ;;  %667 = vmatpush1.msra.mxu1 %v153_v1  ;;  %v5269_v63 = vld [vmem:[#allocation11 + $0x70] sm:$0xff]  ;;  %v5273_v1 = vld [vmem:[#allocation11 + $0x48] sm:$0xff] }
  0xa3   :  { %408 = vmatmul.mubr.f32.gmra.mxu0 %v5087_v3  ;;  %521 = vmatmul.mubr.f32.gmra.mxu1 %v5087_v3  ;;  %7771 = vst [vmem:[#allocation23_spill] sm:$0xff] %v5273_v1 }
  0xa4   :  { %555 = vmatprep.subr.mxu0 %v144_v4  ;;  %668 = vmatprep.subr.mxu1 %v146_v5  ;;  %v5275_v4 = vld [vmem:[#allocation11 + $0x58] sm:$0xff]  ;;  %v5281_v5 = vld [vmem:[#allocation11 + $0x40] sm:$0xff] }
  0xa5   :  { %556 = vmatpush1.msra.mxu0 %v143_v6  ;;  %669 = vmatpush1.msra.mxu1 %v145_v7  ;;  %7772 = vst [vmem:[#allocation24_spill] sm:$0xff] %v5275_v4  ;;  %7773 = vst [vmem:[#allocation25_spill] sm:$0xff] %v5281_v5  ;;  %v5283_v6 = vld [vmem:[#allocation11 + $0x50] sm:$0xff]  ;;  %v5291_v7 = vld [vmem:[#allocation11 + $0x38] sm:$0xff] }
  0xa6   :  { %557 = vmatprep.subr.mxu0 %v136_v8  ;;  %670 = vmatprep.subr.mxu1 %v138_v9  ;;  %7774 = vst [vmem:[#allocation26_spill] sm:$0xff] %v5283_v6  ;;  %7776 = vst [vmem:[#allocation28_spill] sm:$0xff] %v5291_v7  ;;  %v5295_v8 = vld [vmem:[#allocation11 + $0x20] sm:$0xff]  ;;  %v5297_v9 = vld [vmem:[#allocation11 + $0x30] sm:$0xff] }
  0xa7   :  { %558 = vmatpush1.msra.mxu0 %v135_v10  ;;  %591 = vmatprep.mubr.f32.mxu0 %v7377_v0  ;;  %7777 = vst [vmem:[#allocation29_spill] sm:$0xff] %v5295_v8  ;;  %7778 = vst [vmem:[#allocation30_spill] sm:$0xff] %v5297_v9  ;;  %v5301_v10 = vld [vmem:[#allocation11 + $0x8] sm:$0xff] }
  0xa8   :  { %671 = vmatpush1.msra.mxu1 %v137_v12  ;;  %704 = vmatprep.mubr.f32.mxu1 %v7377_v0  ;;  %7779 = vst [vmem:[#allocation31_spill] sm:$0xff] %v5301_v10  ;;  %v5303_v12 = vld [vmem:[#allocation11 + $0x18] sm:$0xff] }
  0xa9   :  { %592 = vmatmul.mubr.f32.vlgmr.msra.gmra.mxu0 %v5047_v2  ;;  %705 = vmatmul.mubr.f32.vlgmr.msra.gmra.mxu1 %v5047_v2  ;;  %v5121_v2 = vld [vmem:[#allocation11 + $0x1a8] sm:$0xff]  ;;  %7780 = vst [vmem:[#allocation32_spill] sm:$0xff] %v5303_v12 }
  0xaa   :  { %949 = vmatprep.subr.mxu0 %v5094_v13  ;;  %1020 = vmatprep.subr.mxu1 %v5096_v14 }
  0xab   :  { %950 = vmatpush1.msra.mxu0 %v5099_v15  ;;  %1021 = vmatpush1.msra.mxu1 %v5101_v16 }
  0xac   :  { %951 = vmatprep.subr.mxu0 %v5105_v17  ;;  %1022 = vmatprep.subr.mxu1 %v5107_v18 }
  0xad   :  { %597 = vmatprep.mubr.f32.mxu0 %v7377_v0  ;;  %710 = vmatprep.mubr.f32.mxu1 %v7377_v0 }
  0xae   :  { %952 = vmatpush1.msra.mxu0 %v5113_v19  ;;  %1023 = vmatpush1.msra.mxu1 %v5115_v21 }
  0xaf   :  { %598 = vmatmul.mubr.f32.gmra.mxu0 %v5051_v11  ;;  %711 = vmatmul.mubr.f32.gmra.mxu1 %v5051_v11  ;;  %v5149_v11 = vld [vmem:[#allocation11 + $0x168] sm:$0xff] }
  0xb0   :  { %953 = vmatprep.subr.mxu0 %v5121_v2  ;;  %1024 = vmatprep.subr.mxu1 %v5123_v22 }
  0xb1   :  { %954 = vmatpush1.msra.mxu0 %v5127_v23  ;;  %1025 = vmatpush1.msra.mxu1 %v5129_v24 }
  0xb2   :  { %955 = vmatprep.subr.mxu0 %v5133_v25  ;;  %1026 = vmatprep.subr.mxu1 %v5135_v26 }
  0xb3   :  { %603 = vmatprep.mubr.f32.mxu0 %v7377_v0  ;;  %716 = vmatprep.mubr.f32.mxu1 %v7377_v0 }
  0xb4   :  { %956 = vmatpush1.msra.mxu0 %v5141_v27  ;;  %1027 = vmatpush1.msra.mxu1 %v5143_v28 }
  0xb5   :  { %604 = vmatmul.mubr.f32.gmra.mxu0 %v5057_v20  ;;  %717 = vmatmul.mubr.f32.gmra.mxu1 %v5057_v20  ;;  %v5177_v20 = vld [vmem:[#allocation11 + $0x128] sm:$0xff] }
  0xb6   :  { %957 = vmatprep.subr.mxu0 %v5149_v11  ;;  %1028 = vmatprep.subr.mxu1 %v5151_v30 }
  0xb7   :  { %958 = vmatpush1.msra.mxu0 %v5155_v31  ;;  %1029 = vmatpush1.msra.mxu1 %v5157_v32 }
  0xb8   :  { %959 = vmatprep.subr.mxu0 %v5161_v33  ;;  %1030 = vmatprep.subr.mxu1 %v5163_v34 }
  0xb9   :  { %609 = vmatprep.mubr.f32.mxu0 %v7377_v0  ;;  %722 = vmatprep.mubr.f32.mxu1 %v7377_v0 }
  0xba   :  { %960 = vmatpush1.msra.mxu0 %v5169_v35  ;;  %1031 = vmatpush1.msra.mxu1 %v5171_v36 }
  0xbb   :  { %610 = vmatmul.mubr.f32.gmra.mxu0 %v5063_v29  ;;  %723 = vmatmul.mubr.f32.gmra.mxu1 %v5063_v29  ;;  %v5205_v29 = vld [vmem:[#allocation11 + $0xe8] sm:$0xff] }
  0xbc   :  { %961 = vmatprep.subr.mxu0 %v5177_v20  ;;  %1032 = vmatprep.subr.mxu1 %v5179_v37 }
  0xbd   :  { %962 = vmatpush1.msra.mxu0 %v5183_v39  ;;  %1033 = vmatpush1.msra.mxu1 %v5185_v40 }
  0xbe   :  { %963 = vmatprep.subr.mxu0 %v5189_v41  ;;  %1034 = vmatprep.subr.mxu1 %v5191_v42 }
  0xbf   :  { %615 = vmatprep.mubr.f32.mxu0 %v7377_v0  ;;  %728 = vmatprep.mubr.f32.mxu1 %v7377_v0 }
  0xc0   :  { %964 = vmatpush1.msra.mxu0 %v5197_v43  ;;  %1035 = vmatpush1.msra.mxu1 %v5199_v44 }
  0xc1   :  { %616 = vmatmul.mubr.f32.gmra.mxu0 %v5069_v38  ;;  %729 = vmatmul.mubr.f32.gmra.mxu1 %v5069_v38  ;;  %v5233_v38 = vld [vmem:[#allocation11 + $0xa8] sm:$0xff] }
  0xc2   :  { %965 = vmatprep.subr.mxu0 %v5205_v29  ;;  %1036 = vmatprep.subr.mxu1 %v5207_v45 }
  0xc3   :  { %966 = vmatpush1.msra.mxu0 %v5211_v46  ;;  %1037 = vmatpush1.msra.mxu1 %v5213_v48 }
  0xc4   :  { %967 = vmatprep.subr.mxu0 %v5217_v49  ;;  %1038 = vmatprep.subr.mxu1 %v5219_v50 }
  0xc5   :  { %621 = vmatprep.mubr.f32.mxu0 %v7377_v0  ;;  %734 = vmatprep.mubr.f32.mxu1 %v7377_v0 }
  0xc6   :  { %968 = vmatpush1.msra.mxu0 %v5225_v51  ;;  %1039 = vmatpush1.msra.mxu1 %v5227_v52 }
  0xc7   :  { %622 = vmatmul.mubr.f32.gmra.mxu0 %v5075_v47  ;;  %735 = vmatmul.mubr.f32.gmra.mxu1 %v5075_v47  ;;  %v5261_v47 = vld [vmem:[#allocation11 + $0x68] sm:$0xff] }
  0xc8   :  { %969 = vmatprep.subr.mxu0 %v5233_v38  ;;  %1040 = vmatprep.subr.mxu1 %v5235_v53 }
  0xc9   :  { %970 = vmatpush1.msra.mxu0 %v5239_v54  ;;  %1041 = vmatpush1.msra.mxu1 %v5241_v55 }
  0xca   :  { %971 = vmatprep.subr.mxu0 %v5245_v57  ;;  %1042 = vmatprep.subr.mxu1 %v5247_v58 }
  0xcb   :  { %627 = vmatprep.mubr.f32.mxu0 %v7377_v0  ;;  %740 = vmatprep.mubr.f32.mxu1 %v7377_v0 }
  0xcc   :  { %972 = vmatpush1.msra.mxu0 %v5253_v59  ;;  %1043 = vmatpush1.msra.mxu1 %v5255_v60 }
  0xcd   :  { %628 = vmatmul.mubr.f32.gmra.mxu0 %v5081_v56  ;;  %741 = vmatmul.mubr.f32.gmra.mxu1 %v5081_v56  ;;  %v5289_v56 = vld [vmem:[#allocation11 + $0x28] sm:$0xff] }
  0xce   :  { %973 = vmatprep.subr.mxu0 %v5261_v47  ;;  %1044 = vmatprep.subr.mxu1 %v5263_v61  ;;  %7775 = vst [vmem:[#allocation27_spill] sm:$0xff] %v5289_v56 }
  0xcf   :  { %974 = vmatpush1.msra.mxu0 %v5267_v62  ;;  %1045 = vmatpush1.msra.mxu1 %v5269_v63 }
  0xd0   :  { %975 = vmatprep.subr.mxu0 %v5273_v1  ;;  %1046 = vmatprep.subr.mxu1 %v5275_v4  ;;  %v5343_v4 = vld [vmem:[#allocation13 + $0x1b8] sm:$0xff]  ;;  %v5347_v1 = vld [vmem:[#allocation13 + $0x1a0] sm:$0xff] }
  0xd1   :  { %633 = vmatprep.mubr.f32.mxu0 %v7377_v0  ;;  %746 = vmatprep.mubr.f32.mxu1 %v7377_v0  ;;  %v5307_v0 = vld [vmem:[#allocation11] sm:$0xff]  ;;  %7793 = vst [vmem:[#allocation44_spill] sm:$0xff] %v5343_v4  ;;  %7794 = vst [vmem:[#allocation45_spill] sm:$0xff] %v5347_v1 }
  0xd2   :  { %976 = vmatpush1.msra.mxu0 %v5281_v5  ;;  %1047 = vmatpush1.msra.mxu1 %v5283_v6  ;;  %7781 = vst [vmem:[#allocation33_spill] sm:$0xff] %v5307_v0  ;;  %v5311_v6 = vld [vmem:[#allocation11 + $0x10] sm:$0xff]  ;;  %v5317_v5 = vld [vmem:[#allocation13 + $0x1e8] sm:$0xff] }
  0xd3   :  { %634 = vmatmul.mubr.f32.gmra.mxu0 %v5087_v3  ;;  %747 = vmatmul.mubr.f32.gmra.mxu1 %v5087_v3  ;;  %7782 = vst [vmem:[#allocation34_spill] sm:$0xff] %v5311_v6  ;;  %v7783_v3 = vmov 0.0   ;;  %7784 = vst [vmem:[#allocation35_spill] sm:$0xff] %v5317_v5 }
  0xd4   :  { %977 = vmatprep.subr.mxu0 %v5289_v56  ;;  %1048 = vmatprep.subr.mxu1 %v5291_v7  ;;  %v5319_v56 = vld [vmem:[#allocation13 + $0x1f8] sm:$0xff]  ;;  %v5341_v7 = vld [vmem:[#allocation13 + $0x1a8] sm:$0xff] }
  0xd5   :  { %978 = vmatpush1.msra.mxu0 %v5295_v8  ;;  %1049 = vmatpush1.msra.mxu1 %v5297_v9  ;;  %7785 = vst [vmem:[#allocation36_spill] sm:$0xff] %v5319_v56  ;;  %v5323_v8 = vld [vmem:[#allocation13 + $0x1e0] sm:$0xff]  ;;  %v5325_v9 = vld [vmem:[#allocation13 + $0x1f0] sm:$0xff]  ;;  %7792 = vst [vmem:[#allocation43_spill] sm:$0xff] %v5341_v7 }
  0xd6   :  { %979 = vmatprep.subr.mxu0 %v5301_v10  ;;  %1050 = vmatprep.subr.mxu1 %v5303_v12  ;;  %7786 = vst [vmem:[#allocation37_spill] sm:$0xff] %v5323_v8  ;;  %7787 = vst [vmem:[#allocation38_spill] sm:$0xff] %v5325_v9  ;;  %v5329_v12 = vld [vmem:[#allocation13 + $0x1c8] sm:$0xff]  ;;  %v5335_v10 = vld [vmem:[#allocation13 + $0x1c0] sm:$0xff] }
  0xd7   :  { %980 = vmatpush1.msra.mxu0 %v5307_v0  ;;  %1013 = vmatprep.mubr.f32.mxu0 %v7783_v3  ;;  %7788 = vst [vmem:[#allocation39_spill] sm:$0xff] %v5329_v12  ;;  %v5331_v0 = vld [vmem:[#allocation13 + $0x1d8] sm:$0xff]  ;;  %7790 = vst [vmem:[#allocation41_spill] sm:$0xff] %v5335_v10 }
  0xd8   :  { %1051 = vmatpush1.msra.mxu1 %v5311_v6  ;;  %1084 = vmatprep.mubr.f32.mxu1 %v7783_v3  ;;  %7789 = vst [vmem:[#allocation40_spill] sm:$0xff] %v5331_v0  ;;  %v5337_v6 = vld [vmem:[#allocation13 + $0x1d0] sm:$0xff] }
  0xd9   :  { %1014 = vmatmul.mubr.f32.vlgmr.msra.gmra.mxu0 %v7783_v3  ;;  %1085 = vmatmul.mubr.f32.vlgmr.msra.gmra.mxu1 %v7783_v3  ;;  %7791 = vst [vmem:[#allocation42_spill] sm:$0xff] %v5337_v6 }
  0xda   :  { %1100 = vmatprep.subr.mxu0 %v5317_v5  ;;  %1171 = vmatprep.subr.mxu1 %v5319_v56  ;;  %v5349_v5 = vld [vmem:[#allocation13 + $0x1b0] sm:$0xff]  ;;  %v5353_v56 = vld [vmem:[#allocation13 + $0x188] sm:$0xff] }
  0xdb   :  { %1101 = vmatpush1.msra.mxu0 %v5323_v8  ;;  %1172 = vmatpush1.msra.mxu1 %v5325_v9  ;;  %7795 = vst [vmem:[#allocation46_spill] sm:$0xff] %v5349_v5  ;;  %7796 = vst [vmem:[#allocation47_spill] sm:$0xff] %v5353_v56  ;;  %v5355_v8 = vld [vmem:[#allocation13 + $0x198] sm:$0xff]  ;;  %v5359_v9 = vld [vmem:[#allocation13 + $0x180] sm:$0xff] }
  0xdc   :  { %1102 = vmatprep.subr.mxu0 %v5329_v12  ;;  %1173 = vmatprep.subr.mxu1 %v5331_v0  ;;  %7797 = vst [vmem:[#allocation48_spill] sm:$0xff] %v5355_v8  ;;  %7798 = vst [vmem:[#allocation49_spill] sm:$0xff] %v5359_v9  ;;  %v5361_v12 = vld [vmem:[#allocation13 + $0x190] sm:$0xff]  ;;  %v5365_v0 = vld [vmem:[#allocation13 + $0x168] sm:$0xff] }
  0xdd   :  { %1103 = vmatpush1.msra.mxu0 %v5335_v10  ;;  %1174 = vmatpush1.msra.mxu1 %v5337_v6  ;;  %7799 = vst [vmem:[#allocation50_spill] sm:$0xff] %v5361_v12  ;;  %7800 = vst [vmem:[#allocation51_spill] sm:$0xff] %v5365_v0  ;;  %v5367_v10 = vld [vmem:[#allocation13 + $0x178] sm:$0xff]  ;;  %v5371_v6 = vld [vmem:[#allocation13 + $0x160] sm:$0xff] }
  0xde   :  { %1104 = vmatprep.subr.mxu0 %v5341_v7  ;;  %1175 = vmatprep.subr.mxu1 %v5343_v4  ;;  %7801 = vst [vmem:[#allocation52_spill] sm:$0xff] %v5367_v10  ;;  %7802 = vst [vmem:[#allocation53_spill] sm:$0xff] %v5371_v6  ;;  %v5373_v7 = vld [vmem:[#allocation13 + $0x170] sm:$0xff]  ;;  %v5377_v4 = vld [vmem:[#allocation13 + $0x148] sm:$0xff] }
  0xdf   :  { %1105 = vmatpush1.msra.mxu0 %v5347_v1  ;;  %1176 = vmatpush1.msra.mxu1 %v5349_v5  ;;  %7803 = vst [vmem:[#allocation54_spill] sm:$0xff] %v5373_v7  ;;  %7804 = vst [vmem:[#allocation55_spill] sm:$0xff] %v5377_v4  ;;  %v5379_v1 = vld [vmem:[#allocation13 + $0x158] sm:$0xff]  ;;  %v5383_v5 = vld [vmem:[#allocation13 + $0x140] sm:$0xff] }
  0xe0   :  { %1106 = vmatprep.subr.mxu0 %v5353_v56  ;;  %1177 = vmatprep.subr.mxu1 %v5355_v8  ;;  %7805 = vst [vmem:[#allocation56_spill] sm:$0xff] %v5379_v1  ;;  %7806 = vst [vmem:[#allocation57_spill] sm:$0xff] %v5383_v5  ;;  %v5385_v56 = vld [vmem:[#allocation13 + $0x150] sm:$0xff]  ;;  %v5389_v8 = vld [vmem:[#allocation13 + $0x128] sm:$0xff] }
  0xe1   :  { %1107 = vmatpush1.msra.mxu0 %v5359_v9  ;;  %1178 = vmatpush1.msra.mxu1 %v5361_v12  ;;  %7807 = vst [vmem:[#allocation58_spill] sm:$0xff] %v5385_v56  ;;  %7808 = vst [vmem:[#allocation59_spill] sm:$0xff] %v5389_v8  ;;  %v5391_v9 = vld [vmem:[#allocation13 + $0x138] sm:$0xff]  ;;  %v5395_v12 = vld [vmem:[#allocation13 + $0x120] sm:$0xff] }
  0xe2   :  { %1108 = vmatprep.subr.mxu0 %v5365_v0  ;;  %1179 = vmatprep.subr.mxu1 %v5367_v10  ;;  %7809 = vst [vmem:[#allocation60_spill] sm:$0xff] %v5391_v9  ;;  %7810 = vst [vmem:[#allocation61_spill] sm:$0xff] %v5395_v12  ;;  %v5397_v0 = vld [vmem:[#allocation13 + $0x130] sm:$0xff]  ;;  %v5401_v10 = vld [vmem:[#allocation13 + $0x108] sm:$0xff] }
  0xe3   :  { %1109 = vmatpush1.msra.mxu0 %v5371_v6  ;;  %1180 = vmatpush1.msra.mxu1 %v5373_v7  ;;  %7811 = vst [vmem:[#allocation62_spill] sm:$0xff] %v5397_v0  ;;  %7812 = vst [vmem:[#allocation63_spill] sm:$0xff] %v5401_v10  ;;  %v5403_v6 = vld [vmem:[#allocation13 + $0x118] sm:$0xff]  ;;  %v5407_v7 = vld [vmem:[#allocation13 + $0x100] sm:$0xff] }
  0xe4   :  { %1110 = vmatprep.subr.mxu0 %v5377_v4  ;;  %1181 = vmatprep.subr.mxu1 %v5379_v1  ;;  %7813 = vst [vmem:[#allocation64_spill] sm:$0xff] %v5403_v6  ;;  %7814 = vst [vmem:[#allocation65_spill] sm:$0xff] %v5407_v7  ;;  %v5409_v4 = vld [vmem:[#allocation13 + $0x110] sm:$0xff]  ;;  %v5413_v1 = vld [vmem:[#allocation13 + $0xe8] sm:$0xff] }
  0xe5   :  { %1111 = vmatpush1.msra.mxu0 %v5383_v5  ;;  %1182 = vmatpush1.msra.mxu1 %v5385_v56  ;;  %7815 = vst [vmem:[#allocation66_spill] sm:$0xff] %v5409_v4  ;;  %7816 = vst [vmem:[#allocation67_spill] sm:$0xff] %v5413_v1  ;;  %v5415_v5 = vld [vmem:[#allocation13 + $0xf8] sm:$0xff]  ;;  %v5419_v56 = vld [vmem:[#allocation13 + $0xe0] sm:$0xff] }
  0xe6   :  { %1112 = vmatprep.subr.mxu0 %v5389_v8  ;;  %1183 = vmatprep.subr.mxu1 %v5391_v9  ;;  %7817 = vst [vmem:[#allocation68_spill] sm:$0xff] %v5415_v5  ;;  %7818 = vst [vmem:[#allocation69_spill] sm:$0xff] %v5419_v56  ;;  %v5421_v8 = vld [vmem:[#allocation13 + $0xf0] sm:$0xff]  ;;  %v5425_v9 = vld [vmem:[#allocation13 + $0xc8] sm:$0xff] }
  0xe7   :  { %1113 = vmatpush1.msra.mxu0 %v5395_v12  ;;  %1184 = vmatpush1.msra.mxu1 %v5397_v0  ;;  %7819 = vst [vmem:[#allocation70_spill] sm:$0xff] %v5421_v8  ;;  %7820 = vst [vmem:[#allocation71_spill] sm:$0xff] %v5425_v9  ;;  %v5427_v12 = vld [vmem:[#allocation13 + $0xd8] sm:$0xff]  ;;  %v5431_v0 = vld [vmem:[#allocation13 + $0xc0] sm:$0xff] }
  0xe8   :  { %1114 = vmatprep.subr.mxu0 %v5401_v10  ;;  %1185 = vmatprep.subr.mxu1 %v5403_v6  ;;  %7821 = vst [vmem:[#allocation72_spill] sm:$0xff] %v5427_v12  ;;  %7822 = vst [vmem:[#allocation73_spill] sm:$0xff] %v5431_v0  ;;  %v5433_v10 = vld [vmem:[#allocation13 + $0xd0] sm:$0xff]  ;;  %v5437_v6 = vld [vmem:[#allocation13 + $0xa8] sm:$0xff] }
  0xe9   :  { %1115 = vmatpush1.msra.mxu0 %v5407_v7  ;;  %1186 = vmatpush1.msra.mxu1 %v5409_v4  ;;  %7823 = vst [vmem:[#allocation74_spill] sm:$0xff] %v5433_v10  ;;  %7824 = vst [vmem:[#allocation75_spill] sm:$0xff] %v5437_v6  ;;  %v5439_v7 = vld [vmem:[#allocation13 + $0xb8] sm:$0xff]  ;;  %v5443_v4 = vld [vmem:[#allocation13 + $0xa0] sm:$0xff] }
  0xea   :  { %1116 = vmatprep.subr.mxu0 %v5413_v1  ;;  %1187 = vmatprep.subr.mxu1 %v5415_v5  ;;  %7825 = vst [vmem:[#allocation76_spill] sm:$0xff] %v5439_v7  ;;  %7826 = vst [vmem:[#allocation77_spill] sm:$0xff] %v5443_v4  ;;  %v5445_v1 = vld [vmem:[#allocation13 + $0xb0] sm:$0xff]  ;;  %v5449_v5 = vld [vmem:[#allocation13 + $0x88] sm:$0xff] }
  0xeb   :  { %1117 = vmatpush1.msra.mxu0 %v5419_v56  ;;  %1188 = vmatpush1.msra.mxu1 %v5421_v8  ;;  %7827 = vst [vmem:[#allocation78_spill] sm:$0xff] %v5445_v1  ;;  %7828 = vst [vmem:[#allocation79_spill] sm:$0xff] %v5449_v5  ;;  %v5451_v56 = vld [vmem:[#allocation13 + $0x98] sm:$0xff]  ;;  %v5455_v8 = vld [vmem:[#allocation13 + $0x80] sm:$0xff] }
  0xec   :  { %1118 = vmatprep.subr.mxu0 %v5425_v9  ;;  %1189 = vmatprep.subr.mxu1 %v5427_v12  ;;  %7829 = vst [vmem:[#allocation80_spill] sm:$0xff] %v5451_v56  ;;  %7830 = vst [vmem:[#allocation81_spill] sm:$0xff] %v5455_v8  ;;  %v5457_v9 = vld [vmem:[#allocation13 + $0x90] sm:$0xff]  ;;  %v5461_v12 = vld [vmem:[#allocation13 + $0x68] sm:$0xff] }
  0xed   :  { %1119 = vmatpush1.msra.mxu0 %v5431_v0  ;;  %1190 = vmatpush1.msra.mxu1 %v5433_v10  ;;  %7831 = vst [vmem:[#allocation82_spill] sm:$0xff] %v5457_v9  ;;  %7832 = vst [vmem:[#allocation83_spill] sm:$0xff] %v5461_v12  ;;  %v5463_v0 = vld [vmem:[#allocation13 + $0x78] sm:$0xff]  ;;  %v5467_v10 = vld [vmem:[#allocation13 + $0x60] sm:$0xff] }
  0xee   :  { %1120 = vmatprep.subr.mxu0 %v5437_v6  ;;  %1191 = vmatprep.subr.mxu1 %v5439_v7  ;;  %7833 = vst [vmem:[#allocation84_spill] sm:$0xff] %v5463_v0  ;;  %7834 = vst [vmem:[#allocation85_spill] sm:$0xff] %v5467_v10  ;;  %v5469_v6 = vld [vmem:[#allocation13 + $0x70] sm:$0xff]  ;;  %v5473_v7 = vld [vmem:[#allocation13 + $0x48] sm:$0xff] }
  0xef   :  { %1121 = vmatpush1.msra.mxu0 %v5443_v4  ;;  %1192 = vmatpush1.msra.mxu1 %v5445_v1  ;;  %7835 = vst [vmem:[#allocation86_spill] sm:$0xff] %v5469_v6  ;;  %v5475_v4 = vld [vmem:[#allocation13 + $0x58] sm:$0xff]  ;;  %v5479_v1 = vld [vmem:[#allocation13 + $0x40] sm:$0xff] }
  0xf0   :  { %1122 = vmatprep.subr.mxu0 %v5449_v5  ;;  %1193 = vmatprep.subr.mxu1 %v5451_v56  ;;  %7836 = vst [vmem:[#allocation87_spill] sm:$0xff] %v5475_v4  ;;  %v5481_v5 = vld [vmem:[#allocation13 + $0x50] sm:$0xff]  ;;  %v5485_v56 = vld [vmem:[#allocation13 + $0x28] sm:$0xff] }
  0xf1   :  { %1123 = vmatpush1.msra.mxu0 %v5455_v8  ;;  %1194 = vmatpush1.msra.mxu1 %v5457_v9  ;;  %v5487_v8 = vld [vmem:[#allocation13 + $0x38] sm:$0xff]  ;;  %v5491_v9 = vld [vmem:[#allocation13 + $0x20] sm:$0xff] }
  0xf2   :  { %1124 = vmatprep.subr.mxu0 %v5461_v12  ;;  %1195 = vmatprep.subr.mxu1 %v5463_v0  ;;  %v5493_v12 = vld [vmem:[#allocation13 + $0x30] sm:$0xff]  ;;  %v5497_v0 = vld [vmem:[#allocation13 + $0x8] sm:$0xff] }
  0xf3   :  { %1125 = vmatpush1.msra.mxu0 %v5467_v10  ;;  %1196 = vmatpush1.msra.mxu1 %v5469_v6  ;;  %v5499_v10 = vld [vmem:[#allocation13 + $0x18] sm:$0xff]  ;;  %v5503_v6 = vld [vmem:[#allocation13] sm:$0xff] }
  0xf4   :  { %1126 = vmatprep.subr.mxu0 %v5473_v7  ;;  %1197 = vmatprep.subr.mxu1 %v5475_v4  ;;  %v5507_v4 = vld [vmem:[#allocation13 + $0x10] sm:$0xff] }
  0xf5   :  { %1127 = vmatpush1.msra.mxu0 %v5479_v1  ;;  %1198 = vmatpush1.msra.mxu1 %v5481_v5 }
  0xf6   :  { %1128 = vmatprep.subr.mxu0 %v5485_v56  ;;  %1199 = vmatprep.subr.mxu1 %v5487_v8 }
  0xf7   :  { %1129 = vmatpush1.msra.mxu0 %v5491_v9  ;;  %1200 = vmatpush1.msra.mxu1 %v5493_v12 }
  0xf8   :  { %1130 = vmatprep.subr.mxu0 %v5497_v0  ;;  %1201 = vmatprep.subr.mxu1 %v5499_v10 }
  0xf9   :  { %1131 = vmatpush1.msra.mxu0 %v5503_v6  ;;  %1164 = vmatprep.mubr.f32.mxu0 %v7783_v3 }
  0xfa   :  { %1202 = vmatpush1.msra.mxu1 %v5507_v4  ;;  %1235 = vmatprep.mubr.f32.mxu1 %v7783_v3 }
  0xfb   :  { %1165 = vmatmul.mubr.f32.vlgmr.msra.gmra.mxu0 %v7783_v3  ;;  %1236 = vmatmul.mubr.f32.vlgmr.msra.gmra.mxu1 %v7783_v3 }
  0xfc   :  { %1302 = vmatprep.subr.mxu0 %v5094_v13  ;;  %1373 = vmatprep.subr.mxu1 %v5096_v14  ;;  %v7837_v13 = vld [vmem:[#allocation23_spill] sm:$0xff]  ;;  %v7838_v14 = vld [vmem:[#allocation24_spill] sm:$0xff] }
  0xfd   :  { %1303 = vmatpush1.msra.mxu0 %v5099_v15  ;;  %1374 = vmatpush1.msra.mxu1 %v5101_v16  ;;  %v7839_v15 = vld [vmem:[#allocation25_spill] sm:$0xff]  ;;  %v7840_v16 = vld [vmem:[#allocation26_spill] sm:$0xff] }
  0xfe   :  { %1304 = vmatprep.subr.mxu0 %v5105_v17  ;;  %1375 = vmatprep.subr.mxu1 %v5107_v18  ;;  %v7841_v17 = vld [vmem:[#allocation27_spill] sm:$0xff]  ;;  %v7842_v18 = vld [vmem:[#allocation28_spill] sm:$0xff] }
  0xff   :  { %1305 = vmatpush1.msra.mxu0 %v5113_v19  ;;  %1376 = vmatpush1.msra.mxu1 %v5115_v21  ;;  %v7843_v19 = vld [vmem:[#allocation29_spill] sm:$0xff]  ;;  %v7844_v21 = vld [vmem:[#allocation30_spill] sm:$0xff] }
 0x100   :  { %1306 = vmatprep.subr.mxu0 %v5121_v2  ;;  %1377 = vmatprep.subr.mxu1 %v5123_v22  ;;  %v7845_v2 = vld [vmem:[#allocation31_spill] sm:$0xff]  ;;  %v7846_v22 = vld [vmem:[#allocation32_spill] sm:$0xff] }
 0x101   :  { %1307 = vmatpush1.msra.mxu0 %v5127_v23  ;;  %1378 = vmatpush1.msra.mxu1 %v5129_v24  ;;  %v7847_v23 = vld [vmem:[#allocation33_spill] sm:$0xff]  ;;  %v7848_v24 = vld [vmem:[#allocation34_spill] sm:$0xff] }
 0x102   :  { %1308 = vmatprep.subr.mxu0 %v5133_v25  ;;  %1379 = vmatprep.subr.mxu1 %v5135_v26  ;;  %v7849_v25 = vld [vmem:[#allocation35_spill] sm:$0xff]  ;;  %v7850_v26 = vld [vmem:[#allocation36_spill] sm:$0xff] }
 0x103   :  { %1309 = vmatpush1.msra.mxu0 %v5141_v27  ;;  %1380 = vmatpush1.msra.mxu1 %v5143_v28  ;;  %v261_v27 = vlaneseq }
 0x104   :  { %1310 = vmatprep.subr.mxu0 %v5149_v11  ;;  %1381 = vmatprep.subr.mxu1 %v5151_v30 }
 0x105   :  { %1311 = vmatpush1.msra.mxu0 %v5155_v31  ;;  %1382 = vmatpush1.msra.mxu1 %v5157_v32  ;;  %v5585_v28 = vshrl.u32 %v261_v27, 7 }
 0x106   :  { %1312 = vmatprep.subr.mxu0 %v5161_v33  ;;  %1383 = vmatprep.subr.mxu1 %v5163_v34  ;;  %v5593_v33 = vld [vmem:[#allocation10] sm:$0xff] }
 0x107   :  { %1313 = vmatpush1.msra.mxu0 %v5169_v35  ;;  %1384 = vmatpush1.msra.mxu1 %v5171_v36  ;;  %v263_v31 = vsub.s32 0, %v5585_v28  ;;  %v271_v32 = vsub.s32 2, %v5585_v28  ;;  %v267_v36 = vsub.s32 1, %v5585_v28 }
 0x108   :  { %1314 = vmatprep.subr.mxu0 %v5177_v20  ;;  %1385 = vmatprep.subr.mxu1 %v5179_v37  ;;  %v275_v20 = vsub.s32 3, %v5585_v28 }
 0x109   :  { %1315 = vmatpush1.msra.mxu0 %v5183_v39  ;;  %1386 = vmatpush1.msra.mxu1 %v5185_v40  ;;  %v5602_v37 = vrot.slane %v5593_v33, %v263_v31  ;;  %v5605_v39 = vrot.slane %v5593_v33, %v271_v32 }
 0x10a   :  { %1316 = vmatprep.subr.mxu0 %v5189_v41  ;;  %1387 = vmatprep.subr.mxu1 %v5191_v42  ;;  %v5608_v42 = vrot.slane %v5593_v33, %v267_v36 }
 0x10b   :  { %1317 = vmatpush1.msra.mxu0 %v5197_v43  ;;  %1388 = vmatpush1.msra.mxu1 %v5199_v44  ;;  %v5611_v43 = vrot.slane %v5593_v33, %v275_v20 }
 0x10c   :  { %1318 = vmatprep.subr.mxu0 %v5205_v29  ;;  %1389 = vmatprep.subr.mxu1 %v5207_v45 }
 0x10d   :  { %1319 = vmatpush1.msra.mxu0 %v5211_v46  ;;  %1390 = vmatpush1.msra.mxu1 %v5213_v48 }
 0x10e   :  { %1320 = vmatprep.subr.mxu0 %v5217_v49  ;;  %1391 = vmatprep.subr.mxu1 %v5219_v50 }
 0x10f   :  { %1321 = vmatpush1.msra.mxu0 %v5225_v51  ;;  %1392 = vmatpush1.msra.mxu1 %v5227_v52 }
 0x110   :  { %1322 = vmatprep.subr.mxu0 %v5233_v38  ;;  %1393 = vmatprep.subr.mxu1 %v5235_v53 }
 0x111   :  { %1323 = vmatpush1.msra.mxu0 %v5239_v54  ;;  %1394 = vmatpush1.msra.mxu1 %v5241_v55 }
 0x112   :  { %1324 = vmatprep.subr.mxu0 %v5245_v57  ;;  %1395 = vmatprep.subr.mxu1 %v5247_v58 }
 0x113   :  { %1325 = vmatpush1.msra.mxu0 %v5253_v59  ;;  %1396 = vmatpush1.msra.mxu1 %v5255_v60 }
 0x114   :  { %1326 = vmatprep.subr.mxu0 %v5261_v47  ;;  %1397 = vmatprep.subr.mxu1 %v5263_v61 }
 0x115   :  { %1327 = vmatpush1.msra.mxu0 %v5267_v62  ;;  %1398 = vmatpush1.msra.mxu1 %v5269_v63 }
 0x116   :  { %1328 = vmatprep.subr.mxu0 %v7837_v13  ;;  %1399 = vmatprep.subr.mxu1 %v7838_v14 }
 0x117   :  { %1329 = vmatpush1.msra.mxu0 %v7839_v15  ;;  %1400 = vmatpush1.msra.mxu1 %v7840_v16 }
 0x118   :  { %1330 = vmatprep.subr.mxu0 %v7841_v17  ;;  %1401 = vmatprep.subr.mxu1 %v7842_v18 }
 0x119   :  { %1331 = vmatpush1.msra.mxu0 %v7843_v19  ;;  %1402 = vmatpush1.msra.mxu1 %v7844_v21 }
 0x11a   :  { %1332 = vmatprep.subr.mxu0 %v7845_v2  ;;  %1403 = vmatprep.subr.mxu1 %v7846_v22 }
 0x11b   :  { %1333 = vmatpush1.msra.mxu0 %v7847_v23  ;;  %1366 = vmatprep.mubr.f32.mxu0 %v7783_v3 }
 0x11c   :  { %1404 = vmatpush1.msra.mxu1 %v7848_v24  ;;  %1437 = vmatprep.mubr.f32.mxu1 %v7783_v3 }
 0x11d   :  { %1453 = vmatprep.subr.mxu0 %v7849_v25  ;;  %1524 = vmatprep.subr.mxu1 %v7850_v26 }
 0x139   :  { %v5587_v11 = vpop.f32.mrf.mxu0  ;;  %v5589_v30 = vpop.f32.mrf.mxu1 }
 0x13b   :  { %v5595_v34 = vpop.f32.mrf.mxu0  ;;  %v5597_v35 = vpop.f32.mrf.mxu1 }
 0x13f   :  { %v373_v40 = vpop.f32.mrf.mxu0  ;;  %v486_v41 = vpop.f32.mrf.mxu1 }
 0x140   :  { %v5614_v44 = vadd.f32 %v373_v40, %v5602_v37  ;;  %v5617_v29 = vadd.f32 %v486_v41, %v5605_v39 }
 0x141   :  { %v375_v45 = vpop.f32.mrf.mxu0  ;;  %v488_v46 = vpop.f32.mrf.mxu1 }
 0x142   :  { %v5620_v48 = vadd.f32 %v375_v45, %v5608_v42  ;;  %v5623_v49 = vadd.f32 %v488_v46, %v5611_v43 }
 0x145   :  { %v379_v50 = vpop.f32.mrf.mxu0  ;;  %v492_v51 = vpop.f32.mrf.mxu1 }
 0x146   :  { %v5626_v52 = vadd.f32 %v379_v50, %v5602_v37  ;;  %v5629_v38 = vadd.f32 %v492_v51, %v5605_v39 }
 0x147   :  { %v381_v53 = vpop.f32.mrf.mxu0  ;;  %v494_v54 = vpop.f32.mrf.mxu1 }
 0x148   :  { %7851 = vst [vmem:[#allocation23_spill] sm:$0xff] %v5626_v52  ;;  %7852 = vst [vmem:[#allocation24_spill] sm:$0xff] %v5629_v38  ;;  %v5632_v55 = vadd.f32 %v381_v53, %v5608_v42  ;;  %v5635_v57 = vadd.f32 %v494_v54, %v5611_v43  ;;  %v279_v53 = vsub.s32 4, %v5585_v28  ;;  %v287_v54 = vsub.s32 6, %v5585_v28  ;;  %v6034_v38 = vld [vmem:[#allocation11 + $0x78] sm:$0xff]  ;;  %v6043_v52 = vld [vmem:[#allocation11 + $0x48] sm:$0xff] }
 0x14a   :  { %7853 = vst [vmem:[#allocation25_spill] sm:$0xff] %v5632_v55  ;;  %7854 = vst [vmem:[#allocation26_spill] sm:$0xff] %v5635_v57  ;;  %v6037_v57 = vld [vmem:[#allocation11 + $0x60] sm:$0xff]  ;;  %v6040_v55 = vld [vmem:[#allocation11 + $0x70] sm:$0xff] }
 0x14b   :  { %v385_v58 = vpop.f32.mrf.mxu0  ;;  %v498_v59 = vpop.f32.mrf.mxu1 }
 0x14c   :  { %v5638_v60 = vadd.f32 %v385_v58, %v5602_v37  ;;  %v5641_v47 = vadd.f32 %v498_v59, %v5605_v39 }
 0x14d   :  { %v387_v61 = vpop.f32.mrf.mxu0  ;;  %v500_v62 = vpop.f32.mrf.mxu1 }
 0x14e   :  { %7855 = vst [vmem:[#allocation27_spill] sm:$0xff] %v5638_v60  ;;  %7856 = vst [vmem:[#allocation28_spill] sm:$0xff] %v5641_v47  ;;  %v5644_v63 = vadd.f32 %v387_v61, %v5608_v42  ;;  %v5647_v13 = vadd.f32 %v500_v62, %v5611_v43  ;;  %v6010_v47 = vld [vmem:[#allocation11 + $0xb8] sm:$0xff]  ;;  %v6019_v60 = vld [vmem:[#allocation11 + $0x88] sm:$0xff] }
 0x150   :  { %7857 = vst [vmem:[#allocation29_spill] sm:$0xff] %v5644_v63  ;;  %7858 = vst [vmem:[#allocation30_spill] sm:$0xff] %v5647_v13  ;;  %v6013_v13 = vld [vmem:[#allocation11 + $0xa0] sm:$0xff]  ;;  %v6016_v63 = vld [vmem:[#allocation11 + $0xb0] sm:$0xff] }
 0x151   :  { %v391_v14 = vpop.f32.mrf.mxu0  ;;  %v504_v15 = vpop.f32.mrf.mxu1 }
 0x152   :  { %v5650_v16 = vadd.f32 %v391_v14, %v5602_v37  ;;  %v5653_v17 = vadd.f32 %v504_v15, %v5605_v39  ;;  %v283_v14 = vsub.s32 5, %v5585_v28  ;;  %v291_v15 = vsub.s32 7, %v5585_v28 }
 0x153   :  { %v393_v18 = vpop.f32.mrf.mxu0  ;;  %v506_v19 = vpop.f32.mrf.mxu1 }
 0x154   :  { %7859 = vst [vmem:[#allocation31_spill] sm:$0xff] %v5650_v16  ;;  %7860 = vst [vmem:[#allocation32_spill] sm:$0xff] %v5653_v17  ;;  %v5656_v21 = vadd.f32 %v393_v18, %v5608_v42  ;;  %v5659_v2 = vadd.f32 %v506_v19, %v5611_v43 }
 0x156   :  { %7861 = vst [vmem:[#allocation33_spill] sm:$0xff] %v5656_v21  ;;  %7862 = vst [vmem:[#allocation34_spill] sm:$0xff] %v5659_v2  ;;  %v483_v21 = vadd.f32 %v5597_v35, %v5611_v43 }
 0x157   :  { %v397_v22 = vpop.f32.mrf.mxu0  ;;  %v510_v23 = vpop.f32.mrf.mxu1 }
 0x158   :  { %v5662_v24 = vadd.f32 %v397_v22, %v5602_v37  ;;  %v5665_v25 = vadd.f32 %v510_v23, %v5605_v39 }
 0x159   :  { %v399_v26 = vpop.f32.mrf.mxu0  ;;  %v512_v27 = vpop.f32.mrf.mxu1 }
 0x15a   :  { %7863 = vst [vmem:[#allocation35_spill] sm:$0xff] %v5662_v24  ;;  %7864 = vst [vmem:[#allocation36_spill] sm:$0xff] %v5665_v25  ;;  %v5668_v31 = vadd.f32 %v399_v26, %v5608_v42  ;;  %v5671_v32 = vadd.f32 %v512_v27, %v5611_v43  ;;  %v5702_v26 = vrot.slane %v5593_v33, %v279_v53 }
 0x15b   :  { %v5705_v27 = vrot.slane %v5593_v33, %v287_v54  ;;  %v368_v24 = vadd.f32 %v5587_v11, %v5602_v37  ;;  %v481_v11 = vadd.f32 %v5589_v30, %v5605_v39 }
 0x15c   :  { %7865 = vst [vmem:[#allocation88_spill] sm:$0xff] %v5668_v31  ;;  %7866 = vst [vmem:[#allocation89_spill] sm:$0xff] %v5671_v32 }
 0x15d   :  { %v403_v36 = vpop.f32.mrf.mxu0  ;;  %v516_v20 = vpop.f32.mrf.mxu1 }
 0x15e   :  { %v5674_v40 = vadd.f32 %v403_v36, %v5602_v37  ;;  %v5677_v41 = vadd.f32 %v516_v20, %v5605_v39  ;;  %v5708_v36 = vrot.slane %v5593_v33, %v283_v14  ;;  %v5711_v20 = vrot.slane %v5593_v33, %v291_v15 }
 0x15f   :  { %v405_v45 = vpop.f32.mrf.mxu0  ;;  %v518_v46 = vpop.f32.mrf.mxu1 }
 0x160   :  { %7867 = vst [vmem:[#allocation90_spill] sm:$0xff] %v5674_v40  ;;  %7868 = vst [vmem:[#allocation91_spill] sm:$0xff] %v5677_v41  ;;  %v5680_v50 = vadd.f32 %v405_v45, %v5608_v42  ;;  %v5683_v51 = vadd.f32 %v518_v46, %v5611_v43 }
 0x162   :  { %7869 = vst [vmem:[#allocation92_spill] sm:$0xff] %v5680_v50  ;;  %7870 = vst [vmem:[#allocation93_spill] sm:$0xff] %v5683_v51 }
 0x163   :  { %v409_v58 = vpop.f32.mrf.mxu0  ;;  %v522_v59 = vpop.f32.mrf.mxu1 }
 0x164   :  { %v5688_v61 = vadd.f32 %v409_v58, %v5602_v37  ;;  %v5691_v62 = vadd.f32 %v522_v59, %v5605_v39 }
 0x165   :  { %v411_v18 = vpop.f32.mrf.mxu0  ;;  %v524_v19 = vpop.f32.mrf.mxu1 }
 0x166   :  { %7871 = vst [vmem:[#allocation94_spill] sm:$0xff] %v5688_v61  ;;  %7872 = vst [vmem:[#allocation95_spill] sm:$0xff] %v5691_v62  ;;  %v5696_v22 = vadd.f32 %v411_v18, %v5608_v42  ;;  %v5699_v23 = vadd.f32 %v524_v19, %v5611_v43 }
 0x168   :  { %7873 = vst [vmem:[#allocation96_spill] sm:$0xff] %v5696_v22  ;;  %7874 = vst [vmem:[#allocation97_spill] sm:$0xff] %v5699_v23 }
 0x169   :  { %v593_v28 = vpop.f32.mrf.mxu0  ;;  %v706_v45 = vpop.f32.mrf.mxu1 }
 0x16a   :  { %v5714_v46 = vadd.f32 %v593_v28, %v5702_v26  ;;  %v5717_v58 = vadd.f32 %v706_v45, %v5705_v27 }
 0x16b   :  { %v595_v59 = vpop.f32.mrf.mxu0  ;;  %v708_v53 = vpop.f32.mrf.mxu1 }
 0x16c   :  { %7875 = vst [vmem:[#allocation98_spill] sm:$0xff] %v5714_v46  ;;  %7876 = vst [vmem:[#allocation99_spill] sm:$0xff] %v5717_v58  ;;  %v5720_v18 = vadd.f32 %v595_v59, %v5708_v36  ;;  %v5723_v54 = vadd.f32 %v708_v53, %v5711_v20 }
 0x16e   :  { %7877 = vst [vmem:[#allocation100_spill] sm:$0xff] %v5720_v18  ;;  %7878 = vst [vmem:[#allocation101_spill] sm:$0xff] %v5723_v54 }
 0x16f   :  { %v599_v14 = vpop.f32.mrf.mxu0  ;;  %v712_v19 = vpop.f32.mrf.mxu1 }
 0x170   :  { %v5726_v33 = vadd.f32 %v599_v14, %v5702_v26  ;;  %v5729_v15 = vadd.f32 %v712_v19, %v5705_v27 }
 0x171   :  { %v601_v28 = vpop.f32.mrf.mxu0  ;;  %v714_v46 = vpop.f32.mrf.mxu1 }
 0x172   :  { %7879 = vst [vmem:[#allocation102_spill] sm:$0xff] %v5726_v33  ;;  %7880 = vst [vmem:[#allocation103_spill] sm:$0xff] %v5729_v15  ;;  %v5732_v45 = vadd.f32 %v601_v28, %v5708_v36  ;;  %v5735_v58 = vadd.f32 %v714_v46, %v5711_v20 }
 0x174   :  { %7881 = vst [vmem:[#allocation104_spill] sm:$0xff] %v5732_v45  ;;  %7882 = vst [vmem:[#allocation105_spill] sm:$0xff] %v5735_v58 }
 0x175   :  { %v605_v59 = vpop.f32.mrf.mxu0  ;;  %v718_v18 = vpop.f32.mrf.mxu1 }
 0x176   :  { %v5738_v53 = vadd.f32 %v605_v59, %v5702_v26  ;;  %v5741_v54 = vadd.f32 %v718_v18, %v5705_v27 }
 0x177   :  { %v607_v14 = vpop.f32.mrf.mxu0  ;;  %v720_v62 = vpop.f32.mrf.mxu1 }
 0x178   :  { %7883 = vst [vmem:[#allocation106_spill] sm:$0xff] %v5738_v53  ;;  %7884 = vst [vmem:[#allocation107_spill] sm:$0xff] %v5741_v54  ;;  %v5744_v19 = vadd.f32 %v607_v14, %v5708_v36  ;;  %v5747_v23 = vadd.f32 %v720_v62, %v5711_v20 }
 0x17a   :  { %7885 = vst [vmem:[#allocation108_spill] sm:$0xff] %v5744_v19  ;;  %7886 = vst [vmem:[#allocation109_spill] sm:$0xff] %v5747_v23 }
 0x17b   :  { %v611_v28 = vpop.f32.mrf.mxu0  ;;  %v724_v22 = vpop.f32.mrf.mxu1 }
 0x17c   :  { %v5750_v46 = vadd.f32 %v611_v28, %v5702_v26  ;;  %v5753_v61 = vadd.f32 %v724_v22, %v5705_v27 }
 0x17d   :  { %v613_v59 = vpop.f32.mrf.mxu0  ;;  %v726_v15 = vpop.f32.mrf.mxu1 }
 0x17e   :  { %7887 = vst [vmem:[#allocation110_spill] sm:$0xff] %v5750_v46  ;;  %7888 = vst [vmem:[#allocation111_spill] sm:$0xff] %v5753_v61  ;;  %v5756_v18 = vadd.f32 %v613_v59, %v5708_v36  ;;  %v5759_v58 = vadd.f32 %v726_v15, %v5711_v20 }
 0x180   :  { %7889 = vst [vmem:[#allocation112_spill] sm:$0xff] %v5756_v18  ;;  %7890 = vst [vmem:[#allocation113_spill] sm:$0xff] %v5759_v58 }
 0x181   :  { %v617_v14 = vpop.f32.mrf.mxu0  ;;  %v730_v45 = vpop.f32.mrf.mxu1 }
 0x182   :  { %v5762_v62 = vadd.f32 %v617_v14, %v5702_v26  ;;  %v5765_v33 = vadd.f32 %v730_v45, %v5705_v27 }
 0x183   :  { %v619_v28 = vpop.f32.mrf.mxu0  ;;  %v732_v41 = vpop.f32.mrf.mxu1 }
 0x184   :  { %7891 = vst [vmem:[#allocation114_spill] sm:$0xff] %v5762_v62  ;;  %7892 = vst [vmem:[#allocation115_spill] sm:$0xff] %v5765_v33  ;;  %v5768_v22 = vadd.f32 %v619_v28, %v5708_v36  ;;  %v5771_v51 = vadd.f32 %v732_v41, %v5711_v20  ;;  %v6007_v62 = vld [vmem:[#allocation11 + $0xa8] sm:$0xff] }
 0x186   :  { %7893 = vst [vmem:[#allocation116_spill] sm:$0xff] %v5768_v22  ;;  %7894 = vst [vmem:[#allocation117_spill] sm:$0xff] %v5771_v51  ;;  %v6001_v51 = vld [vmem:[#allocation11 + $0xc0] sm:$0xff]  ;;  %v6004_v22 = vld [vmem:[#allocation11 + $0xd0] sm:$0xff] }
 0x187   :  { %v623_v59 = vpop.f32.mrf.mxu0  ;;  %v736_v50 = vpop.f32.mrf.mxu1 }
 0x188   :  { %v5774_v15 = vadd.f32 %v623_v59, %v5702_v26  ;;  %v5777_v40 = vadd.f32 %v736_v50, %v5705_v27 }
 0x189   :  { %v625_v14 = vpop.f32.mrf.mxu0  ;;  %v738_v54 = vpop.f32.mrf.mxu1 }
 0x18a   :  { %7895 = vst [vmem:[#allocation118_spill] sm:$0xff] %v5774_v15  ;;  %7896 = vst [vmem:[#allocation119_spill] sm:$0xff] %v5777_v40  ;;  %v5780_v45 = vadd.f32 %v625_v14, %v5708_v36  ;;  %v5783_v23 = vadd.f32 %v738_v54, %v5711_v20  ;;  %v6022_v40 = vld [vmem:[#allocation11 + $0x98] sm:$0xff]  ;;  %v6031_v15 = vld [vmem:[#allocation11 + $0x68] sm:$0xff] }
 0x18c   :  { %7897 = vst [vmem:[#allocation120_spill] sm:$0xff] %v5780_v45  ;;  %7898 = vst [vmem:[#allocation121_spill] sm:$0xff] %v5783_v23  ;;  %v6025_v23 = vld [vmem:[#allocation11 + $0x80] sm:$0xff]  ;;  %v6028_v45 = vld [vmem:[#allocation11 + $0x90] sm:$0xff] }
 0x18d   :  { %v629_v28 = vpop.f32.mrf.mxu0  ;;  %v742_v19 = vpop.f32.mrf.mxu1 }
 0x18e   :  { %v5786_v41 = vadd.f32 %v629_v28, %v5702_v26  ;;  %v5789_v53 = vadd.f32 %v742_v19, %v5705_v27  ;;  %v370_v28 = vadd.f32 %v5595_v34, %v5608_v42 }
 0x18f   :  { %v631_v59 = vpop.f32.mrf.mxu0  ;;  %v744_v25 = vpop.f32.mrf.mxu1 }
 0x190   :  { %v5792_v50 = vadd.f32 %v631_v59, %v5708_v36  ;;  %v5795_v32 = vadd.f32 %v744_v25, %v5711_v20 }
 0x193   :  { %v635_v14 = vpop.f32.mrf.mxu0  ;;  %v748_v54 = vpop.f32.mrf.mxu1 }
 0x195   :  { %v637_v31 = vpop.f32.mrf.mxu0  ;;  %v750_v19 = vpop.f32.mrf.mxu1 }
 0x196   :  { %v638_v43 = vadd.f32 %v637_v31, %v5708_v36  ;;  %v751_v31 = vadd.f32 %v750_v19, %v5711_v20  ;;  %v7900_v20 = vld [vmem:[#allocation37_spill] sm:$0xff]  ;;  %v7903_v19 = vld [vmem:[#allocation40_spill] sm:$0xff] }
 0x199   :  { %v1015_v61 = vpop.f32.mrf.mxu0  ;;  %v1086_v59 = vpop.f32.mrf.mxu1 }
 0x19a   :  { %v1091_v58 = vadd.f32 %v1015_v61, %v368_v24  ;;  %v1093_v37 = vadd.f32 %v1086_v59, %v481_v11 }
 0x19b   :  { %v1017_v18 = vpop.f32.mrf.mxu0  ;;  %v1088_v25 = vpop.f32.mrf.mxu1 }
 0x19c   :  { %v4067_v46 = vmul.f32 -1.442695, %v1091_v58  ;;  %v1092_v17 = vadd.f32 %v1017_v18, %v370_v28  ;;  %v1094_v16 = vadd.f32 %v1088_v25, %v483_v21  ;;  %v636_v58 = vadd.f32 %v635_v14, %v5702_v26 }
 0x19d   :  { %v749_v14 = vadd.f32 %v748_v54, %v5705_v27  ;;  %v7901_v27 = vld [vmem:[#allocation38_spill] sm:$0xff]  ;;  %v7902_v54 = vld [vmem:[#allocation39_spill] sm:$0xff] }
 0x19e   :  { %4267 = vpow2.f32 %v4067_v46  ;;  %v4068_v2 = vmul.f32 -1.442695, %v1092_v17  ;;  %v4069_v33 = vmul.f32 -1.442695, %v1094_v16 }
 0x1a0   :  { %4269 = vpow2.f32 %v4068_v2 }
 0x1a1   :  { %4271 = vtanh.f32 %v1093_v37 }
 0x1a2   :  { %4273 = vpow2.f32 %v4069_v33 }
 0x1ab   :  { %v4268_v34 = vpop.eup %4267 }
 0x1ac   :  { %v1249_v42 = vadd.f32 1.0, %v4268_v34 }
 0x1ad   :  { %v4270_v24 = vpop.eup %4269 }
 0x1ae   :  { %4275 = vrcp.f32 %v1249_v42  ;;  %v1255_v61 = vadd.f32 1.0, %v4270_v24  ;;  %v4272_v17 = vpop.eup %4271 }
 0x1af   :  { %v4274_v2 = vpop.eup %4273 }
 0x1b0   :  { %4277 = vrcp.f32 %v1255_v61  ;;  %v1262_v16 = vadd.f32 1.0, %v4274_v2 }
 0x1bb   :  { %v4276_v46 = vpop.eup %4275  ;;  %v1166_v35 = vpop.f32.mrf.mxu0 }
 0x1bc   :  { %v1266_v21 = vmul.f32 %v4276_v46, %v4272_v17  ;;  %v1242_v30 = vadd.f32 %v1166_v35, %v636_v58  ;;  %v1237_v37 = vpop.f32.mrf.mxu1 }
 0x1bd   :  { %v4278_v39 = vpop.eup %4277  ;;  %v1168_v18 = vpop.f32.mrf.mxu0  ;;  %v1244_v17 = vadd.f32 %v1237_v37, %v749_v14  ;;  %v7914_v37 = vld [vmem:[#allocation51_spill] sm:$0xff] }
 0x1be   :  { %v1265_v28 = vmul.f32 0.0, %v4278_v39  ;;  %v4070_v59 = vmul.f32 -1.442695, %v1242_v30  ;;  %v1243_v25 = vadd.f32 %v1168_v18, %v638_v43  ;;  %v1239_v26 = vpop.f32.mrf.mxu1  ;;  %v7904_v43 = vld [vmem:[#allocation41_spill] sm:$0xff]  ;;  %v7906_v30 = vld [vmem:[#allocation43_spill] sm:$0xff]  ;;  %v7907_v39 = vld [vmem:[#allocation44_spill] sm:$0xff] }
 0x1bf   :  { %v1245_v36 = vadd.f32 %v1239_v26, %v751_v31  ;;  %v7909_v18 = vld [vmem:[#allocation46_spill] sm:$0xff]  ;;  %v7915_v26 = vld [vmem:[#allocation52_spill] sm:$0xff]  ;;  %v7916_v31 = vld [vmem:[#allocation53_spill] sm:$0xff] }
 0x1c0   :  { %v5807_v33 = vadd.f32 %v1266_v21, %v1265_v28  ;;  %4279 = vpow2.f32 %v4070_v59  ;;  %v4071_v11 = vmul.f32 -1.442695, %v1243_v25  ;;  %v7905_v21 = vld [vmem:[#allocation42_spill] sm:$0xff]  ;;  %v7910_v28 = vld [vmem:[#allocation47_spill] sm:$0xff]  ;;  %v7911_v59 = vld [vmem:[#allocation48_spill] sm:$0xff]  ;;  %7967 = vst [vmem:[#allocation53_spill] sm:$0xff] %v6001_v51 }
 0x1c1   :  { %4281 = vrcp.f32 %v1262_v16  ;;  %v4072_v34 = vmul.f32 -1.442695, %v1245_v36  ;;  %v7908_v16 = vld [vmem:[#allocation45_spill] sm:$0xff]  ;;  %v7917_v36 = vld [vmem:[#allocation54_spill] sm:$0xff]  ;;  %v7918_v14 = vld [vmem:[#allocation55_spill] sm:$0xff] }
 0x1c2   :  { %4283 = vtanh.f32 %v5807_v33  ;;  %v7912_v25 = vld [vmem:[#allocation49_spill] sm:$0xff]  ;;  %7968 = vst [vmem:[#allocation54_spill] sm:$0xff] %v6004_v22  ;;  %7969 = vst [vmem:[#allocation55_spill] sm:$0xff] %v6007_v62 }
 0x1c3   :  { %4285 = vpow2.f32 %v4071_v11  ;;  %v7913_v11 = vld [vmem:[#allocation50_spill] sm:$0xff] }
 0x1c4   :  { %4287 = vpow2.f32 %v4072_v34  ;;  %v7919_v34 = vld [vmem:[#allocation56_spill] sm:$0xff] }
 0x1c5   :  { %7970 = vst [vmem:[#allocation56_spill] sm:$0xff] %v6010_v47 }
 0x1cd   :  { %v4280_v42 = vpop.eup %4279 }
 0x1ce   :  { %v4282_v24 = vpop.eup %4281  ;;  %v1273_v61 = vadd.f32 1.0, %v4280_v42 }
 0x1cf   :  { %v4284_v2 = vpop.eup %4283 }
 0x1d0   :  { %v4286_v58 = vpop.eup %4285  ;;  %v5812_v46 = vmul.f32 %v4284_v2, %v4282_v24  ;;  %4289 = vrcp.f32 %v1273_v61  ;;  %v7920_v24 = vld [vmem:[#allocation57_spill] sm:$0xff]  ;;  %v7921_v61 = vld [vmem:[#allocation58_spill] sm:$0xff]  ;;  %v7922_v2 = vld [vmem:[#allocation59_spill] sm:$0xff] }
 0x1d1   :  { %v1279_v35 = vadd.f32 1.0, %v4286_v58  ;;  %4291 = vtanh.f32 %v1244_v17  ;;  %v4288_v42 = vpop.eup %4287  ;;  %v7923_v58 = vld [vmem:[#allocation60_spill] sm:$0xff]  ;;  %7971 = vst [vmem:[#allocation57_spill] sm:$0xff] %v6013_v13  ;;  %7972 = vst [vmem:[#allocation58_spill] sm:$0xff] %v6016_v63 }
 0x1d2   :  { %7899 = vst [vmem:[#allocation122_spill] sm:$0xff] %v5812_v46  ;;  %1367 = vmatmul.mubr.f32.vlgmr.msra.gmra.mxu0 %v5812_v46  ;;  %1438 = vmatmul.mubr.f32.vlgmr.msra.gmra.mxu1 %v5812_v46  ;;  %v5998_v46 = vld [vmem:[#allocation11 + $0xd8] sm:$0xff]  ;;  %7973 = vst [vmem:[#allocation59_spill] sm:$0xff] %v6019_v60 }
 0x1d3   :  { %4293 = vrcp.f32 %v1279_v35  ;;  %1454 = vmatpush1.msra.mxu0 %v7900_v20  ;;  %1525 = vmatpush1.msra.mxu1 %v7901_v27  ;;  %v7924_v20 = vld [vmem:[#allocation61_spill] sm:$0xff]  ;;  %v7925_v27 = vld [vmem:[#allocation62_spill] sm:$0xff]  ;;  %7966 = vst [vmem:[#allocation52_spill] sm:$0xff] %v5998_v46  ;;  %7974 = vst [vmem:[#allocation60_spill] sm:$0xff] %v6022_v40 }
 0x1d4   :  { %1455 = vmatprep.subr.mxu0 %v7902_v54  ;;  %1526 = vmatprep.subr.mxu1 %v7903_v19  ;;  %v1286_v19 = vadd.f32 1.0, %v4288_v42  ;;  %v7939_v42 = vld [vmem:[#allocation76_spill] sm:$0xff]  ;;  %7975 = vst [vmem:[#allocation61_spill] sm:$0xff] %v6025_v23  ;;  %7976 = vst [vmem:[#allocation62_spill] sm:$0xff] %v6028_v45 }
 0x1d5   :  { %1456 = vmatpush1.msra.mxu0 %v7904_v43  ;;  %1527 = vmatpush1.msra.mxu1 %v7905_v21  ;;  %v7926_v43 = vld [vmem:[#allocation63_spill] sm:$0xff]  ;;  %v7927_v21 = vld [vmem:[#allocation64_spill] sm:$0xff] }
 0x1d6   :  { %1457 = vmatprep.subr.mxu0 %v7906_v30  ;;  %1528 = vmatprep.subr.mxu1 %v7907_v39  ;;  %4295 = vrcp.f32 %v1286_v19  ;;  %v7949_v19 = vld [vmem:[#allocation86_spill] sm:$0xff]  ;;  %7977 = vst [vmem:[#allocation63_spill] sm:$0xff] %v6031_v15  ;;  %7978 = vst [vmem:[#allocation64_spill] sm:$0xff] %v6034_v38 }
 0x1d7   :  { %1458 = vmatpush1.msra.mxu0 %v7908_v16  ;;  %1529 = vmatpush1.msra.mxu1 %v7909_v18  ;;  %v7928_v16 = vld [vmem:[#allocation65_spill] sm:$0xff]  ;;  %v7929_v18 = vld [vmem:[#allocation66_spill] sm:$0xff] }
 0x1d8   :  { %1459 = vmatprep.subr.mxu0 %v7910_v28  ;;  %1530 = vmatprep.subr.mxu1 %v7911_v59  ;;  %v7930_v28 = vld [vmem:[#allocation67_spill] sm:$0xff]  ;;  %v7931_v59 = vld [vmem:[#allocation68_spill] sm:$0xff]  ;;  %7979 = vst [vmem:[#allocation65_spill] sm:$0xff] %v6037_v57  ;;  %7980 = vst [vmem:[#allocation66_spill] sm:$0xff] %v6040_v55 }
 0x1d9   :  { %1460 = vmatpush1.msra.mxu0 %v7912_v25  ;;  %1531 = vmatpush1.msra.mxu1 %v7913_v11  ;;  %v7932_v11 = vld [vmem:[#allocation69_spill] sm:$0xff]  ;;  %7981 = vst [vmem:[#allocation67_spill] sm:$0xff] %v6043_v52 }
 0x1da   :  { %1461 = vmatprep.subr.mxu0 %v7914_v37  ;;  %1532 = vmatprep.subr.mxu1 %v7915_v26  ;;  %v7933_v37 = vld [vmem:[#allocation70_spill] sm:$0xff]  ;;  %v7934_v26 = vld [vmem:[#allocation71_spill] sm:$0xff] }
 0x1db   :  { %1462 = vmatpush1.msra.mxu0 %v7916_v31  ;;  %1533 = vmatpush1.msra.mxu1 %v7917_v36  ;;  %v7935_v31 = vld [vmem:[#allocation72_spill] sm:$0xff]  ;;  %v7936_v36 = vld [vmem:[#allocation73_spill] sm:$0xff] }
 0x1dc   :  { %1463 = vmatprep.subr.mxu0 %v7918_v14  ;;  %1534 = vmatprep.subr.mxu1 %v7919_v34  ;;  %v7937_v14 = vld [vmem:[#allocation74_spill] sm:$0xff]  ;;  %v7938_v34 = vld [vmem:[#allocation75_spill] sm:$0xff] }
 0x1dd   :  { %1464 = vmatpush1.msra.mxu0 %v7920_v24  ;;  %1535 = vmatpush1.msra.mxu1 %v7921_v61  ;;  %v4290_v17 = vpop.eup %4289  ;;  %v7940_v24 = vld [vmem:[#allocation77_spill] sm:$0xff]  ;;  %v7941_v61 = vld [vmem:[#allocation78_spill] sm:$0xff] }
 0x1de   :  { %1465 = vmatprep.subr.mxu0 %v7922_v2  ;;  %1536 = vmatprep.subr.mxu1 %v7923_v58  ;;  %v4292_v35 = vpop.eup %4291  ;;  %v7943_v2 = vld [vmem:[#allocation80_spill] sm:$0xff]  ;;  %v7944_v58 = vld [vmem:[#allocation81_spill] sm:$0xff] }
 0x1df   :  { %1466 = vmatpush1.msra.mxu0 %v7924_v20  ;;  %1537 = vmatpush1.msra.mxu1 %v7925_v27  ;;  %v1290_v39 = vmul.f32 %v4292_v35, %v4290_v17  ;;  %v7942_v17 = vld [vmem:[#allocation79_spill] sm:$0xff]  ;;  %v7945_v35 = vld [vmem:[#allocation82_spill] sm:$0xff]  ;;  %v7947_v27 = vld [vmem:[#allocation84_spill] sm:$0xff] }
 0x1e0   :  { %v4294_v54 = vpop.eup %4293  ;;  %1467 = vmatprep.subr.mxu0 %v7926_v43  ;;  %1538 = vmatprep.subr.mxu1 %v7927_v21  ;;  %v7946_v20 = vld [vmem:[#allocation83_spill] sm:$0xff] }
 0x1e1   :  { %v1289_v30 = vmul.f32 0.0, %v4294_v54  ;;  %1468 = vmatpush1.msra.mxu0 %v7928_v16  ;;  %1539 = vmatpush1.msra.mxu1 %v7929_v18  ;;  %v7948_v54 = vld [vmem:[#allocation85_spill] sm:$0xff]  ;;  %v7950_v43 = vld [vmem:[#allocation87_spill] sm:$0xff]  ;;  %v5923_v18 = vld [vmem:[#allocation11 + $0x188] sm:$0xff] }
 0x1e2   :  { %1469 = vmatprep.subr.mxu0 %v7930_v28  ;;  %1540 = vmatprep.subr.mxu1 %v7931_v59  ;;  %v5920_v16 = vld [vmem:[#allocation11 + $0x1b0] sm:$0xff]  ;;  %v5926_v28 = vld [vmem:[#allocation11 + $0x198] sm:$0xff]  ;;  %v5929_v59 = vld [vmem:[#allocation11 + $0x180] sm:$0xff] }
 0x1e3   :  { %v5848_v25 = vadd.f32 %v1290_v39, %v1289_v30  ;;  %1470 = vmatpush1.msra.mxu0 %v7932_v11  ;;  %1541 = vmatpush1.msra.mxu1 %v7933_v37  ;;  %v4296_v21 = vpop.eup %4295  ;;  %v5914_v30 = vld [vmem:[#allocation11 + $0x1b8] sm:$0xff]  ;;  %v5917_v39 = vld [vmem:[#allocation11 + $0x1a0] sm:$0xff]  ;;  %v5932_v11 = vld [vmem:[#allocation11 + $0x190] sm:$0xff] }
 0x1e4   :  { %1471 = vmatprep.subr.mxu0 %v7934_v26  ;;  %1542 = vmatprep.subr.mxu1 %v7935_v31  ;;  %v5935_v37 = vld [vmem:[#allocation11 + $0x168] sm:$0xff]  ;;  %v5938_v26 = vld [vmem:[#allocation11 + $0x178] sm:$0xff]  ;;  %v5941_v31 = vld [vmem:[#allocation11 + $0x160] sm:$0xff] }
 0x1e5   :  { %4297 = vtanh.f32 %v5848_v25  ;;  %1472 = vmatpush1.msra.mxu0 %v7936_v36  ;;  %1543 = vmatpush1.msra.mxu1 %v7937_v14  ;;  %v5944_v36 = vld [vmem:[#allocation11 + $0x170] sm:$0xff]  ;;  %v5947_v14 = vld [vmem:[#allocation11 + $0x148] sm:$0xff] }
 0x1e6   :  { %1473 = vmatprep.subr.mxu0 %v7938_v34  ;;  %1544 = vmatprep.subr.mxu1 %v7939_v42  ;;  %v5950_v34 = vld [vmem:[#allocation11 + $0x158] sm:$0xff]  ;;  %v5953_v42 = vld [vmem:[#allocation11 + $0x140] sm:$0xff] }
 0x1e7   :  { %1474 = vmatpush1.msra.mxu0 %v7940_v24  ;;  %1545 = vmatpush1.msra.mxu1 %v7941_v61  ;;  %v5956_v24 = vld [vmem:[#allocation11 + $0x150] sm:$0xff]  ;;  %v5959_v61 = vld [vmem:[#allocation11 + $0x128] sm:$0xff] }
 0x1e8   :  { %1475 = vmatprep.subr.mxu0 %v7942_v17  ;;  %1546 = vmatprep.subr.mxu1 %v7943_v2  ;;  %7952 = vst [vmem:[#allocation38_spill] sm:$0xff] %v5956_v24  ;;  %7953 = vst [vmem:[#allocation39_spill] sm:$0xff] %v5959_v61  ;;  %v5962_v17 = vld [vmem:[#allocation11 + $0x138] sm:$0xff]  ;;  %v5965_v2 = vld [vmem:[#allocation11 + $0x120] sm:$0xff] }
 0x1e9   :  { %1476 = vmatpush1.msra.mxu0 %v7944_v58  ;;  %1547 = vmatpush1.msra.mxu1 %v7945_v35  ;;  %7954 = vst [vmem:[#allocation40_spill] sm:$0xff] %v5962_v17  ;;  %7955 = vst [vmem:[#allocation41_spill] sm:$0xff] %v5965_v2  ;;  %v5968_v58 = vld [vmem:[#allocation11 + $0x130] sm:$0xff]  ;;  %v5971_v35 = vld [vmem:[#allocation11 + $0x108] sm:$0xff] }
 0x1ea   :  { %1477 = vmatprep.subr.mxu0 %v7946_v20  ;;  %1548 = vmatprep.subr.mxu1 %v7947_v27  ;;  %7956 = vst [vmem:[#allocation42_spill] sm:$0xff] %v5968_v58  ;;  %7957 = vst [vmem:[#allocation43_spill] sm:$0xff] %v5971_v35  ;;  %v5974_v20 = vld [vmem:[#allocation11 + $0x118] sm:$0xff]  ;;  %v5977_v27 = vld [vmem:[#allocation11 + $0x100] sm:$0xff] }
 0x1eb   :  { %1478 = vmatpush1.msra.mxu0 %v7948_v54  ;;  %1549 = vmatpush1.msra.mxu1 %v7949_v19  ;;  %7958 = vst [vmem:[#allocation44_spill] sm:$0xff] %v5974_v20  ;;  %7959 = vst [vmem:[#allocation45_spill] sm:$0xff] %v5977_v27  ;;  %v5980_v54 = vld [vmem:[#allocation11 + $0x110] sm:$0xff]  ;;  %v5983_v19 = vld [vmem:[#allocation11 + $0xe8] sm:$0xff] }
 0x1ec   :  { %1479 = vmatprep.subr.mxu0 %v5473_v7  ;;  %1550 = vmatprep.subr.mxu1 %v7950_v43  ;;  %v5888_v7 = vld [vmem:[#allocation11 + $0x1f8] sm:$0xff]  ;;  %7960 = vst [vmem:[#allocation46_spill] sm:$0xff] %v5980_v54  ;;  %7961 = vst [vmem:[#allocation47_spill] sm:$0xff] %v5983_v19 }
 0x1ed   :  { %1480 = vmatpush1.msra.mxu0 %v5479_v1  ;;  %1551 = vmatpush1.msra.mxu1 %v5481_v5  ;;  %v5986_v43 = vld [vmem:[#allocation11 + $0xf8] sm:$0xff] }
 0x1ee   :  { %1481 = vmatprep.subr.mxu0 %v5485_v56  ;;  %1552 = vmatprep.subr.mxu1 %v5487_v8  ;;  %v5885_v56 = vld [vmem:[#allocation11 + $0x1e8] sm:$0xff]  ;;  %v5902_v8 = vld [vmem:[#allocation11 + $0x1d8] sm:$0xff]  ;;  %7962 = vst [vmem:[#allocation48_spill] sm:$0xff] %v5986_v43 }
 0x1ef   :  { %1482 = vmatpush1.msra.mxu0 %v5491_v9  ;;  %1553 = vmatpush1.msra.mxu1 %v5493_v12  ;;  %v5905_v9 = vld [vmem:[#allocation11 + $0x1c0] sm:$0xff]  ;;  %v5911_v12 = vld [vmem:[#allocation11 + $0x1a8] sm:$0xff] }
 0x1f0   :  { %1483 = vmatprep.subr.mxu0 %v5497_v0  ;;  %1554 = vmatprep.subr.mxu1 %v5499_v10  ;;  %v5893_v0 = vld [vmem:[#allocation11 + $0x1e0] sm:$0xff]  ;;  %v5908_v10 = vld [vmem:[#allocation11 + $0x1d0] sm:$0xff] }
 0x1f1   :  { %1484 = vmatpush1.msra.mxu0 %v5503_v6  ;;  %1517 = vmatprep.mubr.f32.mxu0 %v7783_v3  ;;  %v5899_v6 = vld [vmem:[#allocation11 + $0x1c8] sm:$0xff] }
 0x1f2   :  { %v4298_v1 = vpop.eup %4297  ;;  %1555 = vmatpush1.msra.mxu1 %v5507_v4  ;;  %1588 = vmatprep.mubr.f32.mxu1 %v7783_v3  ;;  %v5896_v4 = vld [vmem:[#allocation11 + $0x1f0] sm:$0xff] }
 0x1f3   :  { %v5883_v5 = vmul.f32 %v4298_v1, %v4296_v21  ;;  %1656 = vmatprep.subr.mxu0 %v5885_v56  ;;  %1727 = vmatprep.subr.mxu1 %v5888_v7  ;;  %v5989_v21 = vld [vmem:[#allocation11 + $0xe0] sm:$0xff]  ;;  %v5992_v1 = vld [vmem:[#allocation11 + $0xf0] sm:$0xff] }
 0x1f4   :  { %7963 = vst [vmem:[#allocation49_spill] sm:$0xff] %v5989_v21  ;;  %7964 = vst [vmem:[#allocation50_spill] sm:$0xff] %v5992_v1 }
 0x1f5   :  { %7951 = vst [vmem:[#allocation37_spill] sm:$0xff] %v5883_v5  ;;  %1518 = vmatmul.mubr.f32.vlgmr.msra.gmra.mxu0 %v5883_v5  ;;  %1589 = vmatmul.mubr.f32.vlgmr.msra.gmra.mxu1 %v5883_v5  ;;  %v5995_v5 = vld [vmem:[#allocation11 + $0xc8] sm:$0xff] }
 0x1f6   :  { %1657 = vmatpush1.msra.mxu0 %v5893_v0  ;;  %1728 = vmatpush1.msra.mxu1 %v5896_v4  ;;  %7965 = vst [vmem:[#allocation51_spill] sm:$0xff] %v5995_v5 }
 0x1f7   :  { %1658 = vmatprep.subr.mxu0 %v5899_v6  ;;  %1729 = vmatprep.subr.mxu1 %v5902_v8 }
 0x1f8   :  { %1659 = vmatpush1.msra.mxu0 %v5905_v9  ;;  %1730 = vmatpush1.msra.mxu1 %v5908_v10 }
 0x1f9   :  { %1660 = vmatprep.subr.mxu0 %v5911_v12  ;;  %1731 = vmatprep.subr.mxu1 %v5914_v30 }
 0x1fa   :  { %1661 = vmatpush1.msra.mxu0 %v5917_v39  ;;  %1732 = vmatpush1.msra.mxu1 %v5920_v16 }
 0x1fb   :  { %1662 = vmatprep.subr.mxu0 %v5923_v18  ;;  %1733 = vmatprep.subr.mxu1 %v5926_v28 }
 0x1fc   :  { %1663 = vmatpush1.msra.mxu0 %v5929_v59  ;;  %1734 = vmatpush1.msra.mxu1 %v5932_v11 }
 0x1fd   :  { %1664 = vmatprep.subr.mxu0 %v5935_v37  ;;  %1735 = vmatprep.subr.mxu1 %v5938_v26 }
 0x1fe   :  { %1665 = vmatpush1.msra.mxu0 %v5941_v31  ;;  %1736 = vmatpush1.msra.mxu1 %v5944_v36 }
 0x1ff   :  { %1666 = vmatprep.subr.mxu0 %v5947_v14  ;;  %1737 = vmatprep.subr.mxu1 %v5950_v34 }
 0x200   :  { %1667 = vmatpush1.msra.mxu0 %v5953_v42  ;;  %1738 = vmatpush1.msra.mxu1 %v5956_v24 }
 0x201   :  { %1668 = vmatprep.subr.mxu0 %v5959_v61  ;;  %1739 = vmatprep.subr.mxu1 %v5962_v17 }
 0x202   :  { %1669 = vmatpush1.msra.mxu0 %v5965_v2  ;;  %1740 = vmatpush1.msra.mxu1 %v5968_v58 }
 0x203   :  { %1670 = vmatprep.subr.mxu0 %v5971_v35  ;;  %1741 = vmatprep.subr.mxu1 %v5974_v20 }
 0x204   :  { %1671 = vmatpush1.msra.mxu0 %v5977_v27  ;;  %1742 = vmatpush1.msra.mxu1 %v5980_v54 }
 0x205   :  { %1672 = vmatprep.subr.mxu0 %v5983_v19  ;;  %1743 = vmatprep.subr.mxu1 %v5986_v43 }
 0x206   :  { %1673 = vmatpush1.msra.mxu0 %v5989_v21  ;;  %1744 = vmatpush1.msra.mxu1 %v5992_v1 }
 0x207   :  { %1674 = vmatprep.subr.mxu0 %v5995_v5  ;;  %1745 = vmatprep.subr.mxu1 %v5998_v46 }
 0x208   :  { %1675 = vmatpush1.msra.mxu0 %v6001_v51  ;;  %1746 = vmatpush1.msra.mxu1 %v6004_v22 }
 0x209   :  { %1676 = vmatprep.subr.mxu0 %v6007_v62  ;;  %1747 = vmatprep.subr.mxu1 %v6010_v47 }
 0x20a   :  { %1677 = vmatpush1.msra.mxu0 %v6013_v13  ;;  %1748 = vmatpush1.msra.mxu1 %v6016_v63 }
 0x20b   :  { %1678 = vmatprep.subr.mxu0 %v6019_v60  ;;  %1749 = vmatprep.subr.mxu1 %v6022_v40 }
 0x20c   :  { %1679 = vmatpush1.msra.mxu0 %v6025_v23  ;;  %1750 = vmatpush1.msra.mxu1 %v6028_v45  ;;  %v6046_v45 = vld [vmem:[#allocation11 + $0x58] sm:$0xff] }
 0x20d   :  { %1680 = vmatprep.subr.mxu0 %v6031_v15  ;;  %1751 = vmatprep.subr.mxu1 %v6034_v38  ;;  %7982 = vst [vmem:[#allocation68_spill] sm:$0xff] %v6046_v45  ;;  %v6049_v15 = vld [vmem:[#allocation11 + $0x40] sm:$0xff]  ;;  %v6052_v38 = vld [vmem:[#allocation11 + $0x50] sm:$0xff] }
 0x20e   :  { %1681 = vmatpush1.msra.mxu0 %v6037_v57  ;;  %1752 = vmatpush1.msra.mxu1 %v6040_v55  ;;  %7983 = vst [vmem:[#allocation69_spill] sm:$0xff] %v6049_v15  ;;  %7984 = vst [vmem:[#allocation70_spill] sm:$0xff] %v6052_v38  ;;  %v6055_v57 = vld [vmem:[#allocation11 + $0x28] sm:$0xff]  ;;  %v6058_v55 = vld [vmem:[#allocation11 + $0x38] sm:$0xff] }
 0x20f   :  { %1682 = vmatprep.subr.mxu0 %v6043_v52  ;;  %1753 = vmatprep.subr.mxu1 %v6046_v45  ;;  %7985 = vst [vmem:[#allocation71_spill] sm:$0xff] %v6055_v57  ;;  %7986 = vst [vmem:[#allocation72_spill] sm:$0xff] %v6058_v55  ;;  %v6061_v52 = vld [vmem:[#allocation11 + $0x20] sm:$0xff]  ;;  %v6064_v45 = vld [vmem:[#allocation11 + $0x30] sm:$0xff] }
 0x210   :  { %1683 = vmatpush1.msra.mxu0 %v6049_v15  ;;  %1754 = vmatpush1.msra.mxu1 %v6052_v38  ;;  %7987 = vst [vmem:[#allocation73_spill] sm:$0xff] %v6061_v52  ;;  %7988 = vst [vmem:[#allocation74_spill] sm:$0xff] %v6064_v45  ;;  %v6067_v15 = vld [vmem:[#allocation11 + $0x8] sm:$0xff]  ;;  %v6070_v38 = vld [vmem:[#allocation11 + $0x18] sm:$0xff] }
 0x211   :  { %1684 = vmatprep.subr.mxu0 %v6055_v57  ;;  %1755 = vmatprep.subr.mxu1 %v6058_v55  ;;  %7989 = vst [vmem:[#allocation75_spill] sm:$0xff] %v6067_v15  ;;  %7990 = vst [vmem:[#allocation76_spill] sm:$0xff] %v6070_v38  ;;  %v6073_v57 = vld [vmem:[#allocation11] sm:$0xff]  ;;  %v6077_v55 = vld [vmem:[#allocation11 + $0x10] sm:$0xff] }
 0x212   :  { %1685 = vmatpush1.msra.mxu0 %v6061_v52  ;;  %1756 = vmatpush1.msra.mxu1 %v6064_v45  ;;  %7991 = vst [vmem:[#allocation77_spill] sm:$0xff] %v6073_v57  ;;  %7992 = vst [vmem:[#allocation78_spill] sm:$0xff] %v6077_v55  ;;  %v6081_v45 = vld [vmem:[#allocation13 + $0x1e8] sm:$0xff] }
 0x213   :  { %1686 = vmatprep.subr.mxu0 %v6067_v15  ;;  %1757 = vmatprep.subr.mxu1 %v6070_v38  ;;  %7993 = vst [vmem:[#allocation79_spill] sm:$0xff] %v6081_v45  ;;  %v6084_v15 = vld [vmem:[#allocation13 + $0x1f8] sm:$0xff] }
 0x214   :  { %1687 = vmatpush1.msra.mxu0 %v6073_v57  ;;  %1720 = vmatprep.mubr.f32.mxu0 %v7783_v3  ;;  %7994 = vst [vmem:[#allocation80_spill] sm:$0xff] %v6084_v15 }
 0x215   :  { %1758 = vmatpush1.msra.mxu1 %v6077_v55  ;;  %1791 = vmatprep.mubr.f32.mxu1 %v7783_v3 }
 0x216   :  { %1807 = vmatprep.subr.mxu0 %v6081_v45  ;;  %1878 = vmatprep.subr.mxu1 %v6084_v15 }
 0x292   :  { %v1368_v38 = vpop.f32.mrf.mxu0  ;;  %v1439_v60 = vpop.f32.mrf.mxu1 }
 0x293   :  { %v1444_v52 = vadd.f32 %v1368_v38, %v5614_v44  ;;  %v1446_v45 = vadd.f32 %v1439_v60, %v5617_v29 }
 0x294   :  { %v1370_v57 = vpop.f32.mrf.mxu0  ;;  %v1441_v63 = vpop.f32.mrf.mxu1 }
 0x295   :  { %v4073_v23 = vmul.f32 -1.442695, %v1444_v52  ;;  %v1445_v40 = vadd.f32 %v1370_v57, %v5620_v48  ;;  %v1447_v13 = vadd.f32 %v1441_v63, %v5623_v49 }
 0x297   :  { %4299 = vpow2.f32 %v4073_v23  ;;  %v4074_v55 = vmul.f32 -1.442695, %v1445_v40  ;;  %v4075_v47 = vmul.f32 -1.442695, %v1447_v13 }
 0x299   :  { %4301 = vpow2.f32 %v4074_v55 }
 0x29a   :  { %4303 = vpow2.f32 %v4075_v47 }
 0x29b   :  { %4305 = vtanh.f32 %v1446_v45 }
 0x2a4   :  { %v4300_v62 = vpop.eup %4299 }
 0x2a5   :  { %v1602_v22 = vadd.f32 1.0, %v4300_v62 }
 0x2a6   :  { %v4302_v15 = vpop.eup %4301 }
 0x2a7   :  { %4307 = vrcp.f32 %v1602_v22  ;;  %v1608_v44 = vadd.f32 1.0, %v4302_v15  ;;  %v4304_v52 = vpop.eup %4303 }
 0x2a8   :  { %v4306_v48 = vpop.eup %4305  ;;  %v1615_v40 = vadd.f32 1.0, %v4304_v52 }
 0x2a9   :  { %4309 = vrcp.f32 %v1608_v44 }
 0x2aa   :  { %4311 = vrcp.f32 %v1615_v40 }
 0x2b4   :  { %v4308_v38 = vpop.eup %4307 }
 0x2b5   :  { %v1619_v57 = vmul.f32 %v4308_v38, %v4306_v48  ;;  %v1519_v55 = vpop.f32.mrf.mxu0  ;;  %v1590_v62 = vpop.f32.mrf.mxu1 }
 0x2b6   :  { %v4310_v23 = vpop.eup %4309  ;;  %v1595_v49 = vadd.f32 %v1519_v55, %v5786_v41  ;;  %v1597_v41 = vadd.f32 %v1590_v62, %v5789_v53  ;;  %v6106_v53 = vld [vmem:[#allocation13 + $0x1f0] sm:$0xff]  ;;  %v6109_v55 = vld [vmem:[#allocation13 + $0x1c8] sm:$0xff] }
 0x2b7   :  { %v1618_v63 = vmul.f32 %v4310_v23, %v5807_v33  ;;  %v1521_v29 = vpop.f32.mrf.mxu0  ;;  %v1592_v15 = vpop.f32.mrf.mxu1  ;;  %v6112_v23 = vld [vmem:[#allocation13 + $0x1d8] sm:$0xff]  ;;  %v6130_v62 = vld [vmem:[#allocation13 + $0x1b0] sm:$0xff] }
 0x2b8   :  { %v4076_v60 = vmul.f32 -1.442695, %v1595_v49  ;;  %v1596_v47 = vadd.f32 %v1521_v29, %v5792_v50  ;;  %v1598_v45 = vadd.f32 %v1592_v15, %v5795_v32  ;;  %v4312_v33 = vpop.eup %4311  ;;  %v6103_v32 = vld [vmem:[#allocation13 + $0x1e0] sm:$0xff]  ;;  %v6121_v29 = vld [vmem:[#allocation13 + $0x1a8] sm:$0xff]  ;;  %v6136_v15 = vld [vmem:[#allocation13 + $0x198] sm:$0xff] }
 0x2b9   :  { %v6094_v13 = vadd.f32 %v1619_v57, %v1618_v63  ;;  %v6115_v49 = vld [vmem:[#allocation13 + $0x1c0] sm:$0xff]  ;;  %v6118_v63 = vld [vmem:[#allocation13 + $0x1d0] sm:$0xff]  ;;  %7996 = vst [vmem:[#allocation82_spill] sm:$0xff] %v6136_v15 }
 0x2ba   :  { %4313 = vpow2.f32 %v4076_v60  ;;  %v4077_v22 = vmul.f32 -1.442695, %v1596_v47  ;;  %v4078_v44 = vmul.f32 -1.442695, %v1598_v45  ;;  %v6124_v60 = vld [vmem:[#allocation13 + $0x1b8] sm:$0xff]  ;;  %v6127_v47 = vld [vmem:[#allocation13 + $0x1a0] sm:$0xff] }
 0x2bb   :  { %4315 = vtanh.f32 %v6094_v13  ;;  %v6139_v45 = vld [vmem:[#allocation13 + $0x180] sm:$0xff] }
 0x2bc   :  { %4317 = vpow2.f32 %v4077_v22  ;;  %v6133_v22 = vld [vmem:[#allocation13 + $0x188] sm:$0xff]  ;;  %7997 = vst [vmem:[#allocation83_spill] sm:$0xff] %v6139_v45 }
 0x2bd   :  { %4319 = vtanh.f32 %v1597_v41  ;;  %v6142_v41 = vld [vmem:[#allocation13 + $0x190] sm:$0xff] }
 0x2be   :  { %4321 = vpow2.f32 %v4078_v44  ;;  %7998 = vst [vmem:[#allocation84_spill] sm:$0xff] %v6142_v41  ;;  %v6145_v44 = vld [vmem:[#allocation13 + $0x168] sm:$0xff] }
 0x2bf   :  { %7999 = vst [vmem:[#allocation85_spill] sm:$0xff] %v6145_v44 }
 0x2c7   :  { %v4314_v52 = vpop.eup %4313 }
 0x2c8   :  { %v4316_v48 = vpop.eup %4315  ;;  %v1626_v38 = vadd.f32 1.0, %v4314_v52  ;;  %v6151_v52 = vld [vmem:[#allocation13 + $0x160] sm:$0xff] }
 0x2c9   :  { %v4318_v50 = vpop.eup %4317  ;;  %v6099_v57 = vmul.f32 %v4316_v48, %v4312_v33  ;;  %v6148_v33 = vld [vmem:[#allocation13 + $0x178] sm:$0xff]  ;;  %8001 = vst [vmem:[#allocation87_spill] sm:$0xff] %v6151_v52  ;;  %v6154_v48 = vld [vmem:[#allocation13 + $0x170] sm:$0xff] }
 0x2ca   :  { %4323 = vrcp.f32 %v1626_v38  ;;  %v1632_v40 = vadd.f32 1.0, %v4318_v50  ;;  %8000 = vst [vmem:[#allocation86_spill] sm:$0xff] %v6148_v33  ;;  %8002 = vst [vmem:[#allocation123_spill] sm:$0xff] %v6154_v48  ;;  %v4320_v38 = vpop.eup %4319  ;;  %v6157_v50 = vld [vmem:[#allocation13 + $0x148] sm:$0xff] }
 0x2cb   :  { %7995 = vst [vmem:[#allocation81_spill] sm:$0xff] %v6099_v57  ;;  %1721 = vmatmul.mubr.f32.vlgmr.msra.gmra.mxu0 %v6099_v57  ;;  %1792 = vmatmul.mubr.f32.vlgmr.msra.gmra.mxu1 %v6099_v57  ;;  %8003 = vst [vmem:[#allocation124_spill] sm:$0xff] %v6157_v50  ;;  %v4322_v57 = vpop.eup %4321 }
 0x2cc   :  { %4325 = vrcp.f32 %v1632_v40  ;;  %1808 = vmatpush1.msra.mxu0 %v6103_v32  ;;  %1879 = vmatpush1.msra.mxu1 %v6106_v53  ;;  %v6160_v40 = vld [vmem:[#allocation13 + $0x158] sm:$0xff] }
 0x2cd   :  { %1809 = vmatprep.subr.mxu0 %v6109_v55  ;;  %1880 = vmatprep.subr.mxu1 %v6112_v23  ;;  %8004 = vst [vmem:[#allocation125_spill] sm:$0xff] %v6160_v40 }
 0x2ce   :  { %1810 = vmatpush1.msra.mxu0 %v6115_v49  ;;  %1881 = vmatpush1.msra.mxu1 %v6118_v63 }
 0x2cf   :  { %1811 = vmatprep.subr.mxu0 %v6121_v29  ;;  %1882 = vmatprep.subr.mxu1 %v6124_v60 }
 0x2d0   :  { %1812 = vmatpush1.msra.mxu0 %v6127_v47  ;;  %1883 = vmatpush1.msra.mxu1 %v6130_v62 }
 0x2d1   :  { %1813 = vmatprep.subr.mxu0 %v6133_v22  ;;  %1884 = vmatprep.subr.mxu1 %v6136_v15  ;;  %v6181_v15 = vld [vmem:[#allocation13 + $0x108] sm:$0xff] }
 0x2d2   :  { %1814 = vmatpush1.msra.mxu0 %v6139_v45  ;;  %1885 = vmatpush1.msra.mxu1 %v6142_v41  ;;  %v6172_v41 = vld [vmem:[#allocation13 + $0x138] sm:$0xff]  ;;  %v6178_v45 = vld [vmem:[#allocation13 + $0x130] sm:$0xff]  ;;  %8011 = vst [vmem:[#allocation132_spill] sm:$0xff] %v6181_v15 }
 0x2d3   :  { %1815 = vmatprep.subr.mxu0 %v6145_v44  ;;  %1886 = vmatprep.subr.mxu1 %v6148_v33  ;;  %v6163_v44 = vld [vmem:[#allocation13 + $0x140] sm:$0xff]  ;;  %v6166_v33 = vld [vmem:[#allocation13 + $0x150] sm:$0xff]  ;;  %8008 = vst [vmem:[#allocation129_spill] sm:$0xff] %v6172_v41  ;;  %8010 = vst [vmem:[#allocation131_spill] sm:$0xff] %v6178_v45 }
 0x2d4   :  { %1816 = vmatpush1.msra.mxu0 %v6151_v52  ;;  %1887 = vmatpush1.msra.mxu1 %v6154_v48  ;;  %8005 = vst [vmem:[#allocation126_spill] sm:$0xff] %v6163_v44  ;;  %8006 = vst [vmem:[#allocation127_spill] sm:$0xff] %v6166_v33  ;;  %v6169_v48 = vld [vmem:[#allocation13 + $0x128] sm:$0xff] }
 0x2d5   :  { %1817 = vmatprep.subr.mxu0 %v6157_v50  ;;  %1888 = vmatprep.subr.mxu1 %v6160_v40  ;;  %8007 = vst [vmem:[#allocation128_spill] sm:$0xff] %v6169_v48  ;;  %v6175_v40 = vld [vmem:[#allocation13 + $0x120] sm:$0xff] }
 0x2d6   :  { %1818 = vmatpush1.msra.mxu0 %v6163_v44  ;;  %1889 = vmatpush1.msra.mxu1 %v6166_v33  ;;  %8009 = vst [vmem:[#allocation130_spill] sm:$0xff] %v6175_v40  ;;  %v1639_v33 = vadd.f32 1.0, %v4322_v57  ;;  %v6197_v57 = vld [vmem:[#allocation13 + $0xf8] sm:$0xff] }
 0x2d7   :  { %v4324_v52 = vpop.eup %4323  ;;  %1819 = vmatprep.subr.mxu0 %v6169_v48  ;;  %1890 = vmatprep.subr.mxu1 %v6172_v41  ;;  %v6184_v48 = vld [vmem:[#allocation13 + $0x118] sm:$0xff]  ;;  %8014 = vst [vmem:[#allocation135_spill] sm:$0xff] %v6197_v57 }
 0x2d8   :  { %v1643_v50 = vmul.f32 %v4324_v52, %v4320_v38  ;;  %1820 = vmatpush1.msra.mxu0 %v6175_v40  ;;  %1891 = vmatpush1.msra.mxu1 %v6178_v45  ;;  %8012 = vst [vmem:[#allocation133_spill] sm:$0xff] %v6184_v48  ;;  %v6188_v38 = vld [vmem:[#allocation13 + $0x100] sm:$0xff]  ;;  %v6191_v40 = vld [vmem:[#allocation13 + $0x110] sm:$0xff]  ;;  %v6194_v45 = vld [vmem:[#allocation13 + $0xe8] sm:$0xff]  ;;  %4327 = vrcp.f32 %v1639_v33 }
 0x2d9   :  { %v4326_v44 = vpop.eup %4325  ;;  %1821 = vmatprep.subr.mxu0 %v6181_v15  ;;  %1892 = vmatprep.subr.mxu1 %v6184_v48  ;;  %8013 = vst [vmem:[#allocation134_spill] sm:$0xff] %v6194_v45  ;;  %v6202_v48 = vld [vmem:[#allocation13 + $0xe0] sm:$0xff]  ;;  %v6224_v33 = vld [vmem:[#allocation13 + $0xb8] sm:$0xff] }
 0x2da   :  { %v1642_v52 = vmul.f32 %v4326_v44, %v5848_v25  ;;  %1822 = vmatpush1.msra.mxu0 %v6188_v38  ;;  %1893 = vmatpush1.msra.mxu1 %v6191_v40  ;;  %8015 = vst [vmem:[#allocation136_spill] sm:$0xff] %v6202_v48  ;;  %v6205_v25 = vld [vmem:[#allocation13 + $0xf0] sm:$0xff]  ;;  %v6208_v44 = vld [vmem:[#allocation13 + $0xc8] sm:$0xff]  ;;  %8022 = vst [vmem:[#allocation143_spill] sm:$0xff] %v6224_v33 }
 0x2db   :  { %1823 = vmatprep.subr.mxu0 %v6194_v45  ;;  %1894 = vmatprep.subr.mxu1 %v6197_v57  ;;  %8016 = vst [vmem:[#allocation137_spill] sm:$0xff] %v6205_v25  ;;  %8017 = vst [vmem:[#allocation138_spill] sm:$0xff] %v6208_v44  ;;  %v6211_v45 = vld [vmem:[#allocation13 + $0xd8] sm:$0xff]  ;;  %v6214_v57 = vld [vmem:[#allocation13 + $0xc0] sm:$0xff] }
 0x2dc   :  { %v6200_v15 = vadd.f32 %v1643_v50, %v1642_v52  ;;  %1824 = vmatpush1.msra.mxu0 %v6202_v48  ;;  %1895 = vmatpush1.msra.mxu1 %v6205_v25  ;;  %8018 = vst [vmem:[#allocation139_spill] sm:$0xff] %v6211_v45  ;;  %8019 = vst [vmem:[#allocation140_spill] sm:$0xff] %v6214_v57  ;;  %v6217_v50 = vld [vmem:[#allocation13 + $0xd0] sm:$0xff]  ;;  %v6221_v52 = vld [vmem:[#allocation13 + $0xa8] sm:$0xff] }
 0x2dd   :  { %1825 = vmatprep.subr.mxu0 %v6208_v44  ;;  %1896 = vmatprep.subr.mxu1 %v6211_v45  ;;  %8020 = vst [vmem:[#allocation141_spill] sm:$0xff] %v6217_v50  ;;  %8021 = vst [vmem:[#allocation142_spill] sm:$0xff] %v6221_v52  ;;  %v6227_v44 = vld [vmem:[#allocation13 + $0xa0] sm:$0xff]  ;;  %v6230_v45 = vld [vmem:[#allocation13 + $0xb0] sm:$0xff] }
 0x2de   :  { %1826 = vmatpush1.msra.mxu0 %v6214_v57  ;;  %1897 = vmatpush1.msra.mxu1 %v6217_v50  ;;  %4329 = vtanh.f32 %v6200_v15  ;;  %8023 = vst [vmem:[#allocation144_spill] sm:$0xff] %v6227_v44  ;;  %8024 = vst [vmem:[#allocation145_spill] sm:$0xff] %v6230_v45  ;;  %v6233_v57 = vld [vmem:[#allocation13 + $0x88] sm:$0xff]  ;;  %v6236_v50 = vld [vmem:[#allocation13 + $0x98] sm:$0xff] }
 0x2df   :  { %1827 = vmatprep.subr.mxu0 %v6221_v52  ;;  %1898 = vmatprep.subr.mxu1 %v6224_v33  ;;  %8025 = vst [vmem:[#allocation146_spill] sm:$0xff] %v6233_v57  ;;  %8026 = vst [vmem:[#allocation147_spill] sm:$0xff] %v6236_v50  ;;  %v6239_v52 = vld [vmem:[#allocation13 + $0x80] sm:$0xff]  ;;  %v6242_v33 = vld [vmem:[#allocation13 + $0x90] sm:$0xff] }
 0x2e0   :  { %1828 = vmatpush1.msra.mxu0 %v6227_v44  ;;  %1899 = vmatpush1.msra.mxu1 %v6230_v45  ;;  %8027 = vst [vmem:[#allocation148_spill] sm:$0xff] %v6239_v52  ;;  %8028 = vst [vmem:[#allocation149_spill] sm:$0xff] %v6242_v33  ;;  %v6245_v44 = vld [vmem:[#allocation13 + $0x68] sm:$0xff]  ;;  %v6248_v45 = vld [vmem:[#allocation13 + $0x78] sm:$0xff] }
 0x2e1   :  { %1829 = vmatprep.subr.mxu0 %v6233_v57  ;;  %1900 = vmatprep.subr.mxu1 %v6236_v50  ;;  %8029 = vst [vmem:[#allocation150_spill] sm:$0xff] %v6245_v44  ;;  %8030 = vst [vmem:[#allocation151_spill] sm:$0xff] %v6248_v45  ;;  %v6251_v57 = vld [vmem:[#allocation13 + $0x60] sm:$0xff]  ;;  %v6254_v50 = vld [vmem:[#allocation13 + $0x70] sm:$0xff] }
 0x2e2   :  { %1830 = vmatpush1.msra.mxu0 %v6239_v52  ;;  %1901 = vmatpush1.msra.mxu1 %v6242_v33  ;;  %8031 = vst [vmem:[#allocation152_spill] sm:$0xff] %v6251_v57  ;;  %8032 = vst [vmem:[#allocation153_spill] sm:$0xff] %v6254_v50  ;;  %v6257_v52 = vld [vmem:[#allocation13 + $0x48] sm:$0xff]  ;;  %v6260_v33 = vld [vmem:[#allocation13 + $0x58] sm:$0xff] }
 0x2e3   :  { %1831 = vmatprep.subr.mxu0 %v6245_v44  ;;  %1902 = vmatprep.subr.mxu1 %v6248_v45  ;;  %8033 = vst [vmem:[#allocation154_spill] sm:$0xff] %v6257_v52  ;;  %8034 = vst [vmem:[#allocation155_spill] sm:$0xff] %v6260_v33  ;;  %v6263_v44 = vld [vmem:[#allocation13 + $0x40] sm:$0xff]  ;;  %v6266_v45 = vld [vmem:[#allocation13 + $0x50] sm:$0xff] }
 0x2e4   :  { %1832 = vmatpush1.msra.mxu0 %v6251_v57  ;;  %1903 = vmatpush1.msra.mxu1 %v6254_v50  ;;  %8035 = vst [vmem:[#allocation156_spill] sm:$0xff] %v6263_v44  ;;  %8036 = vst [vmem:[#allocation157_spill] sm:$0xff] %v6266_v45  ;;  %v6269_v57 = vld [vmem:[#allocation13 + $0x28] sm:$0xff]  ;;  %v6272_v50 = vld [vmem:[#allocation13 + $0x38] sm:$0xff] }
 0x2e5   :  { %1833 = vmatprep.subr.mxu0 %v6257_v52  ;;  %1904 = vmatprep.subr.mxu1 %v6260_v33  ;;  %8037 = vst [vmem:[#allocation158_spill] sm:$0xff] %v6269_v57  ;;  %8038 = vst [vmem:[#allocation159_spill] sm:$0xff] %v6272_v50  ;;  %v6275_v52 = vld [vmem:[#allocation13 + $0x20] sm:$0xff]  ;;  %v6278_v33 = vld [vmem:[#allocation13 + $0x30] sm:$0xff] }
 0x2e6   :  { %1834 = vmatpush1.msra.mxu0 %v6263_v44  ;;  %1905 = vmatpush1.msra.mxu1 %v6266_v45  ;;  %8039 = vst [vmem:[#allocation160_spill] sm:$0xff] %v6275_v52  ;;  %8040 = vst [vmem:[#allocation161_spill] sm:$0xff] %v6278_v33  ;;  %v6281_v44 = vld [vmem:[#allocation13 + $0x8] sm:$0xff]  ;;  %v6284_v45 = vld [vmem:[#allocation13 + $0x18] sm:$0xff] }
 0x2e7   :  { %1835 = vmatprep.subr.mxu0 %v6269_v57  ;;  %1906 = vmatprep.subr.mxu1 %v6272_v50  ;;  %v4328_v57 = vpop.eup %4327  ;;  %v6287_v25 = vld [vmem:[#allocation13] sm:$0xff]  ;;  %v6291_v50 = vld [vmem:[#allocation13 + $0x10] sm:$0xff] }
 0x2e8   :  { %1836 = vmatpush1.msra.mxu0 %v6275_v52  ;;  %1907 = vmatpush1.msra.mxu1 %v6278_v33 }
 0x2e9   :  { %1837 = vmatprep.subr.mxu0 %v6281_v44  ;;  %1908 = vmatprep.subr.mxu1 %v6284_v45 }
 0x2ea   :  { %1838 = vmatpush1.msra.mxu0 %v6287_v25  ;;  %1871 = vmatprep.mubr.f32.mxu0 %v7783_v3 }
 0x2eb   :  { %v4330_v52 = vpop.eup %4329  ;;  %1909 = vmatpush1.msra.mxu1 %v6291_v50  ;;  %1942 = vmatprep.mubr.f32.mxu1 %v7783_v3 }
 0x2ec   :  { %v6295_v33 = vmul.f32 %v4330_v52, %v4328_v57  ;;  %2010 = vmatprep.subr.mxu0 %v5885_v56  ;;  %2081 = vmatprep.subr.mxu1 %v5888_v7  ;;  %v8042_v57 = vld [vmem:[#allocation54_spill] sm:$0xff]  ;;  %v8043_v52 = vld [vmem:[#allocation55_spill] sm:$0xff] }
 0x2ee   :  { %8041 = vst [vmem:[#allocation162_spill] sm:$0xff] %v6295_v33  ;;  %1872 = vmatmul.mubr.f32.vlgmr.msra.gmra.mxu0 %v6295_v33  ;;  %1943 = vmatmul.mubr.f32.vlgmr.msra.gmra.mxu1 %v6295_v33  ;;  %v8044_v33 = vld [vmem:[#allocation56_spill] sm:$0xff] }
 0x2ef   :  { %2011 = vmatpush1.msra.mxu0 %v5893_v0  ;;  %2082 = vmatpush1.msra.mxu1 %v5896_v4 }
 0x2f0   :  { %2012 = vmatprep.subr.mxu0 %v5899_v6  ;;  %2083 = vmatprep.subr.mxu1 %v5902_v8 }
 0x2f1   :  { %2013 = vmatpush1.msra.mxu0 %v5905_v9  ;;  %2084 = vmatpush1.msra.mxu1 %v5908_v10 }
 0x2f2   :  { %2014 = vmatprep.subr.mxu0 %v5911_v12  ;;  %2085 = vmatprep.subr.mxu1 %v5914_v30 }
 0x2f3   :  { %2015 = vmatpush1.msra.mxu0 %v5917_v39  ;;  %2086 = vmatpush1.msra.mxu1 %v5920_v16 }
 0x2f4   :  { %2016 = vmatprep.subr.mxu0 %v5923_v18  ;;  %2087 = vmatprep.subr.mxu1 %v5926_v28 }
 0x2f5   :  { %2017 = vmatpush1.msra.mxu0 %v5929_v59  ;;  %2088 = vmatpush1.msra.mxu1 %v5932_v11 }
 0x2f6   :  { %2018 = vmatprep.subr.mxu0 %v5935_v37  ;;  %2089 = vmatprep.subr.mxu1 %v5938_v26 }
 0x2f7   :  { %2019 = vmatpush1.msra.mxu0 %v5941_v31  ;;  %2090 = vmatpush1.msra.mxu1 %v5944_v36 }
 0x2f8   :  { %2020 = vmatprep.subr.mxu0 %v5947_v14  ;;  %2091 = vmatprep.subr.mxu1 %v5950_v34 }
 0x2f9   :  { %2021 = vmatpush1.msra.mxu0 %v5953_v42  ;;  %2092 = vmatpush1.msra.mxu1 %v5956_v24  ;;  %v8073_v24 = vld [vmem:[#allocation118_spill] sm:$0xff] }
 0x2fa   :  { %2022 = vmatprep.subr.mxu0 %v5959_v61  ;;  %2093 = vmatprep.subr.mxu1 %v5962_v17 }
 0x2fb   :  { %2023 = vmatpush1.msra.mxu0 %v5965_v2  ;;  %2094 = vmatpush1.msra.mxu1 %v5968_v58  ;;  %v8072_v2 = vld [vmem:[#allocation24_spill] sm:$0xff] }
 0x2fc   :  { %2024 = vmatprep.subr.mxu0 %v5971_v35  ;;  %2095 = vmatprep.subr.mxu1 %v5974_v20  ;;  %v8071_v35 = vld [vmem:[#allocation26_spill] sm:$0xff] }
 0x2fd   :  { %2025 = vmatpush1.msra.mxu0 %v5977_v27  ;;  %2096 = vmatpush1.msra.mxu1 %v5980_v54  ;;  %v8045_v54 = vld [vmem:[#allocation57_spill] sm:$0xff] }
 0x2fe   :  { %2026 = vmatprep.subr.mxu0 %v5983_v19  ;;  %2097 = vmatprep.subr.mxu1 %v5986_v43  ;;  %v8046_v19 = vld [vmem:[#allocation58_spill] sm:$0xff]  ;;  %v8047_v43 = vld [vmem:[#allocation59_spill] sm:$0xff] }
 0x2ff   :  { %2027 = vmatpush1.msra.mxu0 %v5989_v21  ;;  %2098 = vmatpush1.msra.mxu1 %v5992_v1  ;;  %v8048_v21 = vld [vmem:[#allocation60_spill] sm:$0xff]  ;;  %v8049_v1 = vld [vmem:[#allocation61_spill] sm:$0xff] }
 0x300   :  { %2028 = vmatprep.subr.mxu0 %v5995_v5  ;;  %2099 = vmatprep.subr.mxu1 %v5998_v46  ;;  %v8050_v5 = vld [vmem:[#allocation62_spill] sm:$0xff]  ;;  %v8051_v46 = vld [vmem:[#allocation63_spill] sm:$0xff] }
 0x301   :  { %2029 = vmatpush1.msra.mxu0 %v6001_v51  ;;  %2100 = vmatpush1.msra.mxu1 %v8042_v57  ;;  %v8052_v51 = vld [vmem:[#allocation64_spill] sm:$0xff]  ;;  %v8053_v57 = vld [vmem:[#allocation65_spill] sm:$0xff] }
 0x302   :  { %2030 = vmatprep.subr.mxu0 %v8043_v52  ;;  %2101 = vmatprep.subr.mxu1 %v8044_v33  ;;  %v8054_v52 = vld [vmem:[#allocation66_spill] sm:$0xff]  ;;  %v8055_v33 = vld [vmem:[#allocation67_spill] sm:$0xff] }
 0x303   :  { %2031 = vmatpush1.msra.mxu0 %v8045_v54  ;;  %2102 = vmatpush1.msra.mxu1 %v8046_v19  ;;  %v8056_v54 = vld [vmem:[#allocation68_spill] sm:$0xff]  ;;  %v8057_v19 = vld [vmem:[#allocation69_spill] sm:$0xff] }
 0x304   :  { %2032 = vmatprep.subr.mxu0 %v8047_v43  ;;  %2103 = vmatprep.subr.mxu1 %v8048_v21  ;;  %v8058_v43 = vld [vmem:[#allocation70_spill] sm:$0xff]  ;;  %v8059_v21 = vld [vmem:[#allocation71_spill] sm:$0xff] }
 0x305   :  { %2033 = vmatpush1.msra.mxu0 %v8049_v1  ;;  %2104 = vmatpush1.msra.mxu1 %v8050_v5  ;;  %v8060_v1 = vld [vmem:[#allocation72_spill] sm:$0xff]  ;;  %v8061_v5 = vld [vmem:[#allocation73_spill] sm:$0xff] }
 0x306   :  { %2034 = vmatprep.subr.mxu0 %v8051_v46  ;;  %2105 = vmatprep.subr.mxu1 %v8052_v51  ;;  %v8062_v46 = vld [vmem:[#allocation74_spill] sm:$0xff]  ;;  %v8063_v51 = vld [vmem:[#allocation75_spill] sm:$0xff] }
 0x307   :  { %2035 = vmatpush1.msra.mxu0 %v8053_v57  ;;  %2106 = vmatpush1.msra.mxu1 %v8054_v52  ;;  %v8064_v57 = vld [vmem:[#allocation76_spill] sm:$0xff]  ;;  %v8065_v52 = vld [vmem:[#allocation77_spill] sm:$0xff] }
 0x308   :  { %2036 = vmatprep.subr.mxu0 %v8055_v33  ;;  %2107 = vmatprep.subr.mxu1 %v8056_v54  ;;  %v8066_v54 = vld [vmem:[#allocation78_spill] sm:$0xff] }
 0x309   :  { %2037 = vmatpush1.msra.mxu0 %v8057_v19  ;;  %2108 = vmatpush1.msra.mxu1 %v8058_v43  ;;  %v8067_v43 = vld [vmem:[#allocation79_spill] sm:$0xff] }
 0x30a   :  { %2038 = vmatprep.subr.mxu0 %v8059_v21  ;;  %2109 = vmatprep.subr.mxu1 %v8060_v1  ;;  %v8068_v21 = vld [vmem:[#allocation80_spill] sm:$0xff] }
 0x30b   :  { %2039 = vmatpush1.msra.mxu0 %v8061_v5  ;;  %2110 = vmatpush1.msra.mxu1 %v8062_v46  ;;  %v8069_v5 = vld [vmem:[#allocation23_spill] sm:$0xff] }
 0x30c   :  { %2040 = vmatprep.subr.mxu0 %v8063_v51  ;;  %2111 = vmatprep.subr.mxu1 %v8064_v57  ;;  %v8070_v51 = vld [vmem:[#allocation25_spill] sm:$0xff] }
 0x30d   :  { %2041 = vmatpush1.msra.mxu0 %v8065_v52  ;;  %2074 = vmatprep.mubr.f32.mxu0 %v7783_v3 }
 0x30e   :  { %2112 = vmatpush1.msra.mxu1 %v8066_v54  ;;  %2145 = vmatprep.mubr.f32.mxu1 %v7783_v3 }
 0x30f   :  { %2161 = vmatprep.subr.mxu0 %v8067_v43  ;;  %2232 = vmatprep.subr.mxu1 %v8068_v21 }
 0x38b   :  { %v1722_v1 = vpop.f32.mrf.mxu0  ;;  %v1793_v57 = vpop.f32.mrf.mxu1 }
 0x38c   :  { %v1798_v19 = vadd.f32 %v1722_v1, %v8069_v5  ;;  %v1800_v17 = vadd.f32 %v1793_v57, %v8072_v2 }
 0x38d   :  { %v1724_v46 = vpop.f32.mrf.mxu0  ;;  %v1795_v20 = vpop.f32.mrf.mxu1 }
 0x38e   :  { %v4079_v33 = vmul.f32 -1.442695, %v1798_v19  ;;  %v1799_v27 = vadd.f32 %v1724_v46, %v8070_v51  ;;  %v1801_v54 = vadd.f32 %v1795_v20, %v8071_v35 }
 0x390   :  { %4331 = vpow2.f32 %v4079_v33  ;;  %v4080_v52 = vmul.f32 -1.442695, %v1799_v27  ;;  %v4081_v58 = vmul.f32 -1.442695, %v1801_v54 }
 0x392   :  { %4333 = vpow2.f32 %v4080_v52 }
 0x393   :  { %4335 = vpow2.f32 %v4081_v58 }
 0x394   :  { %4337 = vtanh.f32 %v1800_v17 }
 0x39d   :  { %v4332_v43 = vpop.eup %4331 }
 0x39e   :  { %v1956_v61 = vadd.f32 1.0, %v4332_v43  ;;  %v8074_v43 = vld [vmem:[#allocation120_spill] sm:$0xff] }
 0x39f   :  { %v4334_v21 = vpop.eup %4333 }
 0x3a0   :  { %4339 = vrcp.f32 %v1956_v61  ;;  %v1962_v5 = vadd.f32 1.0, %v4334_v21  ;;  %v4336_v19 = vpop.eup %4335 }
 0x3a1   :  { %v4338_v51 = vpop.eup %4337  ;;  %v1969_v27 = vadd.f32 1.0, %v4336_v19 }
 0x3a2   :  { %4341 = vrcp.f32 %v1962_v5  ;;  %v8075_v5 = vld [vmem:[#allocation121_spill] sm:$0xff] }
 0x3a3   :  { %4343 = vrcp.f32 %v1969_v27 }
 0x3ad   :  { %v4340_v46 = vpop.eup %4339 }
 0x3ae   :  { %v1973_v1 = vmul.f32 %v4340_v46, %v4338_v51  ;;  %v1873_v33 = vpop.f32.mrf.mxu0  ;;  %v1944_v61 = vpop.f32.mrf.mxu1  ;;  %v8076_v51 = vld [vmem:[#allocation119_spill] sm:$0xff] }
 0x3af   :  { %v4342_v52 = vpop.eup %4341  ;;  %v1949_v35 = vadd.f32 %v1873_v33, %v8073_v24  ;;  %v1951_v24 = vadd.f32 %v1944_v61, %v8076_v51  ;;  %v8082_v61 = vld [vmem:[#allocation86_spill] sm:$0xff]  ;;  %v8086_v51 = vld [vmem:[#allocation125_spill] sm:$0xff] }
 0x3b0   :  { %v1972_v20 = vmul.f32 %v4342_v52, %v6094_v13  ;;  %v1875_v2 = vpop.f32.mrf.mxu0  ;;  %v1946_v21 = vpop.f32.mrf.mxu1 }
 0x3b1   :  { %v4082_v54 = vmul.f32 -1.442695, %v1949_v35  ;;  %v1950_v58 = vadd.f32 %v1875_v2, %v8074_v43  ;;  %v1952_v19 = vadd.f32 %v1946_v21, %v8075_v5  ;;  %v4344_v13 = vpop.eup %4343  ;;  %v8078_v2 = vld [vmem:[#allocation82_spill] sm:$0xff]  ;;  %v8080_v43 = vld [vmem:[#allocation84_spill] sm:$0xff]  ;;  %v8084_v21 = vld [vmem:[#allocation123_spill] sm:$0xff] }
 0x3b2   :  { %v6374_v57 = vadd.f32 %v1973_v1, %v1972_v20 }
 0x3b3   :  { %4345 = vpow2.f32 %v4082_v54  ;;  %v4083_v17 = vmul.f32 -1.442695, %v1950_v58  ;;  %v4084_v46 = vmul.f32 -1.442695, %v1952_v19  ;;  %v8079_v54 = vld [vmem:[#allocation83_spill] sm:$0xff]  ;;  %v8081_v58 = vld [vmem:[#allocation85_spill] sm:$0xff] }
 0x3b4   :  { %4347 = vtanh.f32 %v6374_v57  ;;  %v8085_v19 = vld [vmem:[#allocation124_spill] sm:$0xff] }
 0x3b5   :  { %4349 = vpow2.f32 %v4083_v17  ;;  %v8083_v17 = vld [vmem:[#allocation87_spill] sm:$0xff] }
 0x3b6   :  { %4351 = vtanh.f32 %v1951_v24 }
 0x3b7   :  { %4353 = vpow2.f32 %v4084_v46  ;;  %v8087_v46 = vld [vmem:[#allocation126_spill] sm:$0xff] }
 0x3c0   :  { %v4346_v33 = vpop.eup %4345 }
 0x3c1   :  { %v4348_v52 = vpop.eup %4347  ;;  %v1980_v35 = vadd.f32 1.0, %v4346_v33 }
 0x3c2   :  { %v4350_v1 = vpop.eup %4349  ;;  %v6379_v27 = vmul.f32 %v4348_v52, %v4344_v13  ;;  %v8088_v13 = vld [vmem:[#allocation127_spill] sm:$0xff]  ;;  %v8089_v52 = vld [vmem:[#allocation128_spill] sm:$0xff] }
 0x3c3   :  { %4355 = vrcp.f32 %v1980_v35  ;;  %v1986_v20 = vadd.f32 1.0, %v4350_v1  ;;  %v4352_v5 = vpop.eup %4351  ;;  %v8090_v1 = vld [vmem:[#allocation130_spill] sm:$0xff] }
 0x3c4   :  { %8077 = vst [vmem:[#allocation23_spill] sm:$0xff] %v6379_v27  ;;  %2075 = vmatmul.mubr.f32.vlgmr.msra.gmra.mxu0 %v6379_v27  ;;  %2146 = vmatmul.mubr.f32.vlgmr.msra.gmra.mxu1 %v6379_v27  ;;  %v4354_v24 = vpop.eup %4353 }
 0x3c5   :  { %4357 = vrcp.f32 %v1986_v20  ;;  %2162 = vmatpush1.msra.mxu0 %v6103_v32  ;;  %2233 = vmatpush1.msra.mxu1 %v6106_v53  ;;  %v8091_v20 = vld [vmem:[#allocation131_spill] sm:$0xff] }
 0x3c6   :  { %2163 = vmatprep.subr.mxu0 %v6109_v55  ;;  %2234 = vmatprep.subr.mxu1 %v6112_v23 }
 0x3c7   :  { %2164 = vmatpush1.msra.mxu0 %v6115_v49  ;;  %2235 = vmatpush1.msra.mxu1 %v6118_v63 }
 0x3c8   :  { %2165 = vmatprep.subr.mxu0 %v6121_v29  ;;  %2236 = vmatprep.subr.mxu1 %v6124_v60 }
 0x3c9   :  { %2166 = vmatpush1.msra.mxu0 %v6127_v47  ;;  %2237 = vmatpush1.msra.mxu1 %v6130_v62 }
 0x3ca   :  { %2167 = vmatprep.subr.mxu0 %v6133_v22  ;;  %2238 = vmatprep.subr.mxu1 %v8078_v2 }
 0x3cb   :  { %2168 = vmatpush1.msra.mxu0 %v8079_v54  ;;  %2239 = vmatpush1.msra.mxu1 %v8080_v43 }
 0x3cc   :  { %2169 = vmatprep.subr.mxu0 %v8081_v58  ;;  %2240 = vmatprep.subr.mxu1 %v8082_v61 }
 0x3cd   :  { %2170 = vmatpush1.msra.mxu0 %v8083_v17  ;;  %2241 = vmatpush1.msra.mxu1 %v8084_v21  ;;  %v1993_v21 = vadd.f32 1.0, %v4354_v24  ;;  %v8097_v24 = vld [vmem:[#allocation138_spill] sm:$0xff] }
 0x3ce   :  { %2171 = vmatprep.subr.mxu0 %v8085_v19  ;;  %2242 = vmatprep.subr.mxu1 %v8086_v51  ;;  %v8092_v19 = vld [vmem:[#allocation132_spill] sm:$0xff]  ;;  %v8093_v51 = vld [vmem:[#allocation133_spill] sm:$0xff] }
 0x3cf   :  { %2172 = vmatpush1.msra.mxu0 %v8087_v46  ;;  %2243 = vmatpush1.msra.mxu1 %v8088_v13  ;;  %4359 = vrcp.f32 %v1993_v21  ;;  %v8106_v21 = vld [vmem:[#allocation147_spill] sm:$0xff] }
 0x3d0   :  { %v4356_v33 = vpop.eup %4355  ;;  %2173 = vmatprep.subr.mxu0 %v8089_v52  ;;  %2244 = vmatprep.subr.mxu1 %v6172_v41  ;;  %v8094_v52 = vld [vmem:[#allocation134_spill] sm:$0xff]  ;;  %v8095_v41 = vld [vmem:[#allocation135_spill] sm:$0xff] }
 0x3d1   :  { %v1997_v35 = vmul.f32 %v4356_v33, %v4352_v5  ;;  %2174 = vmatpush1.msra.mxu0 %v8090_v1  ;;  %2245 = vmatpush1.msra.mxu1 %v8091_v20  ;;  %v8096_v33 = vld [vmem:[#allocation137_spill] sm:$0xff] }
 0x3d2   :  { %v4358_v27 = vpop.eup %4357  ;;  %2175 = vmatprep.subr.mxu0 %v8092_v19  ;;  %2246 = vmatprep.subr.mxu1 %v8093_v51  ;;  %v8098_v51 = vld [vmem:[#allocation139_spill] sm:$0xff] }
 0x3d3   :  { %v1996_v46 = vmul.f32 %v4358_v27, %v6200_v15  ;;  %2176 = vmatpush1.msra.mxu0 %v6188_v38  ;;  %2247 = vmatpush1.msra.mxu1 %v6191_v40  ;;  %v8099_v15 = vld [vmem:[#allocation140_spill] sm:$0xff]  ;;  %v8100_v27 = vld [vmem:[#allocation141_spill] sm:$0xff] }
 0x3d4   :  { %2177 = vmatprep.subr.mxu0 %v8094_v52  ;;  %2248 = vmatprep.subr.mxu1 %v8095_v41  ;;  %v8101_v52 = vld [vmem:[#allocation142_spill] sm:$0xff]  ;;  %v8102_v41 = vld [vmem:[#allocation143_spill] sm:$0xff] }
 0x3d5   :  { %v6416_v5 = vadd.f32 %v1997_v35, %v1996_v46  ;;  %2178 = vmatpush1.msra.mxu0 %v6202_v48  ;;  %2249 = vmatpush1.msra.mxu1 %v8096_v33  ;;  %v8103_v46 = vld [vmem:[#allocation144_spill] sm:$0xff]  ;;  %v8104_v35 = vld [vmem:[#allocation145_spill] sm:$0xff]  ;;  %v8105_v33 = vld [vmem:[#allocation146_spill] sm:$0xff] }
 0x3d6   :  { %2179 = vmatprep.subr.mxu0 %v8097_v24  ;;  %2250 = vmatprep.subr.mxu1 %v8098_v51  ;;  %v8107_v24 = vld [vmem:[#allocation148_spill] sm:$0xff]  ;;  %v8108_v51 = vld [vmem:[#allocation149_spill] sm:$0xff] }
 0x3d7   :  { %2180 = vmatpush1.msra.mxu0 %v8099_v15  ;;  %2251 = vmatpush1.msra.mxu1 %v8100_v27  ;;  %4361 = vtanh.f32 %v6416_v5  ;;  %v8109_v15 = vld [vmem:[#allocation150_spill] sm:$0xff]  ;;  %v8110_v27 = vld [vmem:[#allocation151_spill] sm:$0xff]  ;;  %v8111_v48 = vld [vmem:[#allocation152_spill] sm:$0xff] }
 0x3d8   :  { %2181 = vmatprep.subr.mxu0 %v8101_v52  ;;  %2252 = vmatprep.subr.mxu1 %v8102_v41  ;;  %v8112_v52 = vld [vmem:[#allocation153_spill] sm:$0xff]  ;;  %v8113_v41 = vld [vmem:[#allocation154_spill] sm:$0xff] }
 0x3d9   :  { %2182 = vmatpush1.msra.mxu0 %v8103_v46  ;;  %2253 = vmatpush1.msra.mxu1 %v8104_v35  ;;  %v8114_v46 = vld [vmem:[#allocation155_spill] sm:$0xff]  ;;  %v8115_v35 = vld [vmem:[#allocation156_spill] sm:$0xff] }
 0x3da   :  { %2183 = vmatprep.subr.mxu0 %v8105_v33  ;;  %2254 = vmatprep.subr.mxu1 %v8106_v21  ;;  %v8116_v33 = vld [vmem:[#allocation157_spill] sm:$0xff]  ;;  %v8117_v21 = vld [vmem:[#allocation158_spill] sm:$0xff] }
 0x3db   :  { %2184 = vmatpush1.msra.mxu0 %v8107_v24  ;;  %2255 = vmatpush1.msra.mxu1 %v8108_v51  ;;  %v8118_v24 = vld [vmem:[#allocation159_spill] sm:$0xff]  ;;  %v8119_v51 = vld [vmem:[#allocation160_spill] sm:$0xff] }
 0x3dc   :  { %2185 = vmatprep.subr.mxu0 %v8109_v15  ;;  %2256 = vmatprep.subr.mxu1 %v8110_v27  ;;  %v8120_v15 = vld [vmem:[#allocation161_spill] sm:$0xff] }
 0x3dd   :  { %2186 = vmatpush1.msra.mxu0 %v8111_v48  ;;  %2257 = vmatpush1.msra.mxu1 %v8112_v52  ;;  %v4360_v52 = vpop.eup %4359 }
 0x3de   :  { %2187 = vmatprep.subr.mxu0 %v8113_v41  ;;  %2258 = vmatprep.subr.mxu1 %v8114_v46 }
 0x3df   :  { %2188 = vmatpush1.msra.mxu0 %v8115_v35  ;;  %2259 = vmatpush1.msra.mxu1 %v8116_v33 }
 0x3e0   :  { %2189 = vmatprep.subr.mxu0 %v8117_v21  ;;  %2260 = vmatprep.subr.mxu1 %v8118_v24 }
 0x3e1   :  { %2190 = vmatpush1.msra.mxu0 %v8119_v51  ;;  %2261 = vmatpush1.msra.mxu1 %v8120_v15 }
 0x3e2   :  { %2191 = vmatprep.subr.mxu0 %v6281_v44  ;;  %2262 = vmatprep.subr.mxu1 %v6284_v45 }
 0x3e3   :  { %2192 = vmatpush1.msra.mxu0 %v6287_v25  ;;  %2225 = vmatprep.mubr.f32.mxu0 %v7783_v3 }
 0x3e4   :  { %v4362_v35 = vpop.eup %4361  ;;  %2263 = vmatpush1.msra.mxu1 %v6291_v50  ;;  %2296 = vmatprep.mubr.f32.mxu1 %v7783_v3 }
 0x3e5   :  { %v6451_v21 = vmul.f32 %v4362_v35, %v4360_v52  ;;  %2363 = vmatprep.subr.mxu0 %v5885_v56  ;;  %2434 = vmatprep.subr.mxu1 %v5888_v7  ;;  %v8122_v56 = vld [vmem:[#allocation38_spill] sm:$0xff]  ;;  %v8123_v7 = vld [vmem:[#allocation39_spill] sm:$0xff]  ;;  %v8145_v52 = vld [vmem:[#allocation61_spill] sm:$0xff] }
 0x3e6   :  { %v8146_v35 = vld [vmem:[#allocation62_spill] sm:$0xff] }
 0x3e7   :  { %8121 = vst [vmem:[#allocation25_spill] sm:$0xff] %v6451_v21  ;;  %2226 = vmatmul.mubr.f32.vlgmr.msra.gmra.mxu0 %v6451_v21  ;;  %2297 = vmatmul.mubr.f32.vlgmr.msra.gmra.mxu1 %v6451_v21  ;;  %v6785_v21 = vld [vmem:[#allocation11 + $0x20] sm:$0xff] }
 0x3e8   :  { %2364 = vmatpush1.msra.mxu0 %v5893_v0  ;;  %2435 = vmatpush1.msra.mxu1 %v5896_v4  ;;  %v8124_v0 = vld [vmem:[#allocation40_spill] sm:$0xff]  ;;  %v8125_v4 = vld [vmem:[#allocation41_spill] sm:$0xff] }
 0x3e9   :  { %2365 = vmatprep.subr.mxu0 %v5899_v6  ;;  %2436 = vmatprep.subr.mxu1 %v5902_v8  ;;  %v8126_v6 = vld [vmem:[#allocation42_spill] sm:$0xff]  ;;  %v8127_v8 = vld [vmem:[#allocation43_spill] sm:$0xff] }
 0x3ea   :  { %2366 = vmatpush1.msra.mxu0 %v5905_v9  ;;  %2437 = vmatpush1.msra.mxu1 %v5908_v10  ;;  %v8128_v9 = vld [vmem:[#allocation44_spill] sm:$0xff]  ;;  %v8129_v10 = vld [vmem:[#allocation45_spill] sm:$0xff] }
 0x3eb   :  { %2367 = vmatprep.subr.mxu0 %v5911_v12  ;;  %2438 = vmatprep.subr.mxu1 %v5914_v30  ;;  %v8130_v12 = vld [vmem:[#allocation46_spill] sm:$0xff]  ;;  %v8131_v30 = vld [vmem:[#allocation47_spill] sm:$0xff] }
 0x3ec   :  { %2368 = vmatpush1.msra.mxu0 %v5917_v39  ;;  %2439 = vmatpush1.msra.mxu1 %v5920_v16  ;;  %v8132_v39 = vld [vmem:[#allocation48_spill] sm:$0xff]  ;;  %v8133_v16 = vld [vmem:[#allocation49_spill] sm:$0xff] }
 0x3ed   :  { %2369 = vmatprep.subr.mxu0 %v5923_v18  ;;  %2440 = vmatprep.subr.mxu1 %v5926_v28  ;;  %v8134_v18 = vld [vmem:[#allocation50_spill] sm:$0xff]  ;;  %v8135_v28 = vld [vmem:[#allocation51_spill] sm:$0xff]  ;;  %8234 = vst [vmem:[#allocation48_spill] sm:$0xff] %v6785_v21 }
 0x3ee   :  { %2370 = vmatpush1.msra.mxu0 %v5929_v59  ;;  %2441 = vmatpush1.msra.mxu1 %v5932_v11  ;;  %v8136_v59 = vld [vmem:[#allocation52_spill] sm:$0xff]  ;;  %v8137_v11 = vld [vmem:[#allocation53_spill] sm:$0xff] }
 0x3ef   :  { %2371 = vmatprep.subr.mxu0 %v5935_v37  ;;  %2442 = vmatprep.subr.mxu1 %v5938_v26  ;;  %v8138_v37 = vld [vmem:[#allocation54_spill] sm:$0xff]  ;;  %v8139_v26 = vld [vmem:[#allocation55_spill] sm:$0xff] }
 0x3f0   :  { %2372 = vmatpush1.msra.mxu0 %v5941_v31  ;;  %2443 = vmatpush1.msra.mxu1 %v5944_v36  ;;  %v8140_v31 = vld [vmem:[#allocation56_spill] sm:$0xff]  ;;  %v8141_v36 = vld [vmem:[#allocation57_spill] sm:$0xff] }
 0x3f1   :  { %2373 = vmatprep.subr.mxu0 %v5947_v14  ;;  %2444 = vmatprep.subr.mxu1 %v5950_v34  ;;  %v8142_v14 = vld [vmem:[#allocation58_spill] sm:$0xff]  ;;  %v8143_v34 = vld [vmem:[#allocation59_spill] sm:$0xff] }
 0x3f2   :  { %2374 = vmatpush1.msra.mxu0 %v5953_v42  ;;  %2445 = vmatpush1.msra.mxu1 %v8122_v56  ;;  %v8144_v42 = vld [vmem:[#allocation60_spill] sm:$0xff]  ;;  %v8147_v56 = vld [vmem:[#allocation63_spill] sm:$0xff] }
 0x3f3   :  { %2375 = vmatprep.subr.mxu0 %v8123_v7  ;;  %2446 = vmatprep.subr.mxu1 %v8124_v0  ;;  %v8148_v7 = vld [vmem:[#allocation64_spill] sm:$0xff]  ;;  %v8149_v0 = vld [vmem:[#allocation65_spill] sm:$0xff] }
 0x3f4   :  { %2376 = vmatpush1.msra.mxu0 %v8125_v4  ;;  %2447 = vmatpush1.msra.mxu1 %v8126_v6  ;;  %v8150_v4 = vld [vmem:[#allocation66_spill] sm:$0xff]  ;;  %v8151_v6 = vld [vmem:[#allocation67_spill] sm:$0xff] }
 0x3f5   :  { %2377 = vmatprep.subr.mxu0 %v8127_v8  ;;  %2448 = vmatprep.subr.mxu1 %v8128_v9  ;;  %v8152_v8 = vld [vmem:[#allocation68_spill] sm:$0xff]  ;;  %v8153_v9 = vld [vmem:[#allocation69_spill] sm:$0xff] }
 0x3f6   :  { %2378 = vmatpush1.msra.mxu0 %v8129_v10  ;;  %2449 = vmatpush1.msra.mxu1 %v8130_v12  ;;  %v8154_v10 = vld [vmem:[#allocation70_spill] sm:$0xff]  ;;  %v8155_v12 = vld [vmem:[#allocation71_spill] sm:$0xff] }
 0x3f7   :  { %2379 = vmatprep.subr.mxu0 %v8131_v30  ;;  %2450 = vmatprep.subr.mxu1 %v8132_v39  ;;  %v8156_v30 = vld [vmem:[#allocation72_spill] sm:$0xff]  ;;  %v8157_v39 = vld [vmem:[#allocation73_spill] sm:$0xff] }
 0x3f8   :  { %2380 = vmatpush1.msra.mxu0 %v8133_v16  ;;  %2451 = vmatpush1.msra.mxu1 %v8134_v18  ;;  %v8158_v16 = vld [vmem:[#allocation74_spill] sm:$0xff]  ;;  %v8159_v18 = vld [vmem:[#allocation75_spill] sm:$0xff] }
 0x3f9   :  { %2381 = vmatprep.subr.mxu0 %v8135_v28  ;;  %2452 = vmatprep.subr.mxu1 %v8136_v59  ;;  %v8160_v28 = vld [vmem:[#allocation76_spill] sm:$0xff]  ;;  %v8161_v59 = vld [vmem:[#allocation77_spill] sm:$0xff] }
 0x3fa   :  { %2382 = vmatpush1.msra.mxu0 %v8137_v11  ;;  %2453 = vmatpush1.msra.mxu1 %v8138_v37  ;;  %v8162_v11 = vld [vmem:[#allocation78_spill] sm:$0xff]  ;;  %v8163_v37 = vld [vmem:[#allocation79_spill] sm:$0xff] }
 0x3fb   :  { %2383 = vmatprep.subr.mxu0 %v8139_v26  ;;  %2454 = vmatprep.subr.mxu1 %v8140_v31  ;;  %v8164_v26 = vld [vmem:[#allocation80_spill] sm:$0xff] }
 0x3fc   :  { %2384 = vmatpush1.msra.mxu0 %v8141_v36  ;;  %2455 = vmatpush1.msra.mxu1 %v8142_v14  ;;  %v8165_v36 = vld [vmem:[#allocation27_spill] sm:$0xff] }
 0x3fd   :  { %2385 = vmatprep.subr.mxu0 %v8143_v34  ;;  %2456 = vmatprep.subr.mxu1 %v8144_v42 }
 0x3fe   :  { %2386 = vmatpush1.msra.mxu0 %v8145_v52  ;;  %2457 = vmatpush1.msra.mxu1 %v8146_v35  ;;  %v8166_v52 = vld [vmem:[#allocation29_spill] sm:$0xff] }
 0x3ff   :  { %2387 = vmatprep.subr.mxu0 %v8147_v56  ;;  %2458 = vmatprep.subr.mxu1 %v8148_v7 }
 0x400   :  { %2388 = vmatpush1.msra.mxu0 %v8149_v0  ;;  %2459 = vmatpush1.msra.mxu1 %v8150_v4  ;;  %v8167_v4 = vld [vmem:[#allocation30_spill] sm:$0xff] }
 0x401   :  { %2389 = vmatprep.subr.mxu0 %v8151_v6  ;;  %2460 = vmatprep.subr.mxu1 %v8152_v8 }
 0x402   :  { %2390 = vmatpush1.msra.mxu0 %v8153_v9  ;;  %2461 = vmatpush1.msra.mxu1 %v8154_v10  ;;  %v8168_v9 = vld [vmem:[#allocation28_spill] sm:$0xff] }
 0x403   :  { %2391 = vmatprep.subr.mxu0 %v8155_v12  ;;  %2462 = vmatprep.subr.mxu1 %v8156_v30 }
 0x404   :  { %2392 = vmatpush1.msra.mxu0 %v8157_v39  ;;  %2463 = vmatpush1.msra.mxu1 %v8158_v16 }
 0x405   :  { %2393 = vmatprep.subr.mxu0 %v8159_v18  ;;  %2464 = vmatprep.subr.mxu1 %v8160_v28 }
 0x406   :  { %2394 = vmatpush1.msra.mxu0 %v8161_v59  ;;  %2427 = vmatprep.mubr.f32.mxu0 %v7783_v3 }
 0x407   :  { %2465 = vmatpush1.msra.mxu1 %v8162_v11  ;;  %2498 = vmatprep.mubr.f32.mxu1 %v7783_v3 }
 0x408   :  { %2513 = vmatprep.subr.mxu0 %v8163_v37  ;;  %2584 = vmatprep.subr.mxu1 %v8164_v26 }
 0x484   :  { %v2076_v31 = vpop.f32.mrf.mxu0  ;;  %v2147_v56 = vpop.f32.mrf.mxu1 }
 0x485   :  { %v2152_v14 = vadd.f32 %v2076_v31, %v8165_v36  ;;  %v2154_v10 = vadd.f32 %v2147_v56, %v8168_v9  ;;  %v8169_v36 = vld [vmem:[#allocation114_spill] sm:$0xff] }
 0x486   :  { %v2078_v34 = vpop.f32.mrf.mxu0  ;;  %v2149_v0 = vpop.f32.mrf.mxu1 }
 0x487   :  { %v4085_v42 = vmul.f32 -1.442695, %v2152_v14  ;;  %v2153_v35 = vadd.f32 %v2078_v34, %v8166_v52  ;;  %v2155_v6 = vadd.f32 %v2149_v0, %v8167_v4 }
 0x489   :  { %4363 = vpow2.f32 %v4085_v42  ;;  %v4086_v7 = vmul.f32 -1.442695, %v2153_v35  ;;  %v4087_v8 = vmul.f32 -1.442695, %v2155_v6  ;;  %v8170_v35 = vld [vmem:[#allocation116_spill] sm:$0xff] }
 0x48b   :  { %4365 = vpow2.f32 %v4086_v7 }
 0x48c   :  { %4367 = vpow2.f32 %v4087_v8  ;;  %v8171_v8 = vld [vmem:[#allocation117_spill] sm:$0xff] }
 0x48d   :  { %4369 = vtanh.f32 %v2154_v10  ;;  %v8172_v10 = vld [vmem:[#allocation115_spill] sm:$0xff] }
 0x496   :  { %v4364_v12 = vpop.eup %4363 }
 0x497   :  { %v2310_v30 = vadd.f32 1.0, %v4364_v12 }
 0x498   :  { %v4366_v39 = vpop.eup %4365 }
 0x499   :  { %4371 = vrcp.f32 %v2310_v30  ;;  %v2316_v16 = vadd.f32 1.0, %v4366_v39  ;;  %v4368_v18 = vpop.eup %4367 }
 0x49a   :  { %v4370_v28 = vpop.eup %4369  ;;  %v2323_v37 = vadd.f32 1.0, %v4368_v18 }
 0x49b   :  { %4373 = vrcp.f32 %v2316_v16 }
 0x49c   :  { %4375 = vrcp.f32 %v2323_v37  ;;  %v8190_v37 = vld [vmem:[#allocation143_spill] sm:$0xff] }
 0x4a6   :  { %v4372_v59 = vpop.eup %4371 }
 0x4a7   :  { %v2327_v11 = vmul.f32 %v4372_v59, %v4370_v28  ;;  %v2227_v26 = vpop.f32.mrf.mxu0  ;;  %v2298_v0 = vpop.f32.mrf.mxu1 }
 0x4a8   :  { %v4374_v31 = vpop.eup %4373  ;;  %v2303_v14 = vadd.f32 %v2227_v26, %v8169_v36  ;;  %v2305_v12 = vadd.f32 %v2298_v0, %v8172_v10  ;;  %v8191_v26 = vld [vmem:[#allocation144_spill] sm:$0xff]  ;;  %v8193_v36 = vld [vmem:[#allocation146_spill] sm:$0xff] }
 0x4a9   :  { %v2326_v34 = vmul.f32 %v4374_v31, %v6374_v57  ;;  %v2229_v42 = vpop.f32.mrf.mxu0  ;;  %v2300_v6 = vpop.f32.mrf.mxu1  ;;  %v8192_v31 = vld [vmem:[#allocation145_spill] sm:$0xff]  ;;  %v8200_v0 = vld [vmem:[#allocation158_spill] sm:$0xff] }
 0x4aa   :  { %v4088_v52 = vmul.f32 -1.442695, %v2303_v14  ;;  %v2304_v56 = vadd.f32 %v2229_v42, %v8170_v35  ;;  %v2306_v9 = vadd.f32 %v2300_v6, %v8171_v8  ;;  %v4376_v57 = vpop.eup %4375  ;;  %v8194_v14 = vld [vmem:[#allocation147_spill] sm:$0xff]  ;;  %v8196_v42 = vld [vmem:[#allocation149_spill] sm:$0xff]  ;;  %v6650_v10 = vld [vmem:[#allocation11 + $0x198] sm:$0xff] }
 0x4ab   :  { %v6530_v7 = vadd.f32 %v2327_v11, %v2326_v34  ;;  %v8195_v34 = vld [vmem:[#allocation148_spill] sm:$0xff]  ;;  %v8198_v35 = vld [vmem:[#allocation153_spill] sm:$0xff]  ;;  %v6641_v6 = vld [vmem:[#allocation11 + $0x1a0] sm:$0xff] }
 0x4ac   :  { %4377 = vpow2.f32 %v4088_v52  ;;  %v4089_v4 = vmul.f32 -1.442695, %v2304_v56  ;;  %v4090_v30 = vmul.f32 -1.442695, %v2306_v9  ;;  %v8197_v52 = vld [vmem:[#allocation150_spill] sm:$0xff]  ;;  %v8199_v56 = vld [vmem:[#allocation156_spill] sm:$0xff] }
 0x4ad   :  { %4379 = vtanh.f32 %v6530_v7  ;;  %v6644_v8 = vld [vmem:[#allocation11 + $0x1b0] sm:$0xff]  ;;  %v6647_v9 = vld [vmem:[#allocation11 + $0x188] sm:$0xff] }
 0x4ae   :  { %4381 = vpow2.f32 %v4089_v4  ;;  %v6638_v4 = vld [vmem:[#allocation11 + $0x1b8] sm:$0xff] }
 0x4af   :  { %4383 = vtanh.f32 %v2305_v12  ;;  %v6653_v12 = vld [vmem:[#allocation11 + $0x180] sm:$0xff] }
 0x4b0   :  { %4385 = vpow2.f32 %v4090_v30  ;;  %v6656_v30 = vld [vmem:[#allocation11 + $0x190] sm:$0xff] }
 0x4b9   :  { %v4378_v39 = vpop.eup %4377 }
 0x4ba   :  { %v4380_v16 = vpop.eup %4379  ;;  %v2334_v18 = vadd.f32 1.0, %v4378_v39  ;;  %v6662_v39 = vld [vmem:[#allocation11 + $0x178] sm:$0xff] }
 0x4bb   :  { %v4382_v28 = vpop.eup %4381  ;;  %v6535_v59 = vmul.f32 %v4380_v16, %v4376_v57  ;;  %v6659_v57 = vld [vmem:[#allocation11 + $0x168] sm:$0xff]  ;;  %v6665_v16 = vld [vmem:[#allocation11 + $0x160] sm:$0xff] }
 0x4bc   :  { %4387 = vrcp.f32 %v2334_v18  ;;  %v2340_v11 = vadd.f32 1.0, %v4382_v28  ;;  %v6668_v18 = vld [vmem:[#allocation11 + $0x170] sm:$0xff]  ;;  %v6671_v28 = vld [vmem:[#allocation11 + $0x148] sm:$0xff] }
 0x4bd   :  { %8173 = vst [vmem:[#allocation26_spill] sm:$0xff] %v6535_v59  ;;  %2428 = vmatmul.mubr.f32.vlgmr.msra.gmra.mxu0 %v6535_v59  ;;  %2499 = vmatmul.mubr.f32.vlgmr.msra.gmra.mxu1 %v6535_v59  ;;  %v6791_v59 = vld [vmem:[#allocation11 + $0x8] sm:$0xff] }
 0x4be   :  { %4389 = vrcp.f32 %v2340_v11  ;;  %2514 = vmatpush1.msra.mxu0 %v6103_v32  ;;  %2585 = vmatpush1.msra.mxu1 %v6106_v53  ;;  %v8174_v32 = vld [vmem:[#allocation123_spill] sm:$0xff]  ;;  %v4384_v53 = vpop.eup %4383  ;;  %v6674_v11 = vld [vmem:[#allocation11 + $0x158] sm:$0xff]  ;;  %8236 = vst [vmem:[#allocation50_spill] sm:$0xff] %v6791_v59 }
 0x4bf   :  { %2515 = vmatprep.subr.mxu0 %v6109_v55  ;;  %2586 = vmatprep.subr.mxu1 %v6112_v23  ;;  %v8175_v55 = vld [vmem:[#allocation124_spill] sm:$0xff]  ;;  %v8176_v23 = vld [vmem:[#allocation125_spill] sm:$0xff] }
 0x4c0   :  { %2516 = vmatpush1.msra.mxu0 %v6115_v49  ;;  %2587 = vmatpush1.msra.mxu1 %v6118_v63  ;;  %v4386_v49 = vpop.eup %4385  ;;  %v8177_v63 = vld [vmem:[#allocation126_spill] sm:$0xff] }
 0x4c1   :  { %2517 = vmatprep.subr.mxu0 %v6121_v29  ;;  %2588 = vmatprep.subr.mxu1 %v6124_v60  ;;  %v8178_v60 = vld [vmem:[#allocation128_spill] sm:$0xff] }
 0x4c2   :  { %2518 = vmatpush1.msra.mxu0 %v6127_v47  ;;  %2589 = vmatpush1.msra.mxu1 %v6130_v62  ;;  %v8179_v47 = vld [vmem:[#allocation129_spill] sm:$0xff] }
 0x4c3   :  { %2519 = vmatprep.subr.mxu0 %v6133_v22  ;;  %2590 = vmatprep.subr.mxu1 %v8078_v2  ;;  %v2347_v2 = vadd.f32 1.0, %v4386_v49  ;;  %v6689_v49 = vld [vmem:[#allocation11 + $0x120] sm:$0xff] }
 0x4c4   :  { %2520 = vmatpush1.msra.mxu0 %v8079_v54  ;;  %2591 = vmatpush1.msra.mxu1 %v8080_v43  ;;  %v8180_v54 = vld [vmem:[#allocation133_spill] sm:$0xff]  ;;  %8202 = vst [vmem:[#allocation118_spill] sm:$0xff] %v6689_v49 }
 0x4c5   :  { %2521 = vmatprep.subr.mxu0 %v8081_v58  ;;  %2592 = vmatprep.subr.mxu1 %v8082_v61  ;;  %v8181_v58 = vld [vmem:[#allocation134_spill] sm:$0xff]  ;;  %v8182_v61 = vld [vmem:[#allocation135_spill] sm:$0xff]  ;;  %4391 = vrcp.f32 %v2347_v2 }
 0x4c6   :  { %2522 = vmatpush1.msra.mxu0 %v8083_v17  ;;  %2593 = vmatpush1.msra.mxu1 %v8174_v32  ;;  %v6677_v32 = vld [vmem:[#allocation11 + $0x140] sm:$0xff]  ;;  %v6710_v2 = vld [vmem:[#allocation11 + $0xf8] sm:$0xff] }
 0x4c7   :  { %2523 = vmatprep.subr.mxu0 %v8175_v55  ;;  %2594 = vmatprep.subr.mxu1 %v8176_v23  ;;  %v6683_v55 = vld [vmem:[#allocation11 + $0x128] sm:$0xff]  ;;  %v6686_v23 = vld [vmem:[#allocation11 + $0x138] sm:$0xff]  ;;  %8209 = vst [vmem:[#allocation85_spill] sm:$0xff] %v6710_v2 }
 0x4c8   :  { %2524 = vmatpush1.msra.mxu0 %v8177_v63  ;;  %2595 = vmatpush1.msra.mxu1 %v8088_v13  ;;  %v8183_v13 = vld [vmem:[#allocation136_spill] sm:$0xff]  ;;  %v6692_v63 = vld [vmem:[#allocation11 + $0x130] sm:$0xff] }
 0x4c9   :  { %v4388_v29 = vpop.eup %4387  ;;  %2525 = vmatprep.subr.mxu0 %v8178_v60  ;;  %2596 = vmatprep.subr.mxu1 %v8179_v47  ;;  %8203 = vst [vmem:[#allocation120_spill] sm:$0xff] %v6692_v63  ;;  %v6698_v60 = vld [vmem:[#allocation11 + $0x118] sm:$0xff]  ;;  %v6701_v47 = vld [vmem:[#allocation11 + $0x100] sm:$0xff] }
 0x4ca   :  { %v2351_v62 = vmul.f32 %v4388_v29, %v4384_v53  ;;  %2526 = vmatpush1.msra.mxu0 %v8090_v1  ;;  %2597 = vmatpush1.msra.mxu1 %v8091_v20  ;;  %v8184_v1 = vld [vmem:[#allocation137_spill] sm:$0xff]  ;;  %v8186_v20 = vld [vmem:[#allocation139_spill] sm:$0xff]  ;;  %v6695_v29 = vld [vmem:[#allocation11 + $0x108] sm:$0xff]  ;;  %8205 = vst [vmem:[#allocation119_spill] sm:$0xff] %v6698_v60 }
 0x4cb   :  { %v4390_v22 = vpop.eup %4389  ;;  %2527 = vmatprep.subr.mxu0 %v8092_v19  ;;  %2598 = vmatprep.subr.mxu1 %v8180_v54  ;;  %v8185_v19 = vld [vmem:[#allocation138_spill] sm:$0xff]  ;;  %v6680_v53 = vld [vmem:[#allocation11 + $0x150] sm:$0xff]  ;;  %8204 = vst [vmem:[#allocation121_spill] sm:$0xff] %v6695_v29  ;;  %8206 = vst [vmem:[#allocation82_spill] sm:$0xff] %v6701_v47 }
 0x4cc   :  { %v2350_v43 = vmul.f32 %v4390_v22, %v6416_v5  ;;  %2528 = vmatpush1.msra.mxu0 %v6188_v38  ;;  %2599 = vmatpush1.msra.mxu1 %v6191_v40  ;;  %v8187_v5 = vld [vmem:[#allocation140_spill] sm:$0xff]  ;;  %v8188_v38 = vld [vmem:[#allocation141_spill] sm:$0xff]  ;;  %v8189_v40 = vld [vmem:[#allocation142_spill] sm:$0xff] }
 0x4cd   :  { %2529 = vmatprep.subr.mxu0 %v8181_v58  ;;  %2600 = vmatprep.subr.mxu1 %v8182_v61  ;;  %v6707_v22 = vld [vmem:[#allocation11 + $0xe8] sm:$0xff]  ;;  %v6713_v54 = vld [vmem:[#allocation11 + $0xe0] sm:$0xff]  ;;  %v6722_v61 = vld [vmem:[#allocation11 + $0xd8] sm:$0xff] }
 0x4ce   :  { %v6572_v17 = vadd.f32 %v2351_v62, %v2350_v43  ;;  %2530 = vmatpush1.msra.mxu0 %v8183_v13  ;;  %2601 = vmatpush1.msra.mxu1 %v8184_v1  ;;  %v6704_v62 = vld [vmem:[#allocation11 + $0x110] sm:$0xff]  ;;  %8208 = vst [vmem:[#allocation84_spill] sm:$0xff] %v6707_v22  ;;  %8210 = vst [vmem:[#allocation86_spill] sm:$0xff] %v6713_v54  ;;  %v6719_v58 = vld [vmem:[#allocation11 + $0xc8] sm:$0xff] }
 0x4cf   :  { %2531 = vmatprep.subr.mxu0 %v8185_v19  ;;  %2602 = vmatprep.subr.mxu1 %v8186_v20  ;;  %8207 = vst [vmem:[#allocation83_spill] sm:$0xff] %v6704_v62  ;;  %v6716_v43 = vld [vmem:[#allocation11 + $0xf0] sm:$0xff]  ;;  %8212 = vst [vmem:[#allocation127_spill] sm:$0xff] %v6719_v58  ;;  %v6725_v13 = vld [vmem:[#allocation11 + $0xc0] sm:$0xff] }
 0x4d0   :  { %2532 = vmatpush1.msra.mxu0 %v8187_v5  ;;  %2603 = vmatpush1.msra.mxu1 %v8188_v38  ;;  %4393 = vtanh.f32 %v6572_v17  ;;  %8211 = vst [vmem:[#allocation87_spill] sm:$0xff] %v6716_v43  ;;  %8213 = vst [vmem:[#allocation130_spill] sm:$0xff] %v6722_v61  ;;  %v6728_v1 = vld [vmem:[#allocation11 + $0xd0] sm:$0xff]  ;;  %v6731_v19 = vld [vmem:[#allocation11 + $0xa8] sm:$0xff] }
 0x4d1   :  { %2533 = vmatprep.subr.mxu0 %v8189_v40  ;;  %2604 = vmatprep.subr.mxu1 %v8190_v37  ;;  %8214 = vst [vmem:[#allocation131_spill] sm:$0xff] %v6725_v13  ;;  %8215 = vst [vmem:[#allocation132_spill] sm:$0xff] %v6728_v1  ;;  %v6734_v20 = vld [vmem:[#allocation11 + $0xb8] sm:$0xff]  ;;  %v6737_v5 = vld [vmem:[#allocation11 + $0xa0] sm:$0xff] }
 0x4d2   :  { %2534 = vmatpush1.msra.mxu0 %v8191_v26  ;;  %2605 = vmatpush1.msra.mxu1 %v8192_v31  ;;  %8216 = vst [vmem:[#allocation151_spill] sm:$0xff] %v6731_v19  ;;  %8217 = vst [vmem:[#allocation152_spill] sm:$0xff] %v6734_v20  ;;  %v6740_v38 = vld [vmem:[#allocation11 + $0xb0] sm:$0xff]  ;;  %v6743_v40 = vld [vmem:[#allocation11 + $0x88] sm:$0xff] }
 0x4d3   :  { %2535 = vmatprep.subr.mxu0 %v8193_v36  ;;  %2606 = vmatprep.subr.mxu1 %v8194_v14  ;;  %8218 = vst [vmem:[#allocation154_spill] sm:$0xff] %v6737_v5  ;;  %8219 = vst [vmem:[#allocation155_spill] sm:$0xff] %v6740_v38  ;;  %v6746_v37 = vld [vmem:[#allocation11 + $0x98] sm:$0xff]  ;;  %v6749_v26 = vld [vmem:[#allocation11 + $0x80] sm:$0xff] }
 0x4d4   :  { %2536 = vmatpush1.msra.mxu0 %v8195_v34  ;;  %2607 = vmatpush1.msra.mxu1 %v8196_v42  ;;  %8220 = vst [vmem:[#allocation157_spill] sm:$0xff] %v6743_v40  ;;  %8221 = vst [vmem:[#allocation159_spill] sm:$0xff] %v6746_v37  ;;  %v6752_v31 = vld [vmem:[#allocation11 + $0x90] sm:$0xff]  ;;  %v6755_v36 = vld [vmem:[#allocation11 + $0x68] sm:$0xff] }
 0x4d5   :  { %2537 = vmatprep.subr.mxu0 %v8197_v52  ;;  %2608 = vmatprep.subr.mxu1 %v8110_v27  ;;  %v6632_v27 = vld [vmem:[#allocation11 + $0x1d0] sm:$0xff]  ;;  %8222 = vst [vmem:[#allocation160_spill] sm:$0xff] %v6749_v26  ;;  %8223 = vst [vmem:[#allocation161_spill] sm:$0xff] %v6752_v31  ;;  %v6758_v14 = vld [vmem:[#allocation11 + $0x78] sm:$0xff] }
 0x4d6   :  { %2538 = vmatpush1.msra.mxu0 %v8111_v48  ;;  %2609 = vmatpush1.msra.mxu1 %v8198_v35  ;;  %v4392_v48 = vpop.eup %4391  ;;  %8224 = vst [vmem:[#allocation38_spill] sm:$0xff] %v6755_v36  ;;  %8225 = vst [vmem:[#allocation39_spill] sm:$0xff] %v6758_v14  ;;  %v6761_v34 = vld [vmem:[#allocation11 + $0x60] sm:$0xff]  ;;  %v6764_v42 = vld [vmem:[#allocation11 + $0x70] sm:$0xff] }
 0x4d7   :  { %2539 = vmatprep.subr.mxu0 %v8113_v41  ;;  %2610 = vmatprep.subr.mxu1 %v8114_v46  ;;  %v6635_v46 = vld [vmem:[#allocation11 + $0x1a8] sm:$0xff]  ;;  %8226 = vst [vmem:[#allocation40_spill] sm:$0xff] %v6761_v34  ;;  %8227 = vst [vmem:[#allocation41_spill] sm:$0xff] %v6764_v42  ;;  %v6770_v35 = vld [vmem:[#allocation11 + $0x58] sm:$0xff] }
 0x4d8   :  { %2540 = vmatpush1.msra.mxu0 %v8199_v56  ;;  %2611 = vmatpush1.msra.mxu1 %v8116_v33  ;;  %v6767_v52 = vld [vmem:[#allocation11 + $0x48] sm:$0xff]  ;;  %8229 = vst [vmem:[#allocation43_spill] sm:$0xff] %v6770_v35  ;;  %v6773_v56 = vld [vmem:[#allocation11 + $0x40] sm:$0xff] }
 0x4d9   :  { %2541 = vmatprep.subr.mxu0 %v8200_v0  ;;  %2612 = vmatprep.subr.mxu1 %v8118_v24  ;;  %v6609_v24 = vld [vmem:[#allocation11 + $0x1e8] sm:$0xff]  ;;  %8228 = vst [vmem:[#allocation42_spill] sm:$0xff] %v6767_v52  ;;  %8230 = vst [vmem:[#allocation44_spill] sm:$0xff] %v6773_v56  ;;  %v6776_v0 = vld [vmem:[#allocation11 + $0x50] sm:$0xff] }
 0x4da   :  { %2542 = vmatpush1.msra.mxu0 %v8119_v51  ;;  %2613 = vmatpush1.msra.mxu1 %v8120_v15  ;;  %v6612_v51 = vld [vmem:[#allocation11 + $0x1f8] sm:$0xff]  ;;  %v6629_v15 = vld [vmem:[#allocation11 + $0x1c0] sm:$0xff]  ;;  %8231 = vst [vmem:[#allocation45_spill] sm:$0xff] %v6776_v0 }
 0x4db   :  { %2543 = vmatprep.subr.mxu0 %v6281_v44  ;;  %2614 = vmatprep.subr.mxu1 %v6284_v45  ;;  %v6617_v45 = vld [vmem:[#allocation11 + $0x1e0] sm:$0xff]  ;;  %v6623_v44 = vld [vmem:[#allocation11 + $0x1c8] sm:$0xff] }
 0x4dc   :  { %2544 = vmatpush1.msra.mxu0 %v6287_v25  ;;  %2577 = vmatprep.mubr.f32.mxu0 %v7783_v3  ;;  %v6620_v25 = vld [vmem:[#allocation11 + $0x1f0] sm:$0xff] }
 0x4dd   :  { %v4394_v41 = vpop.eup %4393  ;;  %2615 = vmatpush1.msra.mxu1 %v6291_v50  ;;  %2648 = vmatprep.mubr.f32.mxu1 %v7783_v3  ;;  %v6626_v50 = vld [vmem:[#allocation11 + $0x1d8] sm:$0xff] }
 0x4de   :  { %v6607_v33 = vmul.f32 %v4394_v41, %v4392_v48  ;;  %2715 = vmatprep.subr.mxu0 %v6609_v24  ;;  %2786 = vmatprep.subr.mxu1 %v6612_v51  ;;  %v6779_v48 = vld [vmem:[#allocation11 + $0x28] sm:$0xff]  ;;  %v6782_v41 = vld [vmem:[#allocation11 + $0x38] sm:$0xff] }
 0x4df   :  { %8232 = vst [vmem:[#allocation46_spill] sm:$0xff] %v6779_v48  ;;  %8233 = vst [vmem:[#allocation47_spill] sm:$0xff] %v6782_v41 }
 0x4e0   :  { %8201 = vst [vmem:[#allocation24_spill] sm:$0xff] %v6607_v33  ;;  %2578 = vmatmul.mubr.f32.vlgmr.msra.gmra.mxu0 %v6607_v33  ;;  %2649 = vmatmul.mubr.f32.vlgmr.msra.gmra.mxu1 %v6607_v33  ;;  %v6788_v33 = vld [vmem:[#allocation11 + $0x30] sm:$0xff] }
 0x4e1   :  { %2716 = vmatpush1.msra.mxu0 %v6617_v45  ;;  %2787 = vmatpush1.msra.mxu1 %v6620_v25  ;;  %8235 = vst [vmem:[#allocation49_spill] sm:$0xff] %v6788_v33 }
 0x4e2   :  { %2717 = vmatprep.subr.mxu0 %v6623_v44  ;;  %2788 = vmatprep.subr.mxu1 %v6626_v50 }
 0x4e3   :  { %2718 = vmatpush1.msra.mxu0 %v6629_v15  ;;  %2789 = vmatpush1.msra.mxu1 %v6632_v27 }
 0x4e4   :  { %2719 = vmatprep.subr.mxu0 %v6635_v46  ;;  %2790 = vmatprep.subr.mxu1 %v6638_v4 }
 0x4e5   :  { %2720 = vmatpush1.msra.mxu0 %v6641_v6  ;;  %2791 = vmatpush1.msra.mxu1 %v6644_v8 }
 0x4e6   :  { %2721 = vmatprep.subr.mxu0 %v6647_v9  ;;  %2792 = vmatprep.subr.mxu1 %v6650_v10 }
 0x4e7   :  { %2722 = vmatpush1.msra.mxu0 %v6653_v12  ;;  %2793 = vmatpush1.msra.mxu1 %v6656_v30 }
 0x4e8   :  { %2723 = vmatprep.subr.mxu0 %v6659_v57  ;;  %2794 = vmatprep.subr.mxu1 %v6662_v39 }
 0x4e9   :  { %2724 = vmatpush1.msra.mxu0 %v6665_v16  ;;  %2795 = vmatpush1.msra.mxu1 %v6668_v18 }
 0x4ea   :  { %2725 = vmatprep.subr.mxu0 %v6671_v28  ;;  %2796 = vmatprep.subr.mxu1 %v6674_v11 }
 0x4eb   :  { %2726 = vmatpush1.msra.mxu0 %v6677_v32  ;;  %2797 = vmatpush1.msra.mxu1 %v6680_v53 }
 0x4ec   :  { %2727 = vmatprep.subr.mxu0 %v6683_v55  ;;  %2798 = vmatprep.subr.mxu1 %v6686_v23 }
 0x4ed   :  { %2728 = vmatpush1.msra.mxu0 %v6689_v49  ;;  %2799 = vmatpush1.msra.mxu1 %v6692_v63 }
 0x4ee   :  { %2729 = vmatprep.subr.mxu0 %v6695_v29  ;;  %2800 = vmatprep.subr.mxu1 %v6698_v60 }
 0x4ef   :  { %2730 = vmatpush1.msra.mxu0 %v6701_v47  ;;  %2801 = vmatpush1.msra.mxu1 %v6704_v62 }
 0x4f0   :  { %2731 = vmatprep.subr.mxu0 %v6707_v22  ;;  %2802 = vmatprep.subr.mxu1 %v6710_v2 }
 0x4f1   :  { %2732 = vmatpush1.msra.mxu0 %v6713_v54  ;;  %2803 = vmatpush1.msra.mxu1 %v6716_v43 }
 0x4f2   :  { %2733 = vmatprep.subr.mxu0 %v6719_v58  ;;  %2804 = vmatprep.subr.mxu1 %v6722_v61 }
 0x4f3   :  { %2734 = vmatpush1.msra.mxu0 %v6725_v13  ;;  %2805 = vmatpush1.msra.mxu1 %v6728_v1 }
 0x4f4   :  { %2735 = vmatprep.subr.mxu0 %v6731_v19  ;;  %2806 = vmatprep.subr.mxu1 %v6734_v20 }
 0x4f5   :  { %2736 = vmatpush1.msra.mxu0 %v6737_v5  ;;  %2807 = vmatpush1.msra.mxu1 %v6740_v38  ;;  %v8246_v5 = vld [vmem:[#allocation110_spill] sm:$0xff] }
 0x4f6   :  { %2737 = vmatprep.subr.mxu0 %v6743_v40  ;;  %2808 = vmatprep.subr.mxu1 %v6746_v37 }
 0x4f7   :  { %2738 = vmatpush1.msra.mxu0 %v6749_v26  ;;  %2809 = vmatpush1.msra.mxu1 %v6752_v31 }
 0x4f8   :  { %2739 = vmatprep.subr.mxu0 %v6755_v36  ;;  %2810 = vmatprep.subr.mxu1 %v6758_v14  ;;  %v8244_v36 = vld [vmem:[#allocation34_spill] sm:$0xff] }
 0x4f9   :  { %2740 = vmatpush1.msra.mxu0 %v6761_v34  ;;  %2811 = vmatpush1.msra.mxu1 %v6764_v42 }
 0x4fa   :  { %2741 = vmatprep.subr.mxu0 %v6767_v52  ;;  %2812 = vmatprep.subr.mxu1 %v6770_v35  ;;  %v8243_v52 = vld [vmem:[#allocation33_spill] sm:$0xff] }
 0x4fb   :  { %2742 = vmatpush1.msra.mxu0 %v6773_v56  ;;  %2813 = vmatpush1.msra.mxu1 %v6776_v0  ;;  %v6794_v0 = vld [vmem:[#allocation11 + $0x18] sm:$0xff] }
 0x4fc   :  { %2743 = vmatprep.subr.mxu0 %v6779_v48  ;;  %2814 = vmatprep.subr.mxu1 %v6782_v41  ;;  %8237 = vst [vmem:[#allocation51_spill] sm:$0xff] %v6794_v0  ;;  %v6797_v48 = vld [vmem:[#allocation11] sm:$0xff]  ;;  %v6801_v41 = vld [vmem:[#allocation11 + $0x10] sm:$0xff] }
 0x4fd   :  { %2744 = vmatpush1.msra.mxu0 %v6785_v21  ;;  %2815 = vmatpush1.msra.mxu1 %v6788_v33  ;;  %8238 = vst [vmem:[#allocation52_spill] sm:$0xff] %v6797_v48  ;;  %8239 = vst [vmem:[#allocation53_spill] sm:$0xff] %v6801_v41  ;;  %v6805_v33 = vld [vmem:[#allocation13 + $0x1e8] sm:$0xff]  ;;  %v8242_v21 = vld [vmem:[#allocation31_spill] sm:$0xff] }
 0x4fe   :  { %2745 = vmatprep.subr.mxu0 %v6791_v59  ;;  %2816 = vmatprep.subr.mxu1 %v6794_v0  ;;  %8240 = vst [vmem:[#allocation54_spill] sm:$0xff] %v6805_v33  ;;  %v6808_v59 = vld [vmem:[#allocation13 + $0x1f8] sm:$0xff] }
 0x4ff   :  { %2746 = vmatpush1.msra.mxu0 %v6797_v48  ;;  %2779 = vmatprep.mubr.f32.mxu0 %v7783_v3  ;;  %8241 = vst [vmem:[#allocation55_spill] sm:$0xff] %v6808_v59 }
 0x500   :  { %2817 = vmatpush1.msra.mxu1 %v6801_v41  ;;  %2850 = vmatprep.mubr.f32.mxu1 %v7783_v3 }
 0x501   :  { %2865 = vmatprep.subr.mxu0 %v6805_v33  ;;  %2936 = vmatprep.subr.mxu1 %v6808_v59  ;;  %v8245_v33 = vld [vmem:[#allocation32_spill] sm:$0xff] }
 0x57d   :  { %v2429_v0 = vpop.f32.mrf.mxu0  ;;  %v2500_v34 = vpop.f32.mrf.mxu1 }
 0x57e   :  { %v2505_v56 = vadd.f32 %v2429_v0, %v8242_v21  ;;  %v2507_v37 = vadd.f32 %v2500_v34, %v8245_v33 }
 0x57f   :  { %v2431_v48 = vpop.f32.mrf.mxu0  ;;  %v2502_v14 = vpop.f32.mrf.mxu1 }
 0x580   :  { %v4091_v35 = vmul.f32 -1.442695, %v2505_v56  ;;  %v2506_v42 = vadd.f32 %v2431_v48, %v8243_v52  ;;  %v2508_v31 = vadd.f32 %v2502_v14, %v8244_v36 }
 0x582   :  { %4395 = vpow2.f32 %v4091_v35  ;;  %v4092_v41 = vmul.f32 -1.442695, %v2506_v42  ;;  %v4093_v26 = vmul.f32 -1.442695, %v2508_v31 }
 0x584   :  { %4397 = vpow2.f32 %v4092_v41 }
 0x585   :  { %4399 = vpow2.f32 %v4093_v26 }
 0x586   :  { %4401 = vtanh.f32 %v2507_v37 }
 0x58f   :  { %v4396_v40 = vpop.eup %4395 }
 0x590   :  { %v2662_v38 = vadd.f32 1.0, %v4396_v40  ;;  %v8247_v40 = vld [vmem:[#allocation112_spill] sm:$0xff] }
 0x591   :  { %v4398_v59 = vpop.eup %4397 }
 0x592   :  { %4403 = vrcp.f32 %v2662_v38  ;;  %v2668_v21 = vadd.f32 1.0, %v4398_v59  ;;  %v4400_v56 = vpop.eup %4399 }
 0x593   :  { %v4402_v52 = vpop.eup %4401  ;;  %v2675_v42 = vadd.f32 1.0, %v4400_v56 }
 0x594   :  { %4405 = vrcp.f32 %v2668_v21  ;;  %v8248_v21 = vld [vmem:[#allocation113_spill] sm:$0xff] }
 0x595   :  { %4407 = vrcp.f32 %v2675_v42 }
 0x59f   :  { %v4404_v0 = vpop.eup %4403 }
 0x5a0   :  { %v2679_v35 = vmul.f32 %v4404_v0, %v4402_v52  ;;  %v2579_v48 = vpop.f32.mrf.mxu0  ;;  %v2650_v59 = vpop.f32.mrf.mxu1  ;;  %v8249_v52 = vld [vmem:[#allocation111_spill] sm:$0xff] }
 0x5a1   :  { %v4406_v41 = vpop.eup %4405  ;;  %v2655_v36 = vadd.f32 %v2579_v48, %v8246_v5  ;;  %v2657_v5 = vadd.f32 %v2650_v59, %v8249_v52  ;;  %v6839_v59 = vld [vmem:[#allocation13 + $0x1c0] sm:$0xff]  ;;  %v6854_v52 = vld [vmem:[#allocation13 + $0x1b0] sm:$0xff] }
 0x5a2   :  { %v2678_v31 = vmul.f32 %v4406_v41, %v6530_v7  ;;  %v2581_v33 = vpop.f32.mrf.mxu0  ;;  %v2652_v37 = vpop.f32.mrf.mxu1  ;;  %8252 = vst [vmem:[#allocation58_spill] sm:$0xff] %v6854_v52 }
 0x5a3   :  { %v4094_v14 = vmul.f32 -1.442695, %v2655_v36  ;;  %v2656_v26 = vadd.f32 %v2581_v33, %v8247_v40  ;;  %v2658_v56 = vadd.f32 %v2652_v37, %v8248_v21  ;;  %v4408_v7 = vpop.eup %4407  ;;  %v6827_v33 = vld [vmem:[#allocation13 + $0x1e0] sm:$0xff]  ;;  %v6833_v40 = vld [vmem:[#allocation13 + $0x1c8] sm:$0xff]  ;;  %v6848_v21 = vld [vmem:[#allocation13 + $0x1b8] sm:$0xff] }
 0x5a4   :  { %v6818_v34 = vadd.f32 %v2679_v35, %v2678_v31  ;;  %v6845_v37 = vld [vmem:[#allocation13 + $0x1a8] sm:$0xff] }
 0x5a5   :  { %4409 = vpow2.f32 %v4094_v14  ;;  %v4095_v38 = vmul.f32 -1.442695, %v2656_v26  ;;  %v4096_v0 = vmul.f32 -1.442695, %v2658_v56  ;;  %v6830_v14 = vld [vmem:[#allocation13 + $0x1f0] sm:$0xff]  ;;  %v6836_v26 = vld [vmem:[#allocation13 + $0x1d8] sm:$0xff] }
 0x5a6   :  { %4411 = vtanh.f32 %v6818_v34  ;;  %v6851_v56 = vld [vmem:[#allocation13 + $0x1a0] sm:$0xff] }
 0x5a7   :  { %4413 = vpow2.f32 %v4095_v38  ;;  %v6842_v38 = vld [vmem:[#allocation13 + $0x1d0] sm:$0xff]  ;;  %8251 = vst [vmem:[#allocation57_spill] sm:$0xff] %v6851_v56 }
 0x5a8   :  { %4415 = vtanh.f32 %v2657_v5  ;;  %v6857_v5 = vld [vmem:[#allocation13 + $0x188] sm:$0xff] }
 0x5a9   :  { %4417 = vpow2.f32 %v4096_v0  ;;  %8253 = vst [vmem:[#allocation59_spill] sm:$0xff] %v6857_v5  ;;  %v6860_v0 = vld [vmem:[#allocation13 + $0x198] sm:$0xff] }
 0x5aa   :  { %8254 = vst [vmem:[#allocation60_spill] sm:$0xff] %v6860_v0 }
 0x5b2   :  { %v4410_v48 = vpop.eup %4409 }
 0x5b3   :  { %v4412_v41 = vpop.eup %4411  ;;  %v2686_v36 = vadd.f32 1.0, %v4410_v48  ;;  %v6866_v48 = vld [vmem:[#allocation13 + $0x190] sm:$0xff] }
 0x5b4   :  { %v4414_v35 = vpop.eup %4413  ;;  %v6823_v42 = vmul.f32 %v4412_v41, %v4408_v7  ;;  %v6863_v7 = vld [vmem:[#allocation13 + $0x180] sm:$0xff]  ;;  %8256 = vst [vmem:[#allocation62_spill] sm:$0xff] %v6866_v48  ;;  %v6869_v41 = vld [vmem:[#allocation13 + $0x168] sm:$0xff] }
 0x5b5   :  { %4419 = vrcp.f32 %v2686_v36  ;;  %v2692_v31 = vadd.f32 1.0, %v4414_v35  ;;  %8255 = vst [vmem:[#allocation61_spill] sm:$0xff] %v6863_v7  ;;  %8257 = vst [vmem:[#allocation63_spill] sm:$0xff] %v6869_v41  ;;  %v6872_v36 = vld [vmem:[#allocation13 + $0x178] sm:$0xff]  ;;  %v6875_v35 = vld [vmem:[#allocation13 + $0x160] sm:$0xff] }
 0x5b6   :  { %8250 = vst [vmem:[#allocation56_spill] sm:$0xff] %v6823_v42  ;;  %2780 = vmatmul.mubr.f32.vlgmr.msra.gmra.mxu0 %v6823_v42  ;;  %2851 = vmatmul.mubr.f32.vlgmr.msra.gmra.mxu1 %v6823_v42  ;;  %8258 = vst [vmem:[#allocation64_spill] sm:$0xff] %v6872_v36  ;;  %v4416_v42 = vpop.eup %4415 }
 0x5b7   :  { %4421 = vrcp.f32 %v2692_v31  ;;  %2866 = vmatpush1.msra.mxu0 %v6827_v33  ;;  %2937 = vmatpush1.msra.mxu1 %v6830_v14  ;;  %8259 = vst [vmem:[#allocation65_spill] sm:$0xff] %v6875_v35  ;;  %v6878_v31 = vld [vmem:[#allocation13 + $0x170] sm:$0xff] }
 0x5b8   :  { %2867 = vmatprep.subr.mxu0 %v6833_v40  ;;  %2938 = vmatprep.subr.mxu1 %v6836_v26  ;;  %8260 = vst [vmem:[#allocation66_spill] sm:$0xff] %v6878_v31 }
 0x5b9   :  { %2868 = vmatpush1.msra.mxu0 %v6839_v59  ;;  %2939 = vmatpush1.msra.mxu1 %v6842_v38 }
 0x5ba   :  { %2869 = vmatprep.subr.mxu0 %v6845_v37  ;;  %2940 = vmatprep.subr.mxu1 %v6848_v21 }
 0x5bb   :  { %2870 = vmatpush1.msra.mxu0 %v6851_v56  ;;  %2941 = vmatpush1.msra.mxu1 %v6854_v52  ;;  %v6902_v52 = vld [vmem:[#allocation13 + $0x130] sm:$0xff]  ;;  %v6905_v56 = vld [vmem:[#allocation13 + $0x108] sm:$0xff] }
 0x5bc   :  { %2871 = vmatprep.subr.mxu0 %v6857_v5  ;;  %2942 = vmatprep.subr.mxu1 %v6860_v0  ;;  %v6887_v0 = vld [vmem:[#allocation13 + $0x140] sm:$0xff]  ;;  %v6896_v5 = vld [vmem:[#allocation13 + $0x138] sm:$0xff]  ;;  %8268 = vst [vmem:[#allocation74_spill] sm:$0xff] %v6902_v52  ;;  %8269 = vst [vmem:[#allocation75_spill] sm:$0xff] %v6905_v56 }
 0x5bd   :  { %2872 = vmatpush1.msra.mxu0 %v6863_v7  ;;  %2943 = vmatpush1.msra.mxu1 %v6866_v48  ;;  %v6881_v7 = vld [vmem:[#allocation13 + $0x148] sm:$0xff]  ;;  %v6884_v48 = vld [vmem:[#allocation13 + $0x158] sm:$0xff]  ;;  %8263 = vst [vmem:[#allocation69_spill] sm:$0xff] %v6887_v0  ;;  %8266 = vst [vmem:[#allocation72_spill] sm:$0xff] %v6896_v5 }
 0x5be   :  { %2873 = vmatprep.subr.mxu0 %v6869_v41  ;;  %2944 = vmatprep.subr.mxu1 %v6872_v36  ;;  %8261 = vst [vmem:[#allocation67_spill] sm:$0xff] %v6881_v7  ;;  %8262 = vst [vmem:[#allocation68_spill] sm:$0xff] %v6884_v48  ;;  %v4418_v41 = vpop.eup %4417  ;;  %v6890_v36 = vld [vmem:[#allocation13 + $0x150] sm:$0xff] }
 0x5bf   :  { %2874 = vmatpush1.msra.mxu0 %v6875_v35  ;;  %2945 = vmatpush1.msra.mxu1 %v6878_v31  ;;  %8264 = vst [vmem:[#allocation70_spill] sm:$0xff] %v6890_v36  ;;  %v6893_v31 = vld [vmem:[#allocation13 + $0x128] sm:$0xff] }
 0x5c0   :  { %2875 = vmatprep.subr.mxu0 %v6881_v7  ;;  %2946 = vmatprep.subr.mxu1 %v6884_v48  ;;  %8265 = vst [vmem:[#allocation71_spill] sm:$0xff] %v6893_v31  ;;  %v6899_v48 = vld [vmem:[#allocation13 + $0x120] sm:$0xff] }
 0x5c1   :  { %2876 = vmatpush1.msra.mxu0 %v6887_v0  ;;  %2947 = vmatpush1.msra.mxu1 %v6890_v36  ;;  %8267 = vst [vmem:[#allocation73_spill] sm:$0xff] %v6899_v48  ;;  %v2699_v36 = vadd.f32 1.0, %v4418_v41  ;;  %v6921_v41 = vld [vmem:[#allocation13 + $0xf8] sm:$0xff] }
 0x5c2   :  { %v4420_v35 = vpop.eup %4419  ;;  %2877 = vmatprep.subr.mxu0 %v6893_v31  ;;  %2948 = vmatprep.subr.mxu1 %v6896_v5  ;;  %v6908_v31 = vld [vmem:[#allocation13 + $0x118] sm:$0xff]  ;;  %8272 = vst [vmem:[#allocation78_spill] sm:$0xff] %v6921_v41 }
 0x5c3   :  { %v2703_v7 = vmul.f32 %v4420_v35, %v4416_v42  ;;  %2878 = vmatpush1.msra.mxu0 %v6899_v48  ;;  %2949 = vmatpush1.msra.mxu1 %v6902_v52  ;;  %8270 = vst [vmem:[#allocation76_spill] sm:$0xff] %v6908_v31  ;;  %v6912_v35 = vld [vmem:[#allocation13 + $0x100] sm:$0xff]  ;;  %v6915_v48 = vld [vmem:[#allocation13 + $0x110] sm:$0xff]  ;;  %v6918_v52 = vld [vmem:[#allocation13 + $0xe8] sm:$0xff]  ;;  %4423 = vrcp.f32 %v2699_v36 }
 0x5c4   :  { %v4422_v0 = vpop.eup %4421  ;;  %2879 = vmatprep.subr.mxu0 %v6905_v56  ;;  %2950 = vmatprep.subr.mxu1 %v6908_v31  ;;  %8271 = vst [vmem:[#allocation77_spill] sm:$0xff] %v6918_v52  ;;  %v6926_v31 = vld [vmem:[#allocation13 + $0xe0] sm:$0xff]  ;;  %v6948_v36 = vld [vmem:[#allocation13 + $0xb8] sm:$0xff] }
 0x5c5   :  { %v2702_v42 = vmul.f32 %v4422_v0, %v6572_v17  ;;  %2880 = vmatpush1.msra.mxu0 %v6912_v35  ;;  %2951 = vmatpush1.msra.mxu1 %v6915_v48  ;;  %8273 = vst [vmem:[#allocation79_spill] sm:$0xff] %v6926_v31  ;;  %v6929_v17 = vld [vmem:[#allocation13 + $0xf0] sm:$0xff]  ;;  %v6932_v0 = vld [vmem:[#allocation13 + $0xc8] sm:$0xff]  ;;  %8280 = vst [vmem:[#allocation116_spill] sm:$0xff] %v6948_v36 }
 0x5c6   :  { %2881 = vmatprep.subr.mxu0 %v6918_v52  ;;  %2952 = vmatprep.subr.mxu1 %v6921_v41  ;;  %8274 = vst [vmem:[#allocation80_spill] sm:$0xff] %v6929_v17  ;;  %8275 = vst [vmem:[#allocation27_spill] sm:$0xff] %v6932_v0  ;;  %v6935_v52 = vld [vmem:[#allocation13 + $0xd8] sm:$0xff]  ;;  %v6938_v41 = vld [vmem:[#allocation13 + $0xc0] sm:$0xff] }
 0x5c7   :  { %v6924_v56 = vadd.f32 %v2703_v7, %v2702_v42  ;;  %2882 = vmatpush1.msra.mxu0 %v6926_v31  ;;  %2953 = vmatpush1.msra.mxu1 %v6929_v17  ;;  %8276 = vst [vmem:[#allocation29_spill] sm:$0xff] %v6935_v52  ;;  %8277 = vst [vmem:[#allocation30_spill] sm:$0xff] %v6938_v41  ;;  %v6941_v7 = vld [vmem:[#allocation13 + $0xd0] sm:$0xff]  ;;  %v6945_v42 = vld [vmem:[#allocation13 + $0xa8] sm:$0xff] }
 0x5c8   :  { %2883 = vmatprep.subr.mxu0 %v6932_v0  ;;  %2954 = vmatprep.subr.mxu1 %v6935_v52  ;;  %8278 = vst [vmem:[#allocation28_spill] sm:$0xff] %v6941_v7  ;;  %8279 = vst [vmem:[#allocation114_spill] sm:$0xff] %v6945_v42  ;;  %v6951_v0 = vld [vmem:[#allocation13 + $0xa0] sm:$0xff]  ;;  %v6954_v52 = vld [vmem:[#allocation13 + $0xb0] sm:$0xff] }
 0x5c9   :  { %2884 = vmatpush1.msra.mxu0 %v6938_v41  ;;  %2955 = vmatpush1.msra.mxu1 %v6941_v7  ;;  %4425 = vtanh.f32 %v6924_v56  ;;  %8281 = vst [vmem:[#allocation117_spill] sm:$0xff] %v6951_v0  ;;  %8282 = vst [vmem:[#allocation115_spill] sm:$0xff] %v6954_v52  ;;  %v6957_v41 = vld [vmem:[#allocation13 + $0x88] sm:$0xff]  ;;  %v6960_v7 = vld [vmem:[#allocation13 + $0x98] sm:$0xff] }
 0x5ca   :  { %2885 = vmatprep.subr.mxu0 %v6945_v42  ;;  %2956 = vmatprep.subr.mxu1 %v6948_v36  ;;  %8283 = vst [vmem:[#allocation123_spill] sm:$0xff] %v6957_v41  ;;  %8284 = vst [vmem:[#allocation124_spill] sm:$0xff] %v6960_v7  ;;  %v6963_v42 = vld [vmem:[#allocation13 + $0x80] sm:$0xff]  ;;  %v6966_v36 = vld [vmem:[#allocation13 + $0x90] sm:$0xff] }
 0x5cb   :  { %2886 = vmatpush1.msra.mxu0 %v6951_v0  ;;  %2957 = vmatpush1.msra.mxu1 %v6954_v52  ;;  %8285 = vst [vmem:[#allocation125_spill] sm:$0xff] %v6963_v42  ;;  %8286 = vst [vmem:[#allocation126_spill] sm:$0xff] %v6966_v36  ;;  %v6969_v0 = vld [vmem:[#allocation13 + $0x68] sm:$0xff]  ;;  %v6972_v52 = vld [vmem:[#allocation13 + $0x78] sm:$0xff] }
 0x5cc   :  { %2887 = vmatprep.subr.mxu0 %v6957_v41  ;;  %2958 = vmatprep.subr.mxu1 %v6960_v7  ;;  %8287 = vst [vmem:[#allocation128_spill] sm:$0xff] %v6969_v0  ;;  %8288 = vst [vmem:[#allocation129_spill] sm:$0xff] %v6972_v52  ;;  %v6975_v41 = vld [vmem:[#allocation13 + $0x60] sm:$0xff]  ;;  %v6978_v7 = vld [vmem:[#allocation13 + $0x70] sm:$0xff] }
 0x5cd   :  { %2888 = vmatpush1.msra.mxu0 %v6963_v42  ;;  %2959 = vmatpush1.msra.mxu1 %v6966_v36  ;;  %8289 = vst [vmem:[#allocation133_spill] sm:$0xff] %v6975_v41  ;;  %8290 = vst [vmem:[#allocation134_spill] sm:$0xff] %v6978_v7  ;;  %v6981_v42 = vld [vmem:[#allocation13 + $0x48] sm:$0xff]  ;;  %v6984_v36 = vld [vmem:[#allocation13 + $0x58] sm:$0xff] }
 0x5ce   :  { %2889 = vmatprep.subr.mxu0 %v6969_v0  ;;  %2960 = vmatprep.subr.mxu1 %v6972_v52  ;;  %8291 = vst [vmem:[#allocation135_spill] sm:$0xff] %v6981_v42  ;;  %8292 = vst [vmem:[#allocation136_spill] sm:$0xff] %v6984_v36  ;;  %v6987_v0 = vld [vmem:[#allocation13 + $0x40] sm:$0xff]  ;;  %v6990_v52 = vld [vmem:[#allocation13 + $0x50] sm:$0xff] }
 0x5cf   :  { %2890 = vmatpush1.msra.mxu0 %v6975_v41  ;;  %2961 = vmatpush1.msra.mxu1 %v6978_v7  ;;  %8293 = vst [vmem:[#allocation137_spill] sm:$0xff] %v6987_v0  ;;  %8294 = vst [vmem:[#allocation138_spill] sm:$0xff] %v6990_v52  ;;  %v6993_v41 = vld [vmem:[#allocation13 + $0x28] sm:$0xff]  ;;  %v6996_v7 = vld [vmem:[#allocation13 + $0x38] sm:$0xff] }
 0x5d0   :  { %2891 = vmatprep.subr.mxu0 %v6981_v42  ;;  %2962 = vmatprep.subr.mxu1 %v6984_v36  ;;  %8295 = vst [vmem:[#allocation139_spill] sm:$0xff] %v6993_v41  ;;  %8296 = vst [vmem:[#allocation140_spill] sm:$0xff] %v6996_v7  ;;  %v6999_v42 = vld [vmem:[#allocation13 + $0x20] sm:$0xff]  ;;  %v7002_v36 = vld [vmem:[#allocation13 + $0x30] sm:$0xff] }
 0x5d1   :  { %2892 = vmatpush1.msra.mxu0 %v6987_v0  ;;  %2963 = vmatpush1.msra.mxu1 %v6990_v52  ;;  %8297 = vst [vmem:[#allocation141_spill] sm:$0xff] %v6999_v42  ;;  %8298 = vst [vmem:[#allocation142_spill] sm:$0xff] %v7002_v36  ;;  %v7005_v0 = vld [vmem:[#allocation13 + $0x8] sm:$0xff]  ;;  %v7008_v52 = vld [vmem:[#allocation13 + $0x18] sm:$0xff] }
 0x5d2   :  { %2893 = vmatprep.subr.mxu0 %v6993_v41  ;;  %2964 = vmatprep.subr.mxu1 %v6996_v7  ;;  %v4424_v41 = vpop.eup %4423  ;;  %v7011_v17 = vld [vmem:[#allocation13] sm:$0xff]  ;;  %v7015_v7 = vld [vmem:[#allocation13 + $0x10] sm:$0xff] }
 0x5d3   :  { %2894 = vmatpush1.msra.mxu0 %v6999_v42  ;;  %2965 = vmatpush1.msra.mxu1 %v7002_v36 }
 0x5d4   :  { %2895 = vmatprep.subr.mxu0 %v7005_v0  ;;  %2966 = vmatprep.subr.mxu1 %v7008_v52 }
 0x5d5   :  { %2896 = vmatpush1.msra.mxu0 %v7011_v17  ;;  %2929 = vmatprep.mubr.f32.mxu0 %v7783_v3 }
 0x5d6   :  { %v4426_v42 = vpop.eup %4425  ;;  %2967 = vmatpush1.msra.mxu1 %v7015_v7  ;;  %3000 = vmatprep.mubr.f32.mxu1 %v7783_v3 }
 0x5d7   :  { %v7019_v36 = vmul.f32 %v4426_v42, %v4424_v41  ;;  %3067 = vmatprep.subr.mxu0 %v6609_v24  ;;  %3138 = vmatprep.subr.mxu1 %v6612_v51  ;;  %v8300_v41 = vld [vmem:[#allocation154_spill] sm:$0xff]  ;;  %v8301_v42 = vld [vmem:[#allocation155_spill] sm:$0xff] }
 0x5d9   :  { %8299 = vst [vmem:[#allocation143_spill] sm:$0xff] %v7019_v36  ;;  %2930 = vmatmul.mubr.f32.vlgmr.msra.gmra.mxu0 %v7019_v36  ;;  %3001 = vmatmul.mubr.f32.vlgmr.msra.gmra.mxu1 %v7019_v36  ;;  %v8302_v36 = vld [vmem:[#allocation157_spill] sm:$0xff] }
 0x5da   :  { %3068 = vmatpush1.msra.mxu0 %v6617_v45  ;;  %3139 = vmatpush1.msra.mxu1 %v6620_v25 }
 0x5db   :  { %3069 = vmatprep.subr.mxu0 %v6623_v44  ;;  %3140 = vmatprep.subr.mxu1 %v6626_v50 }
 0x5dc   :  { %3070 = vmatpush1.msra.mxu0 %v6629_v15  ;;  %3141 = vmatpush1.msra.mxu1 %v6632_v27 }
 0x5dd   :  { %3071 = vmatprep.subr.mxu0 %v6635_v46  ;;  %3142 = vmatprep.subr.mxu1 %v6638_v4 }
 0x5de   :  { %3072 = vmatpush1.msra.mxu0 %v6641_v6  ;;  %3143 = vmatpush1.msra.mxu1 %v6644_v8 }
 0x5df   :  { %3073 = vmatprep.subr.mxu0 %v6647_v9  ;;  %3144 = vmatprep.subr.mxu1 %v6650_v10 }
 0x5e0   :  { %3074 = vmatpush1.msra.mxu0 %v6653_v12  ;;  %3145 = vmatpush1.msra.mxu1 %v6656_v30 }
 0x5e1   :  { %3075 = vmatprep.subr.mxu0 %v6659_v57  ;;  %3146 = vmatprep.subr.mxu1 %v6662_v39 }
 0x5e2   :  { %3076 = vmatpush1.msra.mxu0 %v6665_v16  ;;  %3147 = vmatpush1.msra.mxu1 %v6668_v18 }
 0x5e3   :  { %3077 = vmatprep.subr.mxu0 %v6671_v28  ;;  %3148 = vmatprep.subr.mxu1 %v6674_v11 }
 0x5e4   :  { %3078 = vmatpush1.msra.mxu0 %v6677_v32  ;;  %3149 = vmatpush1.msra.mxu1 %v6680_v53 }
 0x5e5   :  { %3079 = vmatprep.subr.mxu0 %v6683_v55  ;;  %3150 = vmatprep.subr.mxu1 %v6686_v23 }
 0x5e6   :  { %3080 = vmatpush1.msra.mxu0 %v6689_v49  ;;  %3151 = vmatpush1.msra.mxu1 %v6692_v63  ;;  %v8328_v63 = vld [vmem:[#allocation106_spill] sm:$0xff] }
 0x5e7   :  { %3081 = vmatprep.subr.mxu0 %v6695_v29  ;;  %3152 = vmatprep.subr.mxu1 %v6698_v60  ;;  %v8327_v29 = vld [vmem:[#allocation36_spill] sm:$0xff] }
 0x5e8   :  { %3082 = vmatpush1.msra.mxu0 %v6701_v47  ;;  %3153 = vmatpush1.msra.mxu1 %v6704_v62  ;;  %v8326_v47 = vld [vmem:[#allocation89_spill] sm:$0xff] }
 0x5e9   :  { %3083 = vmatprep.subr.mxu0 %v6707_v22  ;;  %3154 = vmatprep.subr.mxu1 %v6710_v2 }
 0x5ea   :  { %3084 = vmatpush1.msra.mxu0 %v6713_v54  ;;  %3155 = vmatpush1.msra.mxu1 %v6716_v43  ;;  %v8303_v54 = vld [vmem:[#allocation159_spill] sm:$0xff]  ;;  %v8304_v43 = vld [vmem:[#allocation160_spill] sm:$0xff] }
 0x5eb   :  { %3085 = vmatprep.subr.mxu0 %v6719_v58  ;;  %3156 = vmatprep.subr.mxu1 %v6722_v61  ;;  %v8305_v58 = vld [vmem:[#allocation161_spill] sm:$0xff]  ;;  %v8306_v61 = vld [vmem:[#allocation38_spill] sm:$0xff] }
 0x5ec   :  { %3086 = vmatpush1.msra.mxu0 %v6725_v13  ;;  %3157 = vmatpush1.msra.mxu1 %v6728_v1  ;;  %v8307_v13 = vld [vmem:[#allocation39_spill] sm:$0xff]  ;;  %v8308_v1 = vld [vmem:[#allocation40_spill] sm:$0xff] }
 0x5ed   :  { %3087 = vmatprep.subr.mxu0 %v6731_v19  ;;  %3158 = vmatprep.subr.mxu1 %v6734_v20  ;;  %v8309_v19 = vld [vmem:[#allocation41_spill] sm:$0xff]  ;;  %v8310_v20 = vld [vmem:[#allocation42_spill] sm:$0xff] }
 0x5ee   :  { %3088 = vmatpush1.msra.mxu0 %v8300_v41  ;;  %3159 = vmatpush1.msra.mxu1 %v8301_v42  ;;  %v8311_v41 = vld [vmem:[#allocation43_spill] sm:$0xff]  ;;  %v8312_v42 = vld [vmem:[#allocation44_spill] sm:$0xff] }
 0x5ef   :  { %3089 = vmatprep.subr.mxu0 %v8302_v36  ;;  %3160 = vmatprep.subr.mxu1 %v8303_v54  ;;  %v8313_v36 = vld [vmem:[#allocation45_spill] sm:$0xff]  ;;  %v8314_v54 = vld [vmem:[#allocation46_spill] sm:$0xff] }
 0x5f0   :  { %3090 = vmatpush1.msra.mxu0 %v8304_v43  ;;  %3161 = vmatpush1.msra.mxu1 %v8305_v58  ;;  %v8315_v43 = vld [vmem:[#allocation47_spill] sm:$0xff]  ;;  %v8316_v58 = vld [vmem:[#allocation48_spill] sm:$0xff] }
 0x5f1   :  { %3091 = vmatprep.subr.mxu0 %v8306_v61  ;;  %3162 = vmatprep.subr.mxu1 %v8307_v13  ;;  %v8317_v61 = vld [vmem:[#allocation49_spill] sm:$0xff]  ;;  %v8318_v13 = vld [vmem:[#allocation50_spill] sm:$0xff] }
 0x5f2   :  { %3092 = vmatpush1.msra.mxu0 %v8308_v1  ;;  %3163 = vmatpush1.msra.mxu1 %v8309_v19  ;;  %v8319_v1 = vld [vmem:[#allocation51_spill] sm:$0xff]  ;;  %v8320_v19 = vld [vmem:[#allocation52_spill] sm:$0xff] }
 0x5f3   :  { %3093 = vmatprep.subr.mxu0 %v8310_v20  ;;  %3164 = vmatprep.subr.mxu1 %v8311_v41  ;;  %v8321_v20 = vld [vmem:[#allocation53_spill] sm:$0xff] }
 0x5f4   :  { %3094 = vmatpush1.msra.mxu0 %v8312_v42  ;;  %3165 = vmatpush1.msra.mxu1 %v8313_v36  ;;  %v8322_v42 = vld [vmem:[#allocation54_spill] sm:$0xff] }
 0x5f5   :  { %3095 = vmatprep.subr.mxu0 %v8314_v54  ;;  %3166 = vmatprep.subr.mxu1 %v8315_v43  ;;  %v8323_v54 = vld [vmem:[#allocation55_spill] sm:$0xff] }
 0x5f6   :  { %3096 = vmatpush1.msra.mxu0 %v8316_v58  ;;  %3167 = vmatpush1.msra.mxu1 %v8317_v61  ;;  %v8324_v58 = vld [vmem:[#allocation35_spill] sm:$0xff] }
 0x5f7   :  { %3097 = vmatprep.subr.mxu0 %v8318_v13  ;;  %3168 = vmatprep.subr.mxu1 %v8319_v1  ;;  %v8325_v13 = vld [vmem:[#allocation88_spill] sm:$0xff] }
 0x5f8   :  { %3098 = vmatpush1.msra.mxu0 %v8320_v19  ;;  %3131 = vmatprep.mubr.f32.mxu0 %v7783_v3 }
 0x5f9   :  { %3169 = vmatpush1.msra.mxu1 %v8321_v20  ;;  %3202 = vmatprep.mubr.f32.mxu1 %v7783_v3 }
 0x5fa   :  { %3217 = vmatprep.subr.mxu0 %v8322_v42  ;;  %3288 = vmatprep.subr.mxu1 %v8323_v54 }
 0x676   :  { %v2781_v43 = vpop.f32.mrf.mxu0  ;;  %v2852_v1 = vpop.f32.mrf.mxu1 }
 0x677   :  { %v2857_v36 = vadd.f32 %v2781_v43, %v8324_v58  ;;  %v2859_v60 = vadd.f32 %v2852_v1, %v8327_v29 }
 0x678   :  { %v2783_v61 = vpop.f32.mrf.mxu0  ;;  %v2854_v2 = vpop.f32.mrf.mxu1 }
 0x679   :  { %v4097_v41 = vmul.f32 -1.442695, %v2857_v36  ;;  %v2858_v22 = vadd.f32 %v2783_v61, %v8325_v13  ;;  %v2860_v20 = vadd.f32 %v2854_v2, %v8326_v47 }
 0x67b   :  { %4427 = vpow2.f32 %v4097_v41  ;;  %v4098_v19 = vmul.f32 -1.442695, %v2858_v22  ;;  %v4099_v62 = vmul.f32 -1.442695, %v2860_v20  ;;  %v8329_v20 = vld [vmem:[#allocation108_spill] sm:$0xff] }
 0x67d   :  { %4429 = vpow2.f32 %v4098_v19 }
 0x67e   :  { %4431 = vpow2.f32 %v4099_v62 }
 0x67f   :  { %4433 = vtanh.f32 %v2859_v60 }
 0x688   :  { %v4428_v42 = vpop.eup %4427 }
 0x689   :  { %v3014_v49 = vadd.f32 1.0, %v4428_v42 }
 0x68a   :  { %v4430_v54 = vpop.eup %4429 }
 0x68b   :  { %4435 = vrcp.f32 %v3014_v49  ;;  %v3020_v43 = vadd.f32 1.0, %v4430_v54  ;;  %v4432_v58 = vpop.eup %4431 }
 0x68c   :  { %v4434_v61 = vpop.eup %4433  ;;  %v3027_v22 = vadd.f32 1.0, %v4432_v58 }
 0x68d   :  { %4437 = vrcp.f32 %v3020_v43  ;;  %v8330_v43 = vld [vmem:[#allocation109_spill] sm:$0xff] }
 0x68e   :  { %4439 = vrcp.f32 %v3027_v22 }
 0x698   :  { %v4436_v13 = vpop.eup %4435 }
 0x699   :  { %v3031_v36 = vmul.f32 %v4436_v13, %v4434_v61  ;;  %v2931_v19 = vpop.f32.mrf.mxu0  ;;  %v3002_v49 = vpop.f32.mrf.mxu1  ;;  %v8331_v61 = vld [vmem:[#allocation107_spill] sm:$0xff] }
 0x69a   :  { %v4438_v41 = vpop.eup %4437  ;;  %v3007_v47 = vadd.f32 %v2931_v19, %v8328_v63  ;;  %v3009_v63 = vadd.f32 %v3002_v49, %v8331_v61  ;;  %v8337_v49 = vld [vmem:[#allocation61_spill] sm:$0xff]  ;;  %v8342_v61 = vld [vmem:[#allocation66_spill] sm:$0xff] }
 0x69b   :  { %v3030_v2 = vmul.f32 %v4438_v41, %v6818_v34  ;;  %v2933_v29 = vpop.f32.mrf.mxu0  ;;  %v3004_v54 = vpop.f32.mrf.mxu1 }
 0x69c   :  { %v4100_v1 = vmul.f32 -1.442695, %v3007_v47  ;;  %v3008_v62 = vadd.f32 %v2933_v29, %v8329_v20  ;;  %v3010_v58 = vadd.f32 %v3004_v54, %v8330_v43  ;;  %v4440_v34 = vpop.eup %4439  ;;  %v8333_v29 = vld [vmem:[#allocation57_spill] sm:$0xff]  ;;  %v8335_v20 = vld [vmem:[#allocation59_spill] sm:$0xff]  ;;  %v8340_v43 = vld [vmem:[#allocation64_spill] sm:$0xff] }
 0x69d   :  { %v7098_v42 = vadd.f32 %v3031_v36, %v3030_v2  ;;  %v8339_v54 = vld [vmem:[#allocation63_spill] sm:$0xff] }
 0x69e   :  { %4441 = vpow2.f32 %v4100_v1  ;;  %v4101_v60 = vmul.f32 -1.442695, %v3008_v62  ;;  %v4102_v13 = vmul.f32 -1.442695, %v3010_v58  ;;  %v8334_v1 = vld [vmem:[#allocation58_spill] sm:$0xff]  ;;  %v8336_v62 = vld [vmem:[#allocation60_spill] sm:$0xff] }
 0x69f   :  { %4443 = vtanh.f32 %v7098_v42  ;;  %v8341_v58 = vld [vmem:[#allocation65_spill] sm:$0xff] }
 0x6a0   :  { %4445 = vpow2.f32 %v4101_v60  ;;  %v8338_v60 = vld [vmem:[#allocation62_spill] sm:$0xff] }
 0x6a1   :  { %4447 = vtanh.f32 %v3009_v63 }
 0x6a2   :  { %4449 = vpow2.f32 %v4102_v13  ;;  %v8343_v13 = vld [vmem:[#allocation67_spill] sm:$0xff] }
 0x6ab   :  { %v4442_v19 = vpop.eup %4441 }
 0x6ac   :  { %v4444_v41 = vpop.eup %4443  ;;  %v3038_v47 = vadd.f32 1.0, %v4442_v19 }
 0x6ad   :  { %v4446_v36 = vpop.eup %4445  ;;  %v7103_v22 = vmul.f32 %v4444_v41, %v4440_v34  ;;  %v8344_v34 = vld [vmem:[#allocation68_spill] sm:$0xff]  ;;  %v8345_v41 = vld [vmem:[#allocation69_spill] sm:$0xff] }
 0x6ae   :  { %4451 = vrcp.f32 %v3038_v47  ;;  %v3044_v2 = vadd.f32 1.0, %v4446_v36  ;;  %v4448_v63 = vpop.eup %4447  ;;  %v8346_v47 = vld [vmem:[#allocation70_spill] sm:$0xff] }
 0x6af   :  { %8332 = vst [vmem:[#allocation144_spill] sm:$0xff] %v7103_v22  ;;  %3132 = vmatmul.mubr.f32.vlgmr.msra.gmra.mxu0 %v7103_v22  ;;  %3203 = vmatmul.mubr.f32.vlgmr.msra.gmra.mxu1 %v7103_v22  ;;  %v4450_v19 = vpop.eup %4449 }
 0x6b0   :  { %4453 = vrcp.f32 %v3044_v2  ;;  %3218 = vmatpush1.msra.mxu0 %v6827_v33  ;;  %3289 = vmatpush1.msra.mxu1 %v6830_v14  ;;  %v8347_v2 = vld [vmem:[#allocation71_spill] sm:$0xff] }
 0x6b1   :  { %3219 = vmatprep.subr.mxu0 %v6833_v40  ;;  %3290 = vmatprep.subr.mxu1 %v6836_v26 }
 0x6b2   :  { %3220 = vmatpush1.msra.mxu0 %v6839_v59  ;;  %3291 = vmatpush1.msra.mxu1 %v6842_v38 }
 0x6b3   :  { %3221 = vmatprep.subr.mxu0 %v6845_v37  ;;  %3292 = vmatprep.subr.mxu1 %v6848_v21 }
 0x6b4   :  { %3222 = vmatpush1.msra.mxu0 %v8333_v29  ;;  %3293 = vmatpush1.msra.mxu1 %v8334_v1 }
 0x6b5   :  { %3223 = vmatprep.subr.mxu0 %v8335_v20  ;;  %3294 = vmatprep.subr.mxu1 %v8336_v62 }
 0x6b6   :  { %3224 = vmatpush1.msra.mxu0 %v8337_v49  ;;  %3295 = vmatpush1.msra.mxu1 %v8338_v60 }
 0x6b7   :  { %3225 = vmatprep.subr.mxu0 %v8339_v54  ;;  %3296 = vmatprep.subr.mxu1 %v8340_v43  ;;  %v8348_v54 = vld [vmem:[#allocation73_spill] sm:$0xff]  ;;  %v3051_v43 = vadd.f32 1.0, %v4450_v19  ;;  %v8355_v19 = vld [vmem:[#allocation27_spill] sm:$0xff] }
 0x6b8   :  { %3226 = vmatpush1.msra.mxu0 %v8341_v58  ;;  %3297 = vmatpush1.msra.mxu1 %v8342_v61  ;;  %v8349_v58 = vld [vmem:[#allocation74_spill] sm:$0xff] }
 0x6b9   :  { %3227 = vmatprep.subr.mxu0 %v8343_v13  ;;  %3298 = vmatprep.subr.mxu1 %v8344_v34  ;;  %v8350_v13 = vld [vmem:[#allocation75_spill] sm:$0xff]  ;;  %v8351_v34 = vld [vmem:[#allocation76_spill] sm:$0xff]  ;;  %4455 = vrcp.f32 %v3051_v43 }
 0x6ba   :  { %3228 = vmatpush1.msra.mxu0 %v8345_v41  ;;  %3299 = vmatpush1.msra.mxu1 %v8346_v47  ;;  %v8364_v43 = vld [vmem:[#allocation124_spill] sm:$0xff] }
 0x6bb   :  { %v4452_v36 = vpop.eup %4451  ;;  %3229 = vmatprep.subr.mxu0 %v8347_v2  ;;  %3300 = vmatprep.subr.mxu1 %v6896_v5  ;;  %v8352_v2 = vld [vmem:[#allocation77_spill] sm:$0xff]  ;;  %v8353_v5 = vld [vmem:[#allocation78_spill] sm:$0xff] }
 0x6bc   :  { %v3055_v22 = vmul.f32 %v4452_v36, %v4448_v63  ;;  %3230 = vmatpush1.msra.mxu0 %v8348_v54  ;;  %3301 = vmatpush1.msra.mxu1 %v8349_v58  ;;  %v8354_v36 = vld [vmem:[#allocation80_spill] sm:$0xff] }
 0x6bd   :  { %v4454_v61 = vpop.eup %4453  ;;  %3231 = vmatprep.subr.mxu0 %v8350_v13  ;;  %3302 = vmatprep.subr.mxu1 %v8351_v34  ;;  %v8356_v13 = vld [vmem:[#allocation29_spill] sm:$0xff] }
 0x6be   :  { %v3054_v41 = vmul.f32 %v4454_v61, %v6924_v56  ;;  %3232 = vmatpush1.msra.mxu0 %v6912_v35  ;;  %3303 = vmatpush1.msra.mxu1 %v6915_v48  ;;  %v8357_v56 = vld [vmem:[#allocation30_spill] sm:$0xff]  ;;  %v8358_v61 = vld [vmem:[#allocation28_spill] sm:$0xff] }
 0x6bf   :  { %3233 = vmatprep.subr.mxu0 %v8352_v2  ;;  %3304 = vmatprep.subr.mxu1 %v8353_v5  ;;  %v8359_v2 = vld [vmem:[#allocation114_spill] sm:$0xff]  ;;  %v8360_v5 = vld [vmem:[#allocation116_spill] sm:$0xff] }
 0x6c0   :  { %v7140_v63 = vadd.f32 %v3055_v22, %v3054_v41  ;;  %3234 = vmatpush1.msra.mxu0 %v6926_v31  ;;  %3305 = vmatpush1.msra.mxu1 %v8354_v36  ;;  %v8361_v22 = vld [vmem:[#allocation117_spill] sm:$0xff]  ;;  %v8362_v41 = vld [vmem:[#allocation115_spill] sm:$0xff] }
 0x6c1   :  { %3235 = vmatprep.subr.mxu0 %v8355_v19  ;;  %3306 = vmatprep.subr.mxu1 %v8356_v13  ;;  %v8363_v31 = vld [vmem:[#allocation123_spill] sm:$0xff]  ;;  %v8365_v19 = vld [vmem:[#allocation125_spill] sm:$0xff]  ;;  %v8366_v13 = vld [vmem:[#allocation126_spill] sm:$0xff] }
 0x6c2   :  { %3236 = vmatpush1.msra.mxu0 %v8357_v56  ;;  %3307 = vmatpush1.msra.mxu1 %v8358_v61  ;;  %4457 = vtanh.f32 %v7140_v63  ;;  %v8367_v56 = vld [vmem:[#allocation128_spill] sm:$0xff]  ;;  %v8368_v61 = vld [vmem:[#allocation129_spill] sm:$0xff] }
 0x6c3   :  { %3237 = vmatprep.subr.mxu0 %v8359_v2  ;;  %3308 = vmatprep.subr.mxu1 %v8360_v5  ;;  %v8369_v36 = vld [vmem:[#allocation133_spill] sm:$0xff]  ;;  %v8370_v2 = vld [vmem:[#allocation134_spill] sm:$0xff]  ;;  %v8371_v5 = vld [vmem:[#allocation135_spill] sm:$0xff] }
 0x6c4   :  { %3238 = vmatpush1.msra.mxu0 %v8361_v22  ;;  %3309 = vmatpush1.msra.mxu1 %v8362_v41  ;;  %v8372_v22 = vld [vmem:[#allocation136_spill] sm:$0xff]  ;;  %v8373_v41 = vld [vmem:[#allocation137_spill] sm:$0xff] }
 0x6c5   :  { %3239 = vmatprep.subr.mxu0 %v8363_v31  ;;  %3310 = vmatprep.subr.mxu1 %v8364_v43  ;;  %v8374_v31 = vld [vmem:[#allocation138_spill] sm:$0xff]  ;;  %v8375_v43 = vld [vmem:[#allocation139_spill] sm:$0xff] }
 0x6c6   :  { %3240 = vmatpush1.msra.mxu0 %v8365_v19  ;;  %3311 = vmatpush1.msra.mxu1 %v8366_v13  ;;  %v8376_v19 = vld [vmem:[#allocation140_spill] sm:$0xff]  ;;  %v8377_v13 = vld [vmem:[#allocation141_spill] sm:$0xff] }
 0x6c7   :  { %3241 = vmatprep.subr.mxu0 %v8367_v56  ;;  %3312 = vmatprep.subr.mxu1 %v8368_v61  ;;  %v8378_v56 = vld [vmem:[#allocation142_spill] sm:$0xff] }
 0x6c8   :  { %3242 = vmatpush1.msra.mxu0 %v8369_v36  ;;  %3313 = vmatpush1.msra.mxu1 %v8370_v2  ;;  %v4456_v36 = vpop.eup %4455 }
 0x6c9   :  { %3243 = vmatprep.subr.mxu0 %v8371_v5  ;;  %3314 = vmatprep.subr.mxu1 %v8372_v22 }
 0x6ca   :  { %3244 = vmatpush1.msra.mxu0 %v8373_v41  ;;  %3315 = vmatpush1.msra.mxu1 %v8374_v31 }
 0x6cb   :  { %3245 = vmatprep.subr.mxu0 %v8375_v43  ;;  %3316 = vmatprep.subr.mxu1 %v8376_v19 }
 0x6cc   :  { %3246 = vmatpush1.msra.mxu0 %v8377_v13  ;;  %3317 = vmatpush1.msra.mxu1 %v8378_v56 }
 0x6cd   :  { %3247 = vmatprep.subr.mxu0 %v7005_v0  ;;  %3318 = vmatprep.subr.mxu1 %v7008_v52 }
 0x6ce   :  { %3248 = vmatpush1.msra.mxu0 %v7011_v17  ;;  %3281 = vmatprep.mubr.f32.mxu0 %v7783_v3 }
 0x6cf   :  { %v4458_v41 = vpop.eup %4457  ;;  %3319 = vmatpush1.msra.mxu1 %v7015_v7  ;;  %3352 = vmatprep.mubr.f32.mxu1 %v7783_v3 }
 0x6d0   :  { %v7175_v43 = vmul.f32 %v4458_v41, %v4456_v36  ;;  %3490 = vmatprep.subr.mxu1 %v6612_v51  ;;  %3419 = vmatprep.subr.mxu0 %v6609_v24  ;;  %v8379_v24 = vld [vmem:[#allocation120_spill] sm:$0xff]  ;;  %v8380_v51 = vld [vmem:[#allocation118_spill] sm:$0xff]  ;;  %v8405_v36 = vld [vmem:[#allocation43_spill] sm:$0xff] }
 0x6d1   :  { %v8406_v41 = vld [vmem:[#allocation42_spill] sm:$0xff] }
 0x6d2   :  { %3282 = vmatmul.mubr.f32.vlgmr.msra.gmra.mxu0 %v7175_v43  ;;  %3353 = vmatmul.mubr.f32.vlgmr.msra.gmra.mxu1 %v7175_v43 }
 0x6d3   :  { %3491 = vmatpush1.msra.mxu1 %v6620_v25  ;;  %3420 = vmatpush1.msra.mxu0 %v6617_v45  ;;  %v8381_v45 = vld [vmem:[#allocation119_spill] sm:$0xff]  ;;  %v8382_v25 = vld [vmem:[#allocation121_spill] sm:$0xff] }
 0x6d4   :  { %3492 = vmatprep.subr.mxu1 %v6626_v50  ;;  %3421 = vmatprep.subr.mxu0 %v6623_v44  ;;  %v8383_v44 = vld [vmem:[#allocation83_spill] sm:$0xff]  ;;  %v8384_v50 = vld [vmem:[#allocation82_spill] sm:$0xff] }
 0x6d5   :  { %3493 = vmatpush1.msra.mxu1 %v6632_v27  ;;  %3422 = vmatpush1.msra.mxu0 %v6629_v15  ;;  %v8385_v15 = vld [vmem:[#allocation85_spill] sm:$0xff]  ;;  %v8386_v27 = vld [vmem:[#allocation84_spill] sm:$0xff] }
 0x6d6   :  { %3494 = vmatprep.subr.mxu1 %v6638_v4  ;;  %3423 = vmatprep.subr.mxu0 %v6635_v46  ;;  %v8387_v46 = vld [vmem:[#allocation87_spill] sm:$0xff]  ;;  %v8388_v4 = vld [vmem:[#allocation86_spill] sm:$0xff] }
 0x6d7   :  { %3495 = vmatpush1.msra.mxu1 %v6644_v8  ;;  %3424 = vmatpush1.msra.mxu0 %v6641_v6  ;;  %v8389_v6 = vld [vmem:[#allocation130_spill] sm:$0xff]  ;;  %v8390_v8 = vld [vmem:[#allocation127_spill] sm:$0xff] }
 0x6d8   :  { %3496 = vmatprep.subr.mxu1 %v6650_v10  ;;  %3425 = vmatprep.subr.mxu0 %v6647_v9  ;;  %v8391_v9 = vld [vmem:[#allocation132_spill] sm:$0xff]  ;;  %v8392_v10 = vld [vmem:[#allocation131_spill] sm:$0xff] }
 0x6d9   :  { %3497 = vmatpush1.msra.mxu1 %v6656_v30  ;;  %3426 = vmatpush1.msra.mxu0 %v6653_v12  ;;  %v8393_v12 = vld [vmem:[#allocation152_spill] sm:$0xff]  ;;  %v8394_v30 = vld [vmem:[#allocation151_spill] sm:$0xff] }
 0x6da   :  { %3498 = vmatprep.subr.mxu1 %v6662_v39  ;;  %3427 = vmatprep.subr.mxu0 %v6659_v57  ;;  %v8395_v57 = vld [vmem:[#allocation155_spill] sm:$0xff]  ;;  %v8396_v39 = vld [vmem:[#allocation154_spill] sm:$0xff] }
 0x6db   :  { %3499 = vmatpush1.msra.mxu1 %v6668_v18  ;;  %3428 = vmatpush1.msra.mxu0 %v6665_v16  ;;  %v8397_v16 = vld [vmem:[#allocation159_spill] sm:$0xff]  ;;  %v8398_v18 = vld [vmem:[#allocation157_spill] sm:$0xff] }
 0x6dc   :  { %3500 = vmatprep.subr.mxu1 %v6674_v11  ;;  %3429 = vmatprep.subr.mxu0 %v6671_v28  ;;  %v8399_v28 = vld [vmem:[#allocation161_spill] sm:$0xff]  ;;  %v8400_v11 = vld [vmem:[#allocation160_spill] sm:$0xff] }
 0x6dd   :  { %3501 = vmatpush1.msra.mxu1 %v6680_v53  ;;  %3430 = vmatpush1.msra.mxu0 %v6677_v32  ;;  %v8401_v32 = vld [vmem:[#allocation39_spill] sm:$0xff]  ;;  %v8402_v53 = vld [vmem:[#allocation38_spill] sm:$0xff] }
 0x6de   :  { %3502 = vmatprep.subr.mxu1 %v6686_v23  ;;  %3431 = vmatprep.subr.mxu0 %v6683_v55  ;;  %v8403_v55 = vld [vmem:[#allocation41_spill] sm:$0xff]  ;;  %v8404_v23 = vld [vmem:[#allocation40_spill] sm:$0xff] }
 0x6df   :  { %3503 = vmatpush1.msra.mxu1 %v8379_v24  ;;  %3432 = vmatpush1.msra.mxu0 %v8380_v51  ;;  %v8407_v24 = vld [vmem:[#allocation45_spill] sm:$0xff]  ;;  %v8408_v51 = vld [vmem:[#allocation44_spill] sm:$0xff] }
 0x6e0   :  { %3504 = vmatprep.subr.mxu1 %v8381_v45  ;;  %3433 = vmatprep.subr.mxu0 %v8382_v25  ;;  %v8409_v45 = vld [vmem:[#allocation47_spill] sm:$0xff]  ;;  %v8410_v25 = vld [vmem:[#allocation46_spill] sm:$0xff] }
 0x6e1   :  { %3505 = vmatpush1.msra.mxu1 %v8383_v44  ;;  %3434 = vmatpush1.msra.mxu0 %v8384_v50  ;;  %v8411_v44 = vld [vmem:[#allocation49_spill] sm:$0xff]  ;;  %v8412_v50 = vld [vmem:[#allocation48_spill] sm:$0xff] }
 0x6e2   :  { %3506 = vmatprep.subr.mxu1 %v8385_v15  ;;  %3435 = vmatprep.subr.mxu0 %v8386_v27  ;;  %v8413_v15 = vld [vmem:[#allocation51_spill] sm:$0xff]  ;;  %v8414_v27 = vld [vmem:[#allocation50_spill] sm:$0xff] }
 0x6e3   :  { %3507 = vmatpush1.msra.mxu1 %v8387_v46  ;;  %3436 = vmatpush1.msra.mxu0 %v8388_v4  ;;  %v8415_v46 = vld [vmem:[#allocation53_spill] sm:$0xff]  ;;  %v8416_v4 = vld [vmem:[#allocation52_spill] sm:$0xff] }
 0x6e4   :  { %3508 = vmatprep.subr.mxu1 %v8389_v6  ;;  %3437 = vmatprep.subr.mxu0 %v8390_v8  ;;  %v8417_v6 = vld [vmem:[#allocation55_spill] sm:$0xff]  ;;  %v8418_v8 = vld [vmem:[#allocation54_spill] sm:$0xff] }
 0x6e5   :  { %3509 = vmatpush1.msra.mxu1 %v8391_v9  ;;  %3438 = vmatpush1.msra.mxu0 %v8392_v10  ;;  %v8419_v10 = vld [vmem:[#allocation90_spill] sm:$0xff] }
 0x6e6   :  { %3510 = vmatprep.subr.mxu1 %v8393_v12  ;;  %3439 = vmatprep.subr.mxu0 %v8394_v30 }
 0x6e7   :  { %3511 = vmatpush1.msra.mxu1 %v8395_v57  ;;  %3440 = vmatpush1.msra.mxu0 %v8396_v39  ;;  %v8420_v39 = vld [vmem:[#allocation92_spill] sm:$0xff] }
 0x6e8   :  { %3512 = vmatprep.subr.mxu1 %v8397_v16  ;;  %3441 = vmatprep.subr.mxu0 %v8398_v18 }
 0x6e9   :  { %3513 = vmatpush1.msra.mxu1 %v8399_v28  ;;  %3442 = vmatpush1.msra.mxu0 %v8400_v11 }
 0x6ea   :  { %3514 = vmatprep.subr.mxu1 %v8401_v32  ;;  %3443 = vmatprep.subr.mxu0 %v8402_v53  ;;  %v8421_v32 = vld [vmem:[#allocation93_spill] sm:$0xff] }
 0x6eb   :  { %3515 = vmatpush1.msra.mxu1 %v8403_v55  ;;  %3444 = vmatpush1.msra.mxu0 %v8404_v23  ;;  %v8422_v23 = vld [vmem:[#allocation91_spill] sm:$0xff] }
 0x6ec   :  { %3516 = vmatprep.subr.mxu1 %v8405_v36  ;;  %3445 = vmatprep.subr.mxu0 %v8406_v41 }
 0x6ed   :  { %3517 = vmatpush1.msra.mxu1 %v8407_v24  ;;  %3446 = vmatpush1.msra.mxu0 %v8408_v51 }
 0x6ee   :  { %3518 = vmatprep.subr.mxu1 %v8409_v45  ;;  %3447 = vmatprep.subr.mxu0 %v8410_v25 }
 0x6ef   :  { %3519 = vmatpush1.msra.mxu1 %v8411_v44  ;;  %3448 = vmatpush1.msra.mxu0 %v8412_v50 }
 0x6f0   :  { %3520 = vmatprep.subr.mxu1 %v8413_v15  ;;  %3449 = vmatprep.subr.mxu0 %v8414_v27 }
 0x6f1   :  { %3521 = vmatpush1.msra.mxu1 %v8415_v46  ;;  %3450 = vmatpush1.msra.mxu0 %v8416_v4 }
 0x6f2   :  { %3483 = vmatprep.mubr.f32.mxu0 %v7783_v3  ;;  %3554 = vmatprep.mubr.f32.mxu1 %v7783_v3 }
 0x6f3   :  { %3640 = vmatprep.subr.mxu1 %v8417_v6  ;;  %3569 = vmatprep.subr.mxu0 %v8418_v8  ;;  %v8423_v6 = vld [vmem:[#allocation102_spill] sm:$0xff] }
 0x76f   :  { %v3133_v9 = vpop.f32.mrf.mxu0  ;;  %v3204_v18 = vpop.f32.mrf.mxu1 }
 0x770   :  { %v3209_v12 = vadd.f32 %v3133_v9, %v8419_v10  ;;  %v3211_v36 = vadd.f32 %v3204_v18, %v8422_v23 }
 0x771   :  { %v3135_v30 = vpop.f32.mrf.mxu0  ;;  %v3206_v11 = vpop.f32.mrf.mxu1 }
 0x772   :  { %v4103_v57 = vmul.f32 -1.442695, %v3209_v12  ;;  %v3210_v16 = vadd.f32 %v3135_v30, %v8420_v39  ;;  %v3212_v53 = vadd.f32 %v3206_v11, %v8421_v32  ;;  %v8424_v30 = vld [vmem:[#allocation104_spill] sm:$0xff]  ;;  %v8425_v11 = vld [vmem:[#allocation105_spill] sm:$0xff] }
 0x774   :  { %4459 = vpow2.f32 %v4103_v57  ;;  %v4104_v28 = vmul.f32 -1.442695, %v3210_v16  ;;  %v4105_v55 = vmul.f32 -1.442695, %v3212_v53  ;;  %v8426_v53 = vld [vmem:[#allocation103_spill] sm:$0xff] }
 0x776   :  { %4461 = vpow2.f32 %v4104_v28 }
 0x777   :  { %4463 = vpow2.f32 %v4105_v55 }
 0x778   :  { %4465 = vtanh.f32 %v3211_v36 }
 0x781   :  { %v4460_v41 = vpop.eup %4459 }
 0x782   :  { %v3366_v24 = vadd.f32 1.0, %v4460_v41 }
 0x783   :  { %v4462_v51 = vpop.eup %4461 }
 0x784   :  { %4467 = vrcp.f32 %v3366_v24  ;;  %v3372_v45 = vadd.f32 1.0, %v4462_v51  ;;  %v4464_v25 = vpop.eup %4463 }
 0x785   :  { %v4466_v44 = vpop.eup %4465  ;;  %v3379_v27 = vadd.f32 1.0, %v4464_v25 }
 0x786   :  { %4469 = vrcp.f32 %v3372_v45 }
 0x787   :  { %4471 = vrcp.f32 %v3379_v27  ;;  %v8438_v27 = vld [vmem:[#allocation77_spill] sm:$0xff] }
 0x791   :  { %v4468_v50 = vpop.eup %4467 }
 0x792   :  { %v3383_v15 = vmul.f32 %v4468_v50, %v4466_v44  ;;  %v3283_v46 = vpop.f32.mrf.mxu0  ;;  %v3354_v16 = vpop.f32.mrf.mxu1  ;;  %v8436_v50 = vld [vmem:[#allocation75_spill] sm:$0xff] }
 0x793   :  { %v4470_v4 = vpop.eup %4469  ;;  %v3359_v8 = vadd.f32 %v3283_v46, %v8423_v6  ;;  %v3361_v55 = vadd.f32 %v3354_v16, %v8426_v53  ;;  %v8446_v6 = vld [vmem:[#allocation114_spill] sm:$0xff]  ;;  %v8453_v16 = vld [vmem:[#allocation128_spill] sm:$0xff] }
 0x794   :  { %v3382_v9 = vmul.f32 %v4470_v4, %v7098_v42  ;;  %v3285_v10 = vpop.f32.mrf.mxu0  ;;  %v3356_v28 = vpop.f32.mrf.mxu1  ;;  %v8442_v4 = vld [vmem:[#allocation27_spill] sm:$0xff]  ;;  %v3779_v53 = vld [vmem:[#allocation14 + $0x28] sm:$0xff] }
 0x795   :  { %v4106_v12 = vmul.f32 -1.442695, %v3359_v8  ;;  %v3360_v57 = vadd.f32 %v3285_v10, %v8424_v30  ;;  %v3362_v32 = vadd.f32 %v3356_v28, %v8425_v11  ;;  %v4472_v42 = vpop.eup %4471  ;;  %v8447_v8 = vld [vmem:[#allocation115_spill] sm:$0xff]  ;;  %v8449_v10 = vld [vmem:[#allocation124_spill] sm:$0xff]  ;;  %v8451_v30 = vld [vmem:[#allocation126_spill] sm:$0xff] }
 0x796   :  { %v7254_v39 = vadd.f32 %v3383_v15, %v3382_v9  ;;  %v8437_v15 = vld [vmem:[#allocation78_spill] sm:$0xff]  ;;  %v8448_v9 = vld [vmem:[#allocation117_spill] sm:$0xff]  ;;  %v8456_v11 = vld [vmem:[#allocation139_spill] sm:$0xff] }
 0x797   :  { %4473 = vpow2.f32 %v4106_v12  ;;  %v4107_v18 = vmul.f32 -1.442695, %v3360_v57  ;;  %v4108_v23 = vmul.f32 -1.442695, %v3362_v32  ;;  %v8450_v12 = vld [vmem:[#allocation123_spill] sm:$0xff]  ;;  %v8452_v57 = vld [vmem:[#allocation125_spill] sm:$0xff] }
 0x798   :  { %4475 = vtanh.f32 %v7254_v39  ;;  %v8455_v28 = vld [vmem:[#allocation137_spill] sm:$0xff] }
 0x799   :  { %4477 = vpow2.f32 %v4107_v18  ;;  %v8454_v18 = vld [vmem:[#allocation133_spill] sm:$0xff] }
 0x79a   :  { %4479 = vtanh.f32 %v3361_v55  ;;  %v3780_v32 = vld [vmem:[#allocation14 + $0x30] sm:$0xff]  ;;  %v3778_v55 = vld [vmem:[#allocation14 + $0x20] sm:$0xff] }
 0x79b   :  { %4481 = vpow2.f32 %v4108_v23  ;;  %v3777_v23 = vld [vmem:[#allocation14 + $0x18] sm:$0xff] }
 0x7a4   :  { %v4474_v36 = vpop.eup %4473 }
 0x7a5   :  { %v4476_v41 = vpop.eup %4475  ;;  %v3390_v24 = vadd.f32 1.0, %v4474_v36  ;;  %v3775_v36 = vld [vmem:[#allocation14 + $0x8] sm:$0xff] }
 0x7a6   :  { %v4478_v51 = vpop.eup %4477  ;;  %v7259_v45 = vmul.f32 %v4476_v41, %v4472_v42  ;;  %v3776_v42 = vld [vmem:[#allocation14 + $0x10] sm:$0xff]  ;;  %v3774_v41 = vld [vmem:[#allocation14] sm:$0xff] }
 0x7a7   :  { %4483 = vrcp.f32 %v3390_v24  ;;  %v3396_v25 = vadd.f32 1.0, %v4478_v51  ;;  %v8458_v24 = vld [vmem:[#allocation81_spill] sm:$0xff]  ;;  %v8459_v51 = vld [vmem:[#allocation23_spill] sm:$0xff] }
 0x7a8   :  { %3484 = vmatmul.mubr.f32.vlgmr.msra.gmra.mxu0 %v7259_v45  ;;  %3555 = vmatmul.mubr.f32.vlgmr.msra.gmra.mxu1 %v7259_v45 }
 0x7a9   :  { %4485 = vrcp.f32 %v3396_v25  ;;  %3641 = vmatpush1.msra.mxu1 %v6830_v14  ;;  %3570 = vmatpush1.msra.mxu0 %v6827_v33  ;;  %v8427_v33 = vld [vmem:[#allocation64_spill] sm:$0xff]  ;;  %v8428_v14 = vld [vmem:[#allocation63_spill] sm:$0xff]  ;;  %v8460_v25 = vld [vmem:[#allocation26_spill] sm:$0xff] }
 0x7aa   :  { %3642 = vmatprep.subr.mxu1 %v6836_v26  ;;  %3571 = vmatprep.subr.mxu0 %v6833_v40  ;;  %v8429_v40 = vld [vmem:[#allocation66_spill] sm:$0xff]  ;;  %v8430_v26 = vld [vmem:[#allocation65_spill] sm:$0xff] }
 0x7ab   :  { %3643 = vmatpush1.msra.mxu1 %v6842_v38  ;;  %3572 = vmatpush1.msra.mxu0 %v6839_v59  ;;  %v4480_v59 = vpop.eup %4479  ;;  %v8431_v38 = vld [vmem:[#allocation68_spill] sm:$0xff] }
 0x7ac   :  { %3644 = vmatprep.subr.mxu1 %v6848_v21  ;;  %3573 = vmatprep.subr.mxu0 %v6845_v37  ;;  %v8432_v37 = vld [vmem:[#allocation67_spill] sm:$0xff]  ;;  %v4482_v21 = vpop.eup %4481 }
 0x7ad   :  { %3645 = vmatpush1.msra.mxu1 %v8334_v1  ;;  %3574 = vmatpush1.msra.mxu0 %v8333_v29  ;;  %v8433_v29 = vld [vmem:[#allocation69_spill] sm:$0xff]  ;;  %v3403_v44 = vadd.f32 1.0, %v4482_v21 }
 0x7ae   :  { %3646 = vmatprep.subr.mxu1 %v8336_v62  ;;  %3575 = vmatprep.subr.mxu0 %v8335_v20  ;;  %v8434_v20 = vld [vmem:[#allocation72_spill] sm:$0xff]  ;;  %v8435_v62 = vld [vmem:[#allocation71_spill] sm:$0xff]  ;;  %v3808_v21 = vld [vmem:[#allocation16 + $0x50] sm:$0xff] }
 0x7af   :  { %3647 = vmatpush1.msra.mxu1 %v8338_v60  ;;  %3576 = vmatpush1.msra.mxu0 %v8337_v49  ;;  %4487 = vrcp.f32 %v3403_v44  ;;  %v3800_v44 = vld [vmem:[#allocation16 + $0x10] sm:$0xff] }
 0x7b0   :  { %3648 = vmatprep.subr.mxu1 %v8427_v33  ;;  %3577 = vmatprep.subr.mxu0 %v8428_v14  ;;  %v8461_v33 = vld [vmem:[#allocation56_spill] sm:$0xff] }
 0x7b1   :  { %3649 = vmatpush1.msra.mxu1 %v8429_v40  ;;  %3578 = vmatpush1.msra.mxu0 %v8430_v26  ;;  %v8462_v14 = vld [vmem:[#allocation144_spill] sm:$0xff]  ;;  %v3813_v40 = vld [vmem:[#allocation16 + $0x78] sm:$0xff]  ;;  %v3812_v26 = vld [vmem:[#allocation16 + $0x70] sm:$0xff] }
 0x7b2   :  { %3650 = vmatprep.subr.mxu1 %v8431_v38  ;;  %3579 = vmatprep.subr.mxu0 %v8432_v37  ;;  %v3810_v38 = vld [vmem:[#allocation16 + $0x60] sm:$0xff]  ;;  %v3809_v37 = vld [vmem:[#allocation16 + $0x58] sm:$0xff] }
 0x7b3   :  { %3651 = vmatpush1.msra.mxu1 %v8346_v47  ;;  %3580 = vmatpush1.msra.mxu0 %v8433_v29  ;;  %v3807_v29 = vld [vmem:[#allocation16 + $0x48] sm:$0xff] }
 0x7b4   :  { %v4484_v1 = vpop.eup %4483  ;;  %3652 = vmatprep.subr.mxu1 %v8434_v20  ;;  %3581 = vmatprep.subr.mxu0 %v8435_v62  ;;  %v3804_v20 = vld [vmem:[#allocation16 + $0x30] sm:$0xff]  ;;  %v3803_v62 = vld [vmem:[#allocation16 + $0x28] sm:$0xff] }
 0x7b5   :  { %v3407_v49 = vmul.f32 %v4484_v1, %v4480_v59  ;;  %3653 = vmatpush1.msra.mxu1 %v8349_v58  ;;  %3582 = vmatpush1.msra.mxu0 %v8348_v54  ;;  %v8439_v58 = vld [vmem:[#allocation80_spill] sm:$0xff]  ;;  %v8440_v54 = vld [vmem:[#allocation79_spill] sm:$0xff]  ;;  %v3805_v1 = vld [vmem:[#allocation16 + $0x38] sm:$0xff] }
 0x7b6   :  { %v4486_v60 = vpop.eup %4485  ;;  %3654 = vmatprep.subr.mxu1 %v8351_v34  ;;  %3583 = vmatprep.subr.mxu0 %v8436_v50  ;;  %v8441_v34 = vld [vmem:[#allocation29_spill] sm:$0xff]  ;;  %v3811_v59 = vld [vmem:[#allocation16 + $0x68] sm:$0xff] }
 0x7b7   :  { %v3406_v47 = vmul.f32 %v4486_v60, %v7140_v63  ;;  %3655 = vmatpush1.msra.mxu1 %v6915_v48  ;;  %3584 = vmatpush1.msra.mxu0 %v6912_v35  ;;  %v8443_v63 = vld [vmem:[#allocation28_spill] sm:$0xff]  ;;  %v8444_v48 = vld [vmem:[#allocation30_spill] sm:$0xff] }
 0x7b8   :  { %3656 = vmatprep.subr.mxu1 %v8437_v15  ;;  %3585 = vmatprep.subr.mxu0 %v8438_v27  ;;  %v8445_v35 = vld [vmem:[#allocation116_spill] sm:$0xff]  ;;  %v3801_v60 = vld [vmem:[#allocation16 + $0x18] sm:$0xff] }
 0x7b9   :  { %v7296_v46 = vadd.f32 %v3407_v49, %v3406_v47  ;;  %3657 = vmatpush1.msra.mxu1 %v8439_v58  ;;  %3586 = vmatpush1.msra.mxu0 %v8440_v54  ;;  %v3802_v49 = vld [vmem:[#allocation16 + $0x20] sm:$0xff]  ;;  %v3799_v50 = vld [vmem:[#allocation16 + $0x8] sm:$0xff]  ;;  %v8463_v27 = vld [vmem:[#allocation94_spill] sm:$0xff] }
 0x7ba   :  { %3658 = vmatprep.subr.mxu1 %v8441_v34  ;;  %3587 = vmatprep.subr.mxu0 %v8442_v4  ;;  %v3798_v47 = vld [vmem:[#allocation16] sm:$0xff]  ;;  %v8464_v4 = vld [vmem:[#allocation96_spill] sm:$0xff] }
 0x7bb   :  { %3659 = vmatpush1.msra.mxu1 %v8443_v63  ;;  %3588 = vmatpush1.msra.mxu0 %v8444_v48  ;;  %4489 = vtanh.f32 %v7296_v46 }
 0x7bc   :  { %3660 = vmatprep.subr.mxu1 %v8445_v35  ;;  %3589 = vmatprep.subr.mxu0 %v8446_v6 }
 0x7bd   :  { %3661 = vmatpush1.msra.mxu1 %v8447_v8  ;;  %3590 = vmatpush1.msra.mxu0 %v8448_v9  ;;  %v8465_v8 = vld [vmem:[#allocation97_spill] sm:$0xff] }
 0x7be   :  { %3662 = vmatprep.subr.mxu1 %v8449_v10  ;;  %3591 = vmatprep.subr.mxu0 %v8450_v12  ;;  %v8466_v12 = vld [vmem:[#allocation95_spill] sm:$0xff] }
 0x7bf   :  { %3663 = vmatpush1.msra.mxu1 %v8451_v30  ;;  %3592 = vmatpush1.msra.mxu0 %v8452_v57 }
 0x7c0   :  { %3664 = vmatprep.subr.mxu1 %v8368_v61  ;;  %3593 = vmatprep.subr.mxu0 %v8453_v16  ;;  %v4488_v61 = vpop.eup %4487 }
 0x7c1   :  { %3665 = vmatpush1.msra.mxu1 %v8370_v2  ;;  %3594 = vmatpush1.msra.mxu0 %v8454_v18  ;;  %v3789_v2 = vld [vmem:[#allocation14 + $0x78] sm:$0xff] }
 0x7c2   :  { %3666 = vmatprep.subr.mxu1 %v8372_v22  ;;  %3595 = vmatprep.subr.mxu0 %v8371_v5  ;;  %v3781_v22 = vld [vmem:[#allocation14 + $0x38] sm:$0xff] }
 0x7c3   :  { %3667 = vmatpush1.msra.mxu1 %v8374_v31  ;;  %3596 = vmatpush1.msra.mxu0 %v8455_v28 }
 0x7c4   :  { %3668 = vmatprep.subr.mxu1 %v8376_v19  ;;  %3597 = vmatprep.subr.mxu0 %v8456_v11  ;;  %v3788_v19 = vld [vmem:[#allocation14 + $0x70] sm:$0xff] }
 0x7c5   :  { %3669 = vmatpush1.msra.mxu1 %v8378_v56  ;;  %3598 = vmatpush1.msra.mxu0 %v8377_v13  ;;  %v3783_v13 = vld [vmem:[#allocation14 + $0x48] sm:$0xff]  ;;  %v3782_v56 = vld [vmem:[#allocation14 + $0x40] sm:$0xff] }
 0x7c6   :  { %3670 = vmatprep.subr.mxu1 %v7008_v52  ;;  %3599 = vmatprep.subr.mxu0 %v7005_v0  ;;  %v8457_v52 = vld [vmem:[#allocation122_spill] sm:$0xff]  ;;  %v3787_v0 = vld [vmem:[#allocation14 + $0x68] sm:$0xff] }
 0x7c7   :  { %3671 = vmatpush1.msra.mxu1 %v7015_v7  ;;  %3600 = vmatpush1.msra.mxu0 %v7011_v17  ;;  %v3786_v17 = vld [vmem:[#allocation14 + $0x60] sm:$0xff]  ;;  %v3785_v7 = vld [vmem:[#allocation14 + $0x58] sm:$0xff] }
 0x7c8   :  { %v4490_v5 = vpop.eup %4489  ;;  %3633 = vmatprep.mubr.f32.mxu0 %v7783_v3  ;;  %3704 = vmatprep.mubr.f32.mxu1 %v7783_v3  ;;  %v3784_v3 = vld [vmem:[#allocation14 + $0x50] sm:$0xff] }
 0x7c9   :  { %4208 = vmatprep.subr.mxu1 %v3789_v2  ;;  %v7331_v31 = vmul.f32 %v4490_v5, %v4488_v61  ;;  %4164 = vmatprep.subr.mxu0 %v3813_v40 }
 0x7cb   :  { %3634 = vmatmul.mubr.f32.vlgmr.msra.gmra.mxu0 %v7331_v31  ;;  %3705 = vmatmul.mubr.f32.vlgmr.msra.gmra.mxu1 %v7331_v31 }
 0x7cc   :  { %4209 = vmatpush3.msra.mxu1 %v3789_v2  ;;  %4240 = vmatprep.mubr.f32.mxu1 %v8457_v52 }
 0x7cd   :  { %4210 = vmatprep.subr.mxu1 %v3788_v19  ;;  %4165 = vmatpush3.msra.mxu0 %v3813_v40 }
 0x7ce   :  { %4211 = vmatpush3.msra.mxu1 %v3788_v19  ;;  %4166 = vmatprep.subr.mxu0 %v3812_v26 }
 0x7cf   :  { %4212 = vmatprep.subr.mxu1 %v3787_v0  ;;  %4167 = vmatpush3.msra.mxu0 %v3812_v26 }
 0x7d0   :  { %4213 = vmatpush3.msra.mxu1 %v3787_v0  ;;  %4168 = vmatprep.subr.mxu0 %v3811_v59 }
 0x7d1   :  { %4214 = vmatprep.subr.mxu1 %v3786_v17  ;;  %4169 = vmatpush3.msra.mxu0 %v3811_v59 }
 0x7d2   :  { %4215 = vmatpush3.msra.mxu1 %v3786_v17  ;;  %4170 = vmatprep.subr.mxu0 %v3810_v38  ;;  %v8467_v17 = vld [vmem:[#allocation98_spill] sm:$0xff] }
 0x7d3   :  { %4216 = vmatprep.subr.mxu1 %v3785_v7  ;;  %4171 = vmatpush3.msra.mxu0 %v3810_v38 }
 0x7d4   :  { %4217 = vmatpush3.msra.mxu1 %v3785_v7  ;;  %4172 = vmatprep.subr.mxu0 %v3809_v37 }
 0x7d5   :  { %4218 = vmatprep.subr.mxu1 %v3784_v3  ;;  %4173 = vmatpush3.msra.mxu0 %v3809_v37 }
 0x7d6   :  { %4219 = vmatpush3.msra.mxu1 %v3784_v3  ;;  %4174 = vmatprep.subr.mxu0 %v3808_v21 }
 0x7d7   :  { %4220 = vmatprep.subr.mxu1 %v3783_v13  ;;  %4175 = vmatpush3.msra.mxu0 %v3808_v21 }
 0x7d8   :  { %4221 = vmatpush3.msra.mxu1 %v3783_v13  ;;  %4176 = vmatprep.subr.mxu0 %v3807_v29 }
 0x7d9   :  { %4222 = vmatprep.subr.mxu1 %v3782_v56  ;;  %4177 = vmatpush3.msra.mxu0 %v3807_v29 }
 0x7da   :  { %4223 = vmatpush3.msra.mxu1 %v3782_v56 }
 0x7db   :  { %4224 = vmatprep.subr.mxu1 %v3781_v22 }
 0x7dc   :  { %4225 = vmatpush3.msra.mxu1 %v3781_v22  ;;  %v8468_v22 = vld [vmem:[#allocation100_spill] sm:$0xff] }
 0x7dd   :  { %4226 = vmatprep.subr.mxu1 %v3780_v32 }
 0x7de   :  { %4227 = vmatpush3.msra.mxu1 %v3780_v32 }
 0x7df   :  { %4228 = vmatprep.subr.mxu1 %v3779_v53 }
 0x7e0   :  { %4229 = vmatpush3.msra.mxu1 %v3779_v53 }
 0x7e1   :  { %4230 = vmatprep.subr.mxu1 %v3778_v55 }
 0x7e2   :  { %4231 = vmatpush3.msra.mxu1 %v3778_v55 }
 0x7e3   :  { %4232 = vmatprep.subr.mxu1 %v3777_v23 }
 0x7e4   :  { %4233 = vmatpush3.msra.mxu1 %v3777_v23 }
 0x7e5   :  { %4234 = vmatprep.subr.mxu1 %v3776_v42 }
 0x7e6   :  { %4235 = vmatpush3.msra.mxu1 %v3776_v42 }
 0x7e7   :  { %4236 = vmatprep.subr.mxu1 %v3775_v36 }
 0x7e8   :  { %4237 = vmatpush3.msra.mxu1 %v3775_v36  ;;  %v8469_v36 = vld [vmem:[#allocation101_spill] sm:$0xff] }
 0x7e9   :  { %4238 = vmatprep.subr.mxu1 %v3774_v41 }
 0x7ea   :  { %4239 = vmatpush3.msra.mxu1 %v3774_v41 }
 0x7eb   :  { %4241 = vmatmul.mubr.f32.vlgmr.msra.gmra.mxu1 %v8458_v24  ;;  %v8470_v24 = vld [vmem:[#allocation99_spill] sm:$0xff] }
 0x7ec   :  { %4243 = vmatprep.mubr.f32.mxu1 %v8459_v51 }
 0x7ef   :  { %4244 = vmatmul.mubr.f32.gmra.mxu1 %v8460_v25 }
 0x7f0   :  { %4246 = vmatprep.mubr.f32.mxu1 %v8461_v33 }
 0x7f3   :  { %4247 = vmatmul.mubr.f32.gmra.mxu1 %v8462_v14 }
 0x7f4   :  { %4249 = vmatprep.mubr.f32.mxu1 %v7259_v45  ;;  %v3806_v45 = vld [vmem:[#allocation16 + $0x40] sm:$0xff] }
 0x7f5   :  { %4178 = vmatprep.subr.mxu0 %v3806_v45 }
 0x7f6   :  { %4179 = vmatpush3.msra.mxu0 %v3806_v45 }
 0x7f7   :  { %4180 = vmatprep.subr.mxu0 %v3805_v1 }
 0x7f8   :  { %4181 = vmatpush3.msra.mxu0 %v3805_v1 }
 0x7f9   :  { %4182 = vmatprep.subr.mxu0 %v3804_v20 }
 0x7fa   :  { %4183 = vmatpush3.msra.mxu0 %v3804_v20 }
 0x7fb   :  { %4184 = vmatprep.subr.mxu0 %v3803_v62 }
 0x7fc   :  { %4185 = vmatpush3.msra.mxu0 %v3803_v62 }
 0x7fd   :  { %4186 = vmatprep.subr.mxu0 %v3802_v49 }
 0x7fe   :  { %4187 = vmatpush3.msra.mxu0 %v3802_v49 }
 0x7ff   :  { %4188 = vmatprep.subr.mxu0 %v3801_v60 }
 0x800   :  { %4189 = vmatpush3.msra.mxu0 %v3801_v60 }
 0x801   :  { %4190 = vmatprep.subr.mxu0 %v3800_v44 }
 0x802   :  { %4191 = vmatpush3.msra.mxu0 %v3800_v44 }
 0x803   :  { %4192 = vmatprep.subr.mxu0 %v3799_v50 }
 0x804   :  { %4193 = vmatpush3.msra.mxu0 %v3799_v50 }
 0x805   :  { %4194 = vmatprep.subr.mxu0 %v3798_v47 }
 0x806   :  { %4195 = vmatpush3.msra.mxu0 %v3798_v47  ;;  %v8471_v47 = vld [vmem:[#allocation143_spill] sm:$0xff] }
 0x868   :  { %v3485_v15 = vpop.f32.mrf.mxu0  ;;  %v3556_v48 = vpop.f32.mrf.mxu1 }
 0x869   :  { %v3561_v58 = vadd.f32 %v3485_v15, %v8463_v27  ;;  %v3563_v30 = vadd.f32 %v3556_v48, %v8466_v12  ;;  %v8472_v15 = vld [vmem:[#allocation24_spill] sm:$0xff]  ;;  %v8473_v27 = vld [vmem:[#allocation25_spill] sm:$0xff] }
 0x86a   :  { %v3487_v54 = vpop.f32.mrf.mxu0  ;;  %v3558_v6 = vpop.f32.mrf.mxu1 }
 0x86b   :  { %v4109_v34 = vmul.f32 -1.442695, %v3561_v58  ;;  %v3562_v63 = vadd.f32 %v3487_v54, %v8464_v4  ;;  %v3564_v9 = vadd.f32 %v3558_v6, %v8465_v8  ;;  %v8474_v58 = vld [vmem:[#allocation162_spill] sm:$0xff] }
 0x86d   :  { %4491 = vpow2.f32 %v4109_v34  ;;  %v4110_v35 = vmul.f32 -1.442695, %v3562_v63  ;;  %v4111_v10 = vmul.f32 -1.442695, %v3564_v9 }
 0x86f   :  { %4493 = vpow2.f32 %v4110_v35 }
 0x870   :  { %4495 = vpow2.f32 %v4111_v10 }
 0x871   :  { %4497 = vtanh.f32 %v3563_v30 }
 0x87a   :  { %v4492_v57 = vpop.eup %4491 }
 0x87b   :  { %v3718_v16 = vadd.f32 1.0, %v4492_v57 }
 0x87c   :  { %v4494_v18 = vpop.eup %4493 }
 0x87d   :  { %4499 = vrcp.f32 %v3718_v16  ;;  %v3724_v28 = vadd.f32 1.0, %v4494_v18  ;;  %v4496_v11 = vpop.eup %4495 }
 0x87e   :  { %v4498_v2 = vpop.eup %4497  ;;  %v3731_v19 = vadd.f32 1.0, %v4496_v11 }
 0x87f   :  { %4501 = vrcp.f32 %v3724_v28 }
 0x880   :  { %4503 = vrcp.f32 %v3731_v19 }
 0x88a   :  { %v4500_v61 = vpop.eup %4499 }
 0x88b   :  { %v3735_v5 = vmul.f32 %v4500_v61, %v4498_v2  ;;  %v3635_v52 = vpop.f32.mrf.mxu0  ;;  %v3706_v55 = vpop.f32.mrf.mxu1 }
 0x88c   :  { %v4502_v0 = vpop.eup %4501  ;;  %v3711_v7 = vadd.f32 %v3635_v52, %v8467_v17  ;;  %v3713_v51 = vadd.f32 %v3706_v55, %v8470_v24 }
 0x88d   :  { %v3734_v3 = vmul.f32 %v4502_v0, %v7254_v39  ;;  %v3637_v13 = vpop.f32.mrf.mxu0  ;;  %v3708_v42 = vpop.f32.mrf.mxu1 }
 0x88e   :  { %v4112_v56 = vmul.f32 -1.442695, %v3711_v7  ;;  %v3712_v32 = vadd.f32 %v3637_v13, %v8468_v22  ;;  %v3714_v41 = vadd.f32 %v3708_v42, %v8469_v36  ;;  %v4504_v33 = vpop.eup %4503 }
 0x88f   :  { %v3736_v53 = vadd.f32 %v3735_v5, %v3734_v3 }
 0x890   :  { %4505 = vpow2.f32 %v4112_v56  ;;  %v4113_v23 = vmul.f32 -1.442695, %v3712_v32  ;;  %v4114_v25 = vmul.f32 -1.442695, %v3714_v41 }
 0x891   :  { %4507 = vtanh.f32 %v3736_v53 }
 0x892   :  { %4509 = vpow2.f32 %v4113_v23 }
 0x893   :  { %4511 = vtanh.f32 %v3713_v51 }
 0x894   :  { %4513 = vpow2.f32 %v4114_v25 }
 0x89d   :  { %v4506_v14 = vpop.eup %4505 }
 0x89e   :  { %v4508_v39 = vpop.eup %4507  ;;  %v3742_v40 = vadd.f32 1.0, %v4506_v14 }
 0x89f   :  { %v4510_v26 = vpop.eup %4509  ;;  %v3738_v59 = vmul.f32 %v4508_v39, %v4504_v33 }
 0x8a0   :  { %4515 = vrcp.f32 %v3742_v40  ;;  %v3748_v38 = vadd.f32 1.0, %v4510_v26  ;;  %v4512_v37 = vpop.eup %4511 }
 0x8a1   :  { %4250 = vmatmul.mubr.f32.gmra.mxu1 %v3738_v59  ;;  %v4514_v21 = vpop.eup %4513 }
 0x8a2   :  { %4517 = vrcp.f32 %v3748_v38  ;;  %v3755_v20 = vadd.f32 1.0, %v4514_v21 }
 0x8a4   :  { %4519 = vrcp.f32 %v3755_v20 }
 0x8ab   :  { %v4242_v54 = vpop.f32.mrf.mxu1 }
 0x8ad   :  { %v4516_v29 = vpop.eup %4515  ;;  %v3985_v34 = vpop.f32.mrf.mxu1 }
 0x8ae   :  { %v3759_v45 = vmul.f32 %v4516_v29, %v4512_v37 }
 0x8af   :  { %v4518_v1 = vpop.eup %4517  ;;  %v4245_v4 = vpop.f32.mrf.mxu1 }
 0x8b0   :  { %v3758_v62 = vmul.f32 %v4518_v1, %v7296_v46  ;;  %v8475_v46 = vld [vmem:[#allocation37_spill] sm:$0xff] }
 0x8b1   :  { %v4520_v60 = vpop.eup %4519  ;;  %v3995_v63 = vpop.f32.mrf.mxu1 }
 0x8b2   :  { %v3760_v49 = vadd.f32 %v3759_v45, %v3758_v62 }
 0x8b3   :  { %v4248_v9 = vpop.f32.mrf.mxu1 }
 0x8b4   :  { %4521 = vtanh.f32 %v3760_v49 }
 0x8b5   :  { %v4005_v28 = vpop.f32.mrf.mxu1 }
 0x8c1   :  { %v4522_v44 = vpop.eup %4521 }
 0x8c2   :  { %v3762_v50 = vmul.f32 %v4522_v44, %v4520_v60 }
 0x8c4   :  { %4196 = vmatprep.mubr.f32.mxu0 %v3762_v50 }
 0x8c5   :  { %4197 = vmatmul.mubr.f32.vlgmr.msra.gmra.mxu0 %v7331_v31  ;;  %v4115_v31 = vld [vmem:[%s7375_s7] ss:$0 sm:$0xff]  ;;  %s4963_s7 = smov [#allocation17]  }
 0x8c6   :  { %4199 = vmatprep.mubr.f32.mxu0 %v7175_v43  ;;  %s4052_s15 = sshll.u32 %s4963_s7, 4  ;;  %s4053_s15 = int_to_ptr.vmem [resolvable:$true] %s4052_s15 }
 0x8c7   :  { %s4919_s16 = scalar_lea.vmem %s4053_s15, 1024  ;;  %p4924_p8 = scmp.lt.s32.totalorder %s4053_s15, %s4053_s15 }
 0x8c8   :  { %p4920_p7 = scmp.ne.s32.totalorder %s4053_s15, %s4919_s16  ;;  %p4925_p9 = scmp.lt.s32.totalorder %s4919_s16, %s4919_s16 }
 0x8c9   :  { %4200 = vmatmul.mubr.f32.gmra.mxu0 %v8471_v47 }
 0x8ca   :  { %4202 = vmatprep.mubr.f32.mxu0 %v8472_v15  ;;  %p4926_p10 = por %p4925_p9, %p4924_p8 }
 0x8cc   :  { %p4927_p11 = pnand %p4926_p10, %p4920_p7 }
 0x8cd   :  { %4203 = vmatmul.mubr.f32.gmra.mxu0 %v8473_v27 }
 0x8ce   :  { %4205 = vmatprep.mubr.f32.mxu0 %v8474_v58 }
 0x8d1   :  { %4206 = vmatmul.mubr.f32.gmra.mxu0 %v8475_v46 }
 0x961   :  { %v4251_v5 = vpop.f32.mrf.mxu1 }
 0x963   :  { %v4015_v13 = vpop.f32.mrf.mxu1 }
 0x985   :  { %v4198_v48 = vpop.f32.mrf.mxu0 }
 0x986   :  { %v3991_v43 = vadd.f32 %v4242_v54, %v4198_v48 }
 0x987   :  { %v3880_v35 = vpop.f32.mrf.mxu0 }
 0x988   :  { %v4032_v6 = vadd.f32 %v4115_v31, %v3991_v43  ;;  %v3986_v8 = vadd.f32 %v3985_v34, %v3880_v35 }
 0x989   :  { %v4201_v10 = vpop.f32.mrf.mxu0 }
 0x98a   :  { %4040 = vst [vmem:[#allocation17 + $0x8] sm:$0xff] %v4032_v6  ;;  %v4031_v12 = vadd.f32 %v4115_v31, %v3986_v8  ;;  %v4001_v30 = vadd.f32 %v4245_v4, %v4201_v10 }
 0x98b   :  { %v3890_v57 = vpop.f32.mrf.mxu0 }
 0x98c   :  { %4039 = vst [vmem:[#allocation17] sm:$0xff] %v4031_v12  ;;  %v4034_v16 = vadd.f32 %v4115_v31, %v4001_v30  ;;  %v3996_v18 = vadd.f32 %v3995_v63, %v3890_v57 }
 0x98d   :  { %v4204_v11 = vpop.f32.mrf.mxu0 }
 0x98e   :  { %4042 = vst [vmem:[#allocation17 + $0x18] sm:$0xff] %v4034_v16  ;;  %v4033_v2 = vadd.f32 %v4115_v31, %v3996_v18  ;;  %v4011_v61 = vadd.f32 %v4248_v9, %v4204_v11 }
 0x98f   :  { %v3900_v19 = vpop.f32.mrf.mxu0 }
 0x990   :  { %4041 = vst [vmem:[#allocation17 + $0x10] sm:$0xff] %v4033_v2  ;;  %v4036_v52 = vadd.f32 %v4115_v31, %v4011_v61  ;;  %v4006_v0 = vadd.f32 %v4005_v28, %v3900_v19 }
 0x991   :  { %v4207_v17 = vpop.f32.mrf.mxu0 }
 0x992   :  { %4044 = vst [vmem:[#allocation17 + $0x28] sm:$0xff] %v4036_v52  ;;  %v4035_v7 = vadd.f32 %v4115_v31, %v4006_v0  ;;  %v4021_v3 = vadd.f32 %v4251_v5, %v4207_v17 }
 0x993   :  { %v3910_v56 = vpop.f32.mrf.mxu0 }
 0x994   :  { %4043 = vst [vmem:[#allocation17 + $0x20] sm:$0xff] %v4035_v7  ;;  %v4038_v22 = vadd.f32 %v4115_v31, %v4021_v3  ;;  %v4016_v32 = vadd.f32 %v4015_v13, %v3910_v56 }
 0x996   :  { %4046 = vst [vmem:[#allocation17 + $0x38] sm:$0xff] %v4038_v22  ;;  %v4037_v53 = vadd.f32 %v4115_v31, %v4016_v32 }
 0x998   :  { %4045 = vst [vmem:[#allocation17 + $0x30] sm:$0xff] %v4037_v53 }
 0x999   :  { %4930 = shalt.err (!%p4927_p11)
}
 0x99a   :  { %4058 = dma.vmem_to_hbm [thread:$0]  %s4053_s15, 1024, %s7376_s8, [#allocation7], %s4957_s23, %s4957_s23, %s4958_s24  }
 0x99b   :  { %4947 = dma.done.wait [#allocation7], 1024  }
 0x99c   :  { %4948 = vsyncadd [#allocation7], 4294966272 }
 0x99d   :  { %4062 = vsyncpa [#allocation6], 1 }
 0x99e   :  { %4063 = vsyncpa [#allocation9], 1 }
 0x99f   :  { %4064 = vsyncpa [#allocation12], 1 }
 0x9a0   :  { %4065 = vsyncpa [#allocation15], 1 }
 0x9a1   :  { %4066 = vsyncpa [#allocation7], 1 }

</bundles_post_ra>
